<compile_context>
chip_gen: v7x
topology: tpu7x:2x2x1
jax: 0.10.0
libtpu: 0.0.40
codegen_flags: <defaults>
</compile_context>

<pallas_src>
from functools import partial

import jax
import jax.numpy as jnp
from jax.experimental import pallas as pl
from jax.experimental.pallas import tpu as pltpu


def _round_up(n, m):
    return ((n + m - 1) // m) * m


def rcombinet_kernel(
    xs_ref,     # (TS, Ip)  f32   block of the input sequence (lane-padded)
    w1t_ref,    # (Ip, Rp)  bf16  W1^T, lane-padded
    b1_ref,     # (1, Rp)   f32
    wg_ref,     # (Rp+Hp, 4*Hp) bf16  stacked [W_ih^T ; W_hh^T], gates padded to Hp
    bg_ref,     # (1, 4*Hp) f32   b_ih + b_hh, gates padded to Hp
    w23t_ref,   # (Hp, Ap)  bf16  (W3 @ W2)^T, padded
    b23_ref,    # (1, Ap)   f32   W3 @ b2 + b3, padded
    hc0_ref,    # (2, Hp)   f32   initial [h ; c]
    ys_ref,     # (TS, Ap)  f32   out: per-step y
    hc_ref,     # (2, Hp)   f32   out: final [h ; c]   (aliased with hc0)
    state_ref,  # (2, Hp)   f32   scratch: running [h ; c], persists across grid
    cat_ref,    # (1, Rp+Hp) bf16 scratch: persistent [a | h] gate-matmul input
):
    TS = xs_ref.shape[0]
    Rp = w1t_ref.shape[1]
    Hp = hc0_ref.shape[1]

    @pl.when(pl.program_id(0) == 0)
    def _init():
        state_ref[...] = hc0_ref[...]
        cat_ref[0:1, Rp:] = hc0_ref[0:1, :].astype(jnp.bfloat16)

    for s in range(TS):
        # ll1 + ReLU (bf16 weights, f32 accumulate). Padded lanes stay exactly 0.
        a = jnp.dot(xs_ref[s:s + 1, :].astype(jnp.bfloat16), w1t_ref[...],
                    preferred_element_type=jnp.float32)
        a = jnp.maximum(a + b1_ref[...], 0.0)                       # (1, Rp) f32
        cat_ref[0:1, :Rp] = a.astype(jnp.bfloat16)

        # Single fused LSTM gate matmul on the persistent [a | h] buffer.
        gates = jnp.dot(cat_ref[...], wg_ref[...],
                        preferred_element_type=jnp.float32) + bg_ref[...]

        # Gate slices fall exactly on 128-lane boundaries.
        i_g = jax.nn.sigmoid(gates[:, 0 * Hp:1 * Hp])
        f_g = jax.nn.sigmoid(gates[:, 1 * Hp:2 * Hp])
        g_g = jnp.tanh(gates[:, 2 * Hp:3 * Hp])
        o_g = jax.nn.sigmoid(gates[:, 3 * Hp:4 * Hp])

        # Padded lanes: i=f=o=0.5, g=0, c=0  =>  padded c_new = h_new = 0.
        c_new = f_g * state_ref[1:2, :] + i_g * g_g
        h_new = o_g * jnp.tanh(c_new)
        state_ref[0:1, :] = h_new
        state_ref[1:2, :] = c_new
        cat_ref[0:1, Rp:] = h_new.astype(jnp.bfloat16)

        # Folded ll2 + ll3.
        ys_ref[s:s + 1, :] = (
            jnp.dot(h_new.astype(jnp.bfloat16), w23t_ref[...],
                    preferred_element_type=jnp.float32) + b23_ref[...]
        )

    @pl.when(pl.program_id(0) == pl.num_programs(0) - 1)
    def _finalize():
        hc_ref[...] = state_ref[...]


def pack_params(params, input_size, node_size_rec, node_size, no_actions):
    """One-time host-side packing: transpose, fold ll2/ll3, fuse gate weights,
    pad all feature dims to 128 lanes, cast weight matrices to bf16."""
    R, H, A = node_size_rec, node_size, no_actions
    Ip = _round_up(input_size, 128)
    Rp = _round_up(R, 128)
    Hp = _round_up(H, 128)
    Ap = _round_up(A, 128)

    w1t = jnp.zeros((Ip, Rp), jnp.float32).at[:input_size, :R].set(params["w1"].T)
    b1 = jnp.zeros((1, Rp), jnp.float32).at[0, :R].set(params["b1"])

    # Stacked gate weights: rows = [a-features (Rp) ; hidden (Hp)],
    # cols = 4 gates (i, f, g, o), each padded from H to Hp lanes.
    wg = jnp.zeros((Rp + Hp, 4 * Hp), jnp.float32)
    bg = jnp.zeros((1, 4 * Hp), jnp.float32)
    for k in range(4):
        wg = wg.at[:R, k * Hp:k * Hp + H].set(params["w_ih"][k * H:(k + 1) * H, :].T)
        wg = wg.at[Rp:Rp + H, k * Hp:k * Hp + H].set(params["w_hh"][k * H:(k + 1) * H, :].T)
        bg = bg.at[0, k * Hp:k * Hp + H].set(
            params["b_ih"][k * H:(k + 1) * H] + params["b_hh"][k * H:(k + 1) * H]
        )

    # Fold ll2 -> ll3 (no nonlinearity between them).
    w23 = params["w3"] @ params["w2"]                       # (A, H)
    b23 = params["w3"] @ params["b2"] + params["b3"]        # (A,)
    w23t = jnp.zeros((Hp, Ap), jnp.float32).at[:H, :A].set(w23.T)
    b23p = jnp.zeros((1, Ap), jnp.float32).at[0, :A].set(b23)

    packed = {
        "w1t": w1t.astype(jnp.bfloat16), "b1": b1,
        "wg": wg.astype(jnp.bfloat16), "bg": bg,
        "w23t": w23t.astype(jnp.bfloat16), "b23": b23p,
    }
    return jax.device_put(packed)


def pad_hidden(hidden, node_size):
    """(h0, c0) each (1, H) -> stacked, lane-padded (2, Hp) f32 device state."""
    h0, c0 = hidden
    Hp = _round_up(node_size, 128)
    hc = jnp.zeros((2, Hp), jnp.float32)
    hc = hc.at[0, :node_size].set(h0.reshape(-1))
    hc = hc.at[1, :node_size].set(c0.reshape(-1))
    return jax.device_put(hc)


@partial(jax.jit, donate_argnums=(2,))
def rcombinet_forward_seq(xs, packed, hc):
    """Run T sequential forward() steps in one fused kernel.

    xs: (T, input_size) f32; packed: pre-packed params; hc: padded (2, Hp) state.
    Returns (ys_padded (T, Ap), hc_new (2, Hp)). Slice ys to no_actions in caller.
    """
    T = xs.shape[0]
    Ip = packed["w1t"].shape[0]
    Rp = packed["w1t"].shape[1]
    Hp = hc.shape[1]
    Ap = packed["b23"].shape[1]

    if xs.shape[1] != Ip:                      # lane-pad x (zeros x zero weights -> 0)
        xs = jnp.pad(xs, ((0, 0), (0, Ip - xs.shape[1])))

    TS = next(ts for ts in (8, 4, 2, 1) if T % ts == 0)   # timesteps per grid block
    grid = (T // TS,)

    def const_spec(arr):
        return pl.BlockSpec(arr.shape, lambda t: (0, 0))

    ys, hc_new = pl.pallas_call(
        rcombinet_kernel,
        out_shape=(
            jax.ShapeDtypeStruct((T, Ap), jnp.float32),
            jax.ShapeDtypeStruct((2, Hp), jnp.float32),
        ),
        grid=grid,
        in_specs=[
            pl.BlockSpec((TS, Ip), lambda t: (t, 0)),     # xs, streamed per block
            const_spec(packed["w1t"]),                    # weights: resident for all T
            const_spec(packed["b1"]),
            const_spec(packed["wg"]),
            const_spec(packed["bg"]),
            const_spec(packed["w23t"]),
            const_spec(packed["b23"]),
            pl.BlockSpec((2, Hp), lambda t: (0, 0)),      # initial (h, c)
        ],
        out_specs=(
            pl.BlockSpec((TS, Ap), lambda t: (t, 0)),     # per-step y
            pl.BlockSpec((2, Hp), lambda t: (0, 0)),      # final (h, c), written once
        ),
        scratch_shapes=[
            pltpu.VMEM((2, Hp), jnp.float32),             # running (h, c)
            pltpu.VMEM((1, Rp + Hp), jnp.bfloat16),       # persistent [a | h]
        ],
        input_output_aliases={7: 1},                      # hc in -> hc out (in place)
        compiler_params=pltpu.CompilerParams(
            dimension_semantics=("arbitrary",)),          # serial recurrence
    )(xs, packed["w1t"], packed["b1"], packed["wg"], packed["bg"],
      packed["w23t"], packed["b23"], hc)
    return ys, hc_new


def rcombinet_forward(x, packed, hc):
    """Single-step convenience wrapper matching module.forward(); x: (1, input_size)."""
    ys, hc = rcombinet_forward_seq(x.reshape(1, -1), packed, hc)
    return ys[0:1], hc


def init_params(key, input_size, node_size_rec, node_size, no_actions):
    ks = jax.random.split(key, 12)
    s = 0.1
    p = {
        "w1": s * jax.random.normal(ks[0], (node_size_rec, input_size), jnp.float32),
        "b1": s * jax.random.normal(ks[1], (node_size_rec,), jnp.float32),
        "w_ih": s * jax.random.normal(ks[2], (4 * node_size, node_size_rec), jnp.float32),
        "b_ih": s * jax.random.normal(ks[3], (4 * node_size,), jnp.float32),
        "w_hh": s * jax.random.normal(ks[4], (4 * node_size, node_size), jnp.float32),
        "b_hh": s * jax.random.normal(ks[5], (4 * node_size,), jnp.float32),
        "w2": s * jax.random.normal(ks[6], (node_size, node_size), jnp.float32),
        "b2": s * jax.random.normal(ks[7], (node_size,), jnp.float32),
        "w3": s * jax.random.normal(ks[8], (no_actions, node_size), jnp.float32),
        "b3": s * jax.random.normal(ks[9], (no_actions,), jnp.float32),
    }
    h0 = jax.random.normal(ks[10], (1, node_size), jnp.float32)
    c0 = jax.random.normal(ks[11], (1, node_size), jnp.float32)
    return p, (h0, c0)


def reference_forward(x, params, hidden):
    """Pure-JAX f32 reference mirroring PyTorch semantics (unfused, unpadded)."""
    h0, c0 = hidden
    H = h0.shape[1]
    a = jnp.maximum(x @ params["w1"].T + params["b1"], 0.0)
    gates = a @ params["w_ih"].T + params["b_ih"] + h0 @ params["w_hh"].T + params["b_hh"]
    i_g = jax.nn.sigmoid(gates[:, 0 * H:1 * H])
    f_g = jax.nn.sigmoid(gates[:, 1 * H:2 * H])
    g_g = jnp.tanh(gates[:, 2 * H:3 * H])
    o_g = jax.nn.sigmoid(gates[:, 3 * H:4 * H])
    c_new = f_g * c0 + i_g * g_g
    h_new = o_g * jnp.tanh(c_new)
    z = h_new @ params["w2"].T + params["b2"]
    y = z @ params["w3"].T + params["b3"]
    return y.reshape(1, 1, -1), (h_new, c_new)


if __name__ == "__main__":
    input_size, node_size_rec, node_size, no_actions = 32, 32, 32, 8
    T1, T2 = 16, 8

    key = jax.random.PRNGKey(0)
    k_param, k_x1, k_x2 = jax.random.split(key, 3)
    params, hidden = init_params(k_param, input_size, node_size_rec, node_size, no_actions)

    # One-time packing (outside the hot path).
    packed = pack_params(params, input_size, node_size_rec, node_size, no_actions)
    hc_p = pad_hidden(hidden, node_size)

    xs1 = jax.random.normal(k_x1, (T1, input_size), jnp.float32)
    xs2 = jax.random.normal(k_x2, (T2, input_size), jnp.float32)

    # Sequence 1 (16 fused steps), then sequence 2 (8 steps) continuing from the
    # returned padded hidden state (like self.hidden_running).
    ys1_p, hc_p = rcombinet_forward_seq(xs1, packed, hc_p)
    ys2_p, hc_p = rcombinet_forward_seq(xs2, packed, hc_p)
    jax.block_until_ready((ys1_p, ys2_p, hc_p))

    ys1 = ys1_p[:, :no_actions]
    ys2 = ys2_p[:, :no_actions]
    h_new = hc_p[0:1, :node_size]
    c_new = hc_p[1:2, :node_size]

    # Reference: step-by-step f32 forward() calls.
    hid = hidden
    ref1 = []
    for t in range(T1):
        y, hid = reference_forward(xs1[t:t + 1], params, hid)
        ref1.append(y.reshape(-1))
    ref1 = jnp.stack(ref1)
    ref2 = []
    for t in range(T2):
        y, hid = reference_forward(xs2[t:t + 1], params, hid)
        ref2.append(y.reshape(-1))
    ref2 = jnp.stack(ref2)
    h_ref, c_ref = hid

    # bf16 weights (f32 accumulate) -> relaxed tolerance vs the f32 reference.
    assert ys1.shape == (T1, no_actions)
    assert jnp.allclose(ys1, ref1, atol=2e-2), "sequence-1 outputs mismatch vs reference"
    assert jnp.allclose(ys2, ref2, atol=2e-2), "sequence-2 outputs mismatch vs reference"
    assert jnp.allclose(h_new, h_ref, atol=2e-2), "hidden state mismatch vs reference"
    assert jnp.allclose(c_new, c_ref, atol=2e-2), "cell state mismatch vs reference"
    # Padded lanes of the recurrent state must stay exactly zero.
    assert jnp.all(hc_p[:, node_size:] == 0.0)

    print("KERNEL_OK")
</pallas_src>

<mosaic_0001>
module attributes {stable_mosaic.version = 11 : i64} {
  func.func @rcombinet_kernel(%arg0: i32, %arg1: memref<8x128xf32, #tpu.memory_space<vmem>>, %arg2: memref<128x128xbf16, #tpu.memory_space<vmem>>, %arg3: memref<1x128xf32, #tpu.memory_space<vmem>>, %arg4: memref<256x512xbf16, #tpu.memory_space<vmem>>, %arg5: memref<1x512xf32, #tpu.memory_space<vmem>>, %arg6: memref<128x128xbf16, #tpu.memory_space<vmem>>, %arg7: memref<1x128xf32, #tpu.memory_space<vmem>>, %arg8: memref<2x128xf32, #tpu.memory_space<vmem>>, %arg9: memref<8x128xf32, #tpu.memory_space<vmem>>, %arg10: memref<2x128xf32, #tpu.memory_space<vmem>>, %arg11: memref<2x128xf32, #tpu.memory_space<vmem>>, %arg12: memref<1x256xbf16, #tpu.memory_space<vmem>>) attributes {dimension_semantics = [#tpu.dimension_semantics<arbitrary>], iteration_bounds = array<i64: 2>, scalar_prefetch = 0 : i64, scratch_operands = 2 : i64, tpu.core_type = #tpu.core_type<tc>, window_params = [{transform_indices = @transform_0, window_bounds = array<i64: 8, 128>}, {pipeline_mode = #tpu.pipeline_mode<synchronous>, transform_indices = @transform_1, window_bounds = array<i64: 128, 128>}, {pipeline_mode = #tpu.pipeline_mode<synchronous>, transform_indices = @transform_2, window_bounds = array<i64: 1, 128>}, {pipeline_mode = #tpu.pipeline_mode<synchronous>, transform_indices = @transform_3, window_bounds = array<i64: 256, 512>}, {pipeline_mode = #tpu.pipeline_mode<synchronous>, transform_indices = @transform_4, window_bounds = array<i64: 1, 512>}, {pipeline_mode = #tpu.pipeline_mode<synchronous>, transform_indices = @transform_5, window_bounds = array<i64: 128, 128>}, {pipeline_mode = #tpu.pipeline_mode<synchronous>, transform_indices = @transform_6, window_bounds = array<i64: 1, 128>}, {pipeline_mode = #tpu.pipeline_mode<synchronous>, transform_indices = @transform_7, window_bounds = array<i64: 2, 128>}, {transform_indices = @transform_8, window_bounds = array<i64: 8, 128>}, {pipeline_mode = #tpu.pipeline_mode<synchronous>, transform_indices = @transform_9, window_bounds = array<i64: 2, 128>}]} {
    %c0_i32 = arith.constant 0 : i32
    %0 = arith.cmpi eq, %arg0, %c0_i32 : i32
    %1 = arith.extui %0 : i1 to i32
    %c0_i32_0 = arith.constant 0 : i32
    %2 = arith.cmpi ne, %1, %c0_i32_0 : i32
    scf.if %2 {
      %c0_272 = arith.constant 0 : index
      %c0_273 = arith.constant 0 : index
      %414 = vector.load %arg8[%c0_272, %c0_273] : memref<2x128xf32, #tpu.memory_space<vmem>>, vector<2x128xf32>
      %c0_274 = arith.constant 0 : index
      %c0_275 = arith.constant 0 : index
      %415 = vector.load %arg11[%c0_274, %c0_275] : memref<2x128xf32, #tpu.memory_space<vmem>>, vector<2x128xf32>
      tpu.vector_store %arg11[%c0_274, %c0_275], %414 {strides = array<i32>} : memref<2x128xf32, #tpu.memory_space<vmem>>, vector<2x128xf32>,
      %c0_276 = arith.constant 0 : index
      %c0_277 = arith.constant 0 : index
      %416 = vector.load %arg8[%c0_276, %c0_277] : memref<2x128xf32, #tpu.memory_space<vmem>>, vector<1x128xf32>
      %417 = arith.truncf %416 : vector<1x128xf32> to vector<1x128xbf16>
      %c0_278 = arith.constant 0 : index
      %c128_279 = arith.constant 128 : index
      %418 = vector.load %arg12[%c0_278, %c128_279] : memref<1x256xbf16, #tpu.memory_space<vmem>>, vector<1x128xbf16>
      tpu.vector_store %arg12[%c0_278, %c128_279], %417 {strides = array<i32>} : memref<1x256xbf16, #tpu.memory_space<vmem>>, vector<1x128xbf16>,
    } else {
    }
    %c0 = arith.constant 0 : index
    %c0_1 = arith.constant 0 : index
    %3 = vector.load %arg1[%c0, %c0_1] : memref<8x128xf32, #tpu.memory_space<vmem>>, vector<1x128xf32>
    %4 = arith.truncf %3 : vector<1x128xf32> to vector<1x128xbf16>
    %c0_2 = arith.constant 0 : index
    %c0_3 = arith.constant 0 : index
    %5 = vector.load %arg2[%c0_2, %c0_3] : memref<128x128xbf16, #tpu.memory_space<vmem>>, vector<128x128xbf16>
    %cst = arith.constant dense<0.000000e+00> : vector<1x128xf32>
    %6 = tpu.matmul %4, %5, %cst {dimension_numbers = #tpu.dot_dimension_numbers<[1], [0], [0], [1], [0, 0, 1, 1], [], []>} : vector<1x128xbf16>, vector<128x128xbf16>, vector<1x128xf32> -> vector<1x128xf32>
    %c0_4 = arith.constant 0 : index
    %c0_5 = arith.constant 0 : index
    %7 = vector.load %arg3[%c0_4, %c0_5] : memref<1x128xf32, #tpu.memory_space<vmem>>, vector<1x128xf32>
    %8 = arith.addf %6, %7 : vector<1x128xf32>
    %cst_6 = arith.constant 0.000000e+00 : f32
    %9 = vector.broadcast %cst_6 : f32 to vector<1x128xf32>
    %10 = arith.maximumf %8, %9 : vector<1x128xf32>
    %11 = arith.truncf %10 : vector<1x128xf32> to vector<1x128xbf16>
    %c0_7 = arith.constant 0 : index
    %c0_8 = arith.constant 0 : index
    %12 = vector.load %arg12[%c0_7, %c0_8] : memref<1x256xbf16, #tpu.memory_space<vmem>>, vector<1x128xbf16>
    tpu.vector_store %arg12[%c0_7, %c0_8], %11 {strides = array<i32>} : memref<1x256xbf16, #tpu.memory_space<vmem>>, vector<1x128xbf16>,
    %c0_9 = arith.constant 0 : index
    %c0_10 = arith.constant 0 : index
    %13 = vector.load %arg12[%c0_9, %c0_10] : memref<1x256xbf16, #tpu.memory_space<vmem>>, vector<1x256xbf16>
    %c0_11 = arith.constant 0 : index
    %c0_12 = arith.constant 0 : index
    %14 = vector.load %arg4[%c0_11, %c0_12] : memref<256x512xbf16, #tpu.memory_space<vmem>>, vector<256x512xbf16>
    %cst_13 = arith.constant dense<0.000000e+00> : vector<1x512xf32>
    %15 = tpu.matmul %13, %14, %cst_13 {dimension_numbers = #tpu.dot_dimension_numbers<[1], [0], [0], [1], [0, 0, 1, 1], [], []>} : vector<1x256xbf16>, vector<256x512xbf16>, vector<1x512xf32> -> vector<1x512xf32>
    %c0_14 = arith.constant 0 : index
    %c0_15 = arith.constant 0 : index
    %16 = vector.load %arg5[%c0_14, %c0_15] : memref<1x512xf32, #tpu.memory_space<vmem>>, vector<1x512xf32>
    %17 = arith.addf %15, %16 : vector<1x512xf32>
    %18 = vector.extract_strided_slice %17 {offsets = [0, 0], sizes = [1, 128], strides = [1, 1]} : vector<1x512xf32> to vector<1x128xf32>
    %19 = arith.negf %18 : vector<1x128xf32>
    %20 = math.exp %19 : vector<1x128xf32>
    %cst_16 = arith.constant 1.000000e+00 : f32
    %21 = vector.broadcast %cst_16 : f32 to vector<1x128xf32>
    %22 = arith.addf %21, %20 : vector<1x128xf32>
    %23 = arith.divf %21, %22 : vector<1x128xf32>
    %24 = vector.extract_strided_slice %17 {offsets = [0, 128], sizes = [1, 128], strides = [1, 1]} : vector<1x512xf32> to vector<1x128xf32>
    %25 = arith.negf %24 : vector<1x128xf32>
    %26 = math.exp %25 : vector<1x128xf32>
    %cst_17 = arith.constant 1.000000e+00 : f32
    %27 = vector.broadcast %cst_17 : f32 to vector<1x128xf32>
    %28 = arith.addf %27, %26 : vector<1x128xf32>
    %29 = arith.divf %27, %28 : vector<1x128xf32>
    %30 = vector.extract_strided_slice %17 {offsets = [0, 256], sizes = [1, 128], strides = [1, 1]} : vector<1x512xf32> to vector<1x128xf32>
    %31 = math.tanh %30 : vector<1x128xf32>
    %32 = vector.extract_strided_slice %17 {offsets = [0, 384], sizes = [1, 128], strides = [1, 1]} : vector<1x512xf32> to vector<1x128xf32>
    %33 = arith.negf %32 : vector<1x128xf32>
    %34 = math.exp %33 : vector<1x128xf32>
    %cst_18 = arith.constant 1.000000e+00 : f32
    %35 = vector.broadcast %cst_18 : f32 to vector<1x128xf32>
    %36 = arith.addf %35, %34 : vector<1x128xf32>
    %37 = arith.divf %35, %36 : vector<1x128xf32>
    %c1 = arith.constant 1 : index
    %c0_19 = arith.constant 0 : index
    %38 = vector.load %arg11[%c1, %c0_19] : memref<2x128xf32, #tpu.memory_space<vmem>>, vector<1x128xf32>
    %39 = arith.mulf %29, %38 : vector<1x128xf32>
    %40 = arith.mulf %23, %31 : vector<1x128xf32>
    %41 = arith.addf %39, %40 : vector<1x128xf32>
    %42 = math.tanh %41 : vector<1x128xf32>
    %43 = arith.mulf %37, %42 : vector<1x128xf32>
    %c0_20 = arith.constant 0 : index
    %c0_21 = arith.constant 0 : index
    %44 = vector.load %arg11[%c0_20, %c0_21] : memref<2x128xf32, #tpu.memory_space<vmem>>, vector<1x128xf32>
    tpu.vector_store %arg11[%c0_20, %c0_21], %43 {strides = array<i32>} : memref<2x128xf32, #tpu.memory_space<vmem>>, vector<1x128xf32>,
    %c1_22 = arith.constant 1 : index
    %c0_23 = arith.constant 0 : index
    %45 = vector.load %arg11[%c1_22, %c0_23] : memref<2x128xf32, #tpu.memory_space<vmem>>, vector<1x128xf32>
    tpu.vector_store %arg11[%c1_22, %c0_23], %41 {strides = array<i32>} : memref<2x128xf32, #tpu.memory_space<vmem>>, vector<1x128xf32>,
    %46 = arith.truncf %43 : vector<1x128xf32> to vector<1x128xbf16>
    %c0_24 = arith.constant 0 : index
    %c128 = arith.constant 128 : index
    %47 = vector.load %arg12[%c0_24, %c128] : memref<1x256xbf16, #tpu.memory_space<vmem>>, vector<1x128xbf16>
    tpu.vector_store %arg12[%c0_24, %c128], %46 {strides = array<i32>} : memref<1x256xbf16, #tpu.memory_space<vmem>>, vector<1x128xbf16>,
    %48 = arith.truncf %43 : vector<1x128xf32> to vector<1x128xbf16>
    %c0_25 = arith.constant 0 : index
    %c0_26 = arith.constant 0 : index
    %49 = vector.load %arg6[%c0_25, %c0_26] : memref<128x128xbf16, #tpu.memory_space<vmem>>, vector<128x128xbf16>
    %cst_27 = arith.constant dense<0.000000e+00> : vector<1x128xf32>
    %50 = tpu.matmul %48, %49, %cst_27 {dimension_numbers = #tpu.dot_dimension_numbers<[1], [0], [0], [1], [0, 0, 1, 1], [], []>} : vector<1x128xbf16>, vector<128x128xbf16>, vector<1x128xf32> -> vector<1x128xf32>
    %c0_28 = arith.constant 0 : index
    %c0_29 = arith.constant 0 : index
    %51 = vector.load %arg7[%c0_28, %c0_29] : memref<1x128xf32, #tpu.memory_space<vmem>>, vector<1x128xf32>
    %52 = arith.addf %50, %51 : vector<1x128xf32>
    %c0_30 = arith.constant 0 : index
    %c0_31 = arith.constant 0 : index
    %53 = vector.load %arg9[%c0_30, %c0_31] : memref<8x128xf32, #tpu.memory_space<vmem>>, vector<1x128xf32>
    tpu.vector_store %arg9[%c0_30, %c0_31], %52 {strides = array<i32>} : memref<8x128xf32, #tpu.memory_space<vmem>>, vector<1x128xf32>,
    %c1_32 = arith.constant 1 : index
    %c0_33 = arith.constant 0 : index
    %54 = vector.load %arg1[%c1_32, %c0_33] : memref<8x128xf32, #tpu.memory_space<vmem>>, vector<1x128xf32>
    %55 = arith.truncf %54 : vector<1x128xf32> to vector<1x128xbf16>
    %c0_34 = arith.constant 0 : index
    %c0_35 = arith.constant 0 : index
    %56 = vector.load %arg2[%c0_34, %c0_35] : memref<128x128xbf16, #tpu.memory_space<vmem>>, vector<128x128xbf16>
    %cst_36 = arith.constant dense<0.000000e+00> : vector<1x128xf32>
    %57 = tpu.matmul %55, %56, %cst_36 {dimension_numbers = #tpu.dot_dimension_numbers<[1], [0], [0], [1], [0, 0, 1, 1], [], []>} : vector<1x128xbf16>, vector<128x128xbf16>, vector<1x128xf32> -> vector<1x128xf32>
    %c0_37 = arith.constant 0 : index
    %c0_38 = arith.constant 0 : index
    %58 = vector.load %arg3[%c0_37, %c0_38] : memref<1x128xf32, #tpu.memory_space<vmem>>, vector<1x128xf32>
    %59 = arith.addf %57, %58 : vector<1x128xf32>
    %cst_39 = arith.constant 0.000000e+00 : f32
    %60 = vector.broadcast %cst_39 : f32 to vector<1x128xf32>
    %61 = arith.maximumf %59, %60 : vector<1x128xf32>
    %62 = arith.truncf %61 : vector<1x128xf32> to vector<1x128xbf16>
    %c0_40 = arith.constant 0 : index
    %c0_41 = arith.constant 0 : index
    %63 = vector.load %arg12[%c0_40, %c0_41] : memref<1x256xbf16, #tpu.memory_space<vmem>>, vector<1x128xbf16>
    tpu.vector_store %arg12[%c0_40, %c0_41], %62 {strides = array<i32>} : memref<1x256xbf16, #tpu.memory_space<vmem>>, vector<1x128xbf16>,
    %c0_42 = arith.constant 0 : index
    %c0_43 = arith.constant 0 : index
    %64 = vector.load %arg12[%c0_42, %c0_43] : memref<1x256xbf16, #tpu.memory_space<vmem>>, vector<1x256xbf16>
    %c0_44 = arith.constant 0 : index
    %c0_45 = arith.constant 0 : index
    %65 = vector.load %arg4[%c0_44, %c0_45] : memref<256x512xbf16, #tpu.memory_space<vmem>>, vector<256x512xbf16>
    %cst_46 = arith.constant dense<0.000000e+00> : vector<1x512xf32>
    %66 = tpu.matmul %64, %65, %cst_46 {dimension_numbers = #tpu.dot_dimension_numbers<[1], [0], [0], [1], [0, 0, 1, 1], [], []>} : vector<1x256xbf16>, vector<256x512xbf16>, vector<1x512xf32> -> vector<1x512xf32>
    %c0_47 = arith.constant 0 : index
    %c0_48 = arith.constant 0 : index
    %67 = vector.load %arg5[%c0_47, %c0_48] : memref<1x512xf32, #tpu.memory_space<vmem>>, vector<1x512xf32>
    %68 = arith.addf %66, %67 : vector<1x512xf32>
    %69 = vector.extract_strided_slice %68 {offsets = [0, 0], sizes = [1, 128], strides = [1, 1]} : vector<1x512xf32> to vector<1x128xf32>
    %70 = arith.negf %69 : vector<1x128xf32>
    %71 = math.exp %70 : vector<1x128xf32>
    %cst_49 = arith.constant 1.000000e+00 : f32
    %72 = vector.broadcast %cst_49 : f32 to vector<1x128xf32>
    %73 = arith.addf %72, %71 : vector<1x128xf32>
    %74 = arith.divf %72, %73 : vector<1x128xf32>
    %75 = vector.extract_strided_slice %68 {offsets = [0, 128], sizes = [1, 128], strides = [1, 1]} : vector<1x512xf32> to vector<1x128xf32>
    %76 = arith.negf %75 : vector<1x128xf32>
    %77 = math.exp %76 : vector<1x128xf32>
    %cst_50 = arith.constant 1.000000e+00 : f32
    %78 = vector.broadcast %cst_50 : f32 to vector<1x128xf32>
    %79 = arith.addf %78, %77 : vector<1x128xf32>
    %80 = arith.divf %78, %79 : vector<1x128xf32>
    %81 = vector.extract_strided_slice %68 {offsets = [0, 256], sizes = [1, 128], strides = [1, 1]} : vector<1x512xf32> to vector<1x128xf32>
    %82 = math.tanh %81 : vector<1x128xf32>
    %83 = vector.extract_strided_slice %68 {offsets = [0, 384], sizes = [1, 128], strides = [1, 1]} : vector<1x512xf32> to vector<1x128xf32>
    %84 = arith.negf %83 : vector<1x128xf32>
    %85 = math.exp %84 : vector<1x128xf32>
    %cst_51 = arith.constant 1.000000e+00 : f32
    %86 = vector.broadcast %cst_51 : f32 to vector<1x128xf32>
    %87 = arith.addf %86, %85 : vector<1x128xf32>
    %88 = arith.divf %86, %87 : vector<1x128xf32>
    %c1_52 = arith.constant 1 : index
    %c0_53 = arith.constant 0 : index
    %89 = vector.load %arg11[%c1_52, %c0_53] : memref<2x128xf32, #tpu.memory_space<vmem>>, vector<1x128xf32>
    %90 = arith.mulf %80, %89 : vector<1x128xf32>
    %91 = arith.mulf %74, %82 : vector<1x128xf32>
    %92 = arith.addf %90, %91 : vector<1x128xf32>
    %93 = math.tanh %92 : vector<1x128xf32>
    %94 = arith.mulf %88, %93 : vector<1x128xf32>
    %c0_54 = arith.constant 0 : index
    %c0_55 = arith.constant 0 : index
    %95 = vector.load %arg11[%c0_54, %c0_55] : memref<2x128xf32, #tpu.memory_space<vmem>>, vector<1x128xf32>
    tpu.vector_store %arg11[%c0_54, %c0_55], %94 {strides = array<i32>} : memref<2x128xf32, #tpu.memory_space<vmem>>, vector<1x128xf32>,
    %c1_56 = arith.constant 1 : index
    %c0_57 = arith.constant 0 : index
    %96 = vector.load %arg11[%c1_56, %c0_57] : memref<2x128xf32, #tpu.memory_space<vmem>>, vector<1x128xf32>
    tpu.vector_store %arg11[%c1_56, %c0_57], %92 {strides = array<i32>} : memref<2x128xf32, #tpu.memory_space<vmem>>, vector<1x128xf32>,
    %97 = arith.truncf %94 : vector<1x128xf32> to vector<1x128xbf16>
    %c0_58 = arith.constant 0 : index
    %c128_59 = arith.constant 128 : index
    %98 = vector.load %arg12[%c0_58, %c128_59] : memref<1x256xbf16, #tpu.memory_space<vmem>>, vector<1x128xbf16>
    tpu.vector_store %arg12[%c0_58, %c128_59], %97 {strides = array<i32>} : memref<1x256xbf16, #tpu.memory_space<vmem>>, vector<1x128xbf16>,
    %99 = arith.truncf %94 : vector<1x128xf32> to vector<1x128xbf16>
    %c0_60 = arith.constant 0 : index
    %c0_61 = arith.constant 0 : index
    %100 = vector.load %arg6[%c0_60, %c0_61] : memref<128x128xbf16, #tpu.memory_space<vmem>>, vector<128x128xbf16>
    %cst_62 = arith.constant dense<0.000000e+00> : vector<1x128xf32>
    %101 = tpu.matmul %99, %100, %cst_62 {dimension_numbers = #tpu.dot_dimension_numbers<[1], [0], [0], [1], [0, 0, 1, 1], [], []>} : vector<1x128xbf16>, vector<128x128xbf16>, vector<1x128xf32> -> vector<1x128xf32>
    %c0_63 = arith.constant 0 : index
    %c0_64 = arith.constant 0 : index
    %102 = vector.load %arg7[%c0_63, %c0_64] : memref<1x128xf32, #tpu.memory_space<vmem>>, vector<1x128xf32>
    %103 = arith.addf %101, %102 : vector<1x128xf32>
    %c1_65 = arith.constant 1 : index
    %c0_66 = arith.constant 0 : index
    %104 = vector.load %arg9[%c1_65, %c0_66] : memref<8x128xf32, #tpu.memory_space<vmem>>, vector<1x128xf32>
    tpu.vector_store %arg9[%c1_65, %c0_66], %103 {strides = array<i32>} : memref<8x128xf32, #tpu.memory_space<vmem>>, vector<1x128xf32>,
    %c2 = arith.constant 2 : index
    %c0_67 = arith.constant 0 : index
    %105 = vector.load %arg1[%c2, %c0_67] : memref<8x128xf32, #tpu.memory_space<vmem>>, vector<1x128xf32>
    %106 = arith.truncf %105 : vector<1x128xf32> to vector<1x128xbf16>
    %c0_68 = arith.constant 0 : index
    %c0_69 = arith.constant 0 : index
    %107 = vector.load %arg2[%c0_68, %c0_69] : memref<128x128xbf16, #tpu.memory_space<vmem>>, vector<128x128xbf16>
    %cst_70 = arith.constant dense<0.000000e+00> : vector<1x128xf32>
    %108 = tpu.matmul %106, %107, %cst_70 {dimension_numbers = #tpu.dot_dimension_numbers<[1], [0], [0], [1], [0, 0, 1, 1], [], []>} : vector<1x128xbf16>, vector<128x128xbf16>, vector<1x128xf32> -> vector<1x128xf32>
    %c0_71 = arith.constant 0 : index
    %c0_72 = arith.constant 0 : index
    %109 = vector.load %arg3[%c0_71, %c0_72] : memref<1x128xf32, #tpu.memory_space<vmem>>, vector<1x128xf32>
    %110 = arith.addf %108, %109 : vector<1x128xf32>
    %cst_73 = arith.constant 0.000000e+00 : f32
    %111 = vector.broadcast %cst_73 : f32 to vector<1x128xf32>
    %112 = arith.maximumf %110, %111 : vector<1x128xf32>
    %113 = arith.truncf %112 : vector<1x128xf32> to vector<1x128xbf16>
    %c0_74 = arith.constant 0 : index
    %c0_75 = arith.constant 0 : index
    %114 = vector.load %arg12[%c0_74, %c0_75] : memref<1x256xbf16, #tpu.memory_space<vmem>>, vector<1x128xbf16>
    tpu.vector_store %arg12[%c0_74, %c0_75], %113 {strides = array<i32>} : memref<1x256xbf16, #tpu.memory_space<vmem>>, vector<1x128xbf16>,
    %c0_76 = arith.constant 0 : index
    %c0_77 = arith.constant 0 : index
    %115 = vector.load %arg12[%c0_76, %c0_77] : memref<1x256xbf16, #tpu.memory_space<vmem>>, vector<1x256xbf16>
    %c0_78 = arith.constant 0 : index
    %c0_79 = arith.constant 0 : index
    %116 = vector.load %arg4[%c0_78, %c0_79] : memref<256x512xbf16, #tpu.memory_space<vmem>>, vector<256x512xbf16>
    %cst_80 = arith.constant dense<0.000000e+00> : vector<1x512xf32>
    %117 = tpu.matmul %115, %116, %cst_80 {dimension_numbers = #tpu.dot_dimension_numbers<[1], [0], [0], [1], [0, 0, 1, 1], [], []>} : vector<1x256xbf16>, vector<256x512xbf16>, vector<1x512xf32> -> vector<1x512xf32>
    %c0_81 = arith.constant 0 : index
    %c0_82 = arith.constant 0 : index
    %118 = vector.load %arg5[%c0_81, %c0_82] : memref<1x512xf32, #tpu.memory_space<vmem>>, vector<1x512xf32>
    %119 = arith.addf %117, %118 : vector<1x512xf32>
    %120 = vector.extract_strided_slice %119 {offsets = [0, 0], sizes = [1, 128], strides = [1, 1]} : vector<1x512xf32> to vector<1x128xf32>
    %121 = arith.negf %120 : vector<1x128xf32>
    %122 = math.exp %121 : vector<1x128xf32>
    %cst_83 = arith.constant 1.000000e+00 : f32
    %123 = vector.broadcast %cst_83 : f32 to vector<1x128xf32>
    %124 = arith.addf %123, %122 : vector<1x128xf32>
    %125 = arith.divf %123, %124 : vector<1x128xf32>
    %126 = vector.extract_strided_slice %119 {offsets = [0, 128], sizes = [1, 128], strides = [1, 1]} : vector<1x512xf32> to vector<1x128xf32>
    %127 = arith.negf %126 : vector<1x128xf32>
    %128 = math.exp %127 : vector<1x128xf32>
    %cst_84 = arith.constant 1.000000e+00 : f32
    %129 = vector.broadcast %cst_84 : f32 to vector<1x128xf32>
    %130 = arith.addf %129, %128 : vector<1x128xf32>
    %131 = arith.divf %129, %130 : vector<1x128xf32>
    %132 = vector.extract_strided_slice %119 {offsets = [0, 256], sizes = [1, 128], strides = [1, 1]} : vector<1x512xf32> to vector<1x128xf32>
    %133 = math.tanh %132 : vector<1x128xf32>
    %134 = vector.extract_strided_slice %119 {offsets = [0, 384], sizes = [1, 128], strides = [1, 1]} : vector<1x512xf32> to vector<1x128xf32>
    %135 = arith.negf %134 : vector<1x128xf32>
    %136 = math.exp %135 : vector<1x128xf32>
    %cst_85 = arith.constant 1.000000e+00 : f32
    %137 = vector.broadcast %cst_85 : f32 to vector<1x128xf32>
    %138 = arith.addf %137, %136 : vector<1x128xf32>
    %139 = arith.divf %137, %138 : vector<1x128xf32>
    %c1_86 = arith.constant 1 : index
    %c0_87 = arith.constant 0 : index
    %140 = vector.load %arg11[%c1_86, %c0_87] : memref<2x128xf32, #tpu.memory_space<vmem>>, vector<1x128xf32>
    %141 = arith.mulf %131, %140 : vector<1x128xf32>
    %142 = arith.mulf %125, %133 : vector<1x128xf32>
    %143 = arith.addf %141, %142 : vector<1x128xf32>
    %144 = math.tanh %143 : vector<1x128xf32>
    %145 = arith.mulf %139, %144 : vector<1x128xf32>
    %c0_88 = arith.constant 0 : index
    %c0_89 = arith.constant 0 : index
    %146 = vector.load %arg11[%c0_88, %c0_89] : memref<2x128xf32, #tpu.memory_space<vmem>>, vector<1x128xf32>
    tpu.vector_store %arg11[%c0_88, %c0_89], %145 {strides = array<i32>} : memref<2x128xf32, #tpu.memory_space<vmem>>, vector<1x128xf32>,
    %c1_90 = arith.constant 1 : index
    %c0_91 = arith.constant 0 : index
    %147 = vector.load %arg11[%c1_90, %c0_91] : memref<2x128xf32, #tpu.memory_space<vmem>>, vector<1x128xf32>
    tpu.vector_store %arg11[%c1_90, %c0_91], %143 {strides = array<i32>} : memref<2x128xf32, #tpu.memory_space<vmem>>, vector<1x128xf32>,
    %148 = arith.truncf %145 : vector<1x128xf32> to vector<1x128xbf16>
    %c0_92 = arith.constant 0 : index
    %c128_93 = arith.constant 128 : index
    %149 = vector.load %arg12[%c0_92, %c128_93] : memref<1x256xbf16, #tpu.memory_space<vmem>>, vector<1x128xbf16>
    tpu.vector_store %arg12[%c0_92, %c128_93], %148 {strides = array<i32>} : memref<1x256xbf16, #tpu.memory_space<vmem>>, vector<1x128xbf16>,
    %150 = arith.truncf %145 : vector<1x128xf32> to vector<1x128xbf16>
    %c0_94 = arith.constant 0 : index
    %c0_95 = arith.constant 0 : index
    %151 = vector.load %arg6[%c0_94, %c0_95] : memref<128x128xbf16, #tpu.memory_space<vmem>>, vector<128x128xbf16>
    %cst_96 = arith.constant dense<0.000000e+00> : vector<1x128xf32>
    %152 = tpu.matmul %150, %151, %cst_96 {dimension_numbers = #tpu.dot_dimension_numbers<[1], [0], [0], [1], [0, 0, 1, 1], [], []>} : vector<1x128xbf16>, vector<128x128xbf16>, vector<1x128xf32> -> vector<1x128xf32>
    %c0_97 = arith.constant 0 : index
    %c0_98 = arith.constant 0 : index
    %153 = vector.load %arg7[%c0_97, %c0_98] : memref<1x128xf32, #tpu.memory_space<vmem>>, vector<1x128xf32>
    %154 = arith.addf %152, %153 : vector<1x128xf32>
    %c2_99 = arith.constant 2 : index
    %c0_100 = arith.constant 0 : index
    %155 = vector.load %arg9[%c2_99, %c0_100] : memref<8x128xf32, #tpu.memory_space<vmem>>, vector<1x128xf32>
    tpu.vector_store %arg9[%c2_99, %c0_100], %154 {strides = array<i32>} : memref<8x128xf32, #tpu.memory_space<vmem>>, vector<1x128xf32>,
    %c3 = arith.constant 3 : index
    %c0_101 = arith.constant 0 : index
    %156 = vector.load %arg1[%c3, %c0_101] : memref<8x128xf32, #tpu.memory_space<vmem>>, vector<1x128xf32>
    %157 = arith.truncf %156 : vector<1x128xf32> to vector<1x128xbf16>
    %c0_102 = arith.constant 0 : index
    %c0_103 = arith.constant 0 : index
    %158 = vector.load %arg2[%c0_102, %c0_103] : memref<128x128xbf16, #tpu.memory_space<vmem>>, vector<128x128xbf16>
    %cst_104 = arith.constant dense<0.000000e+00> : vector<1x128xf32>
    %159 = tpu.matmul %157, %158, %cst_104 {dimension_numbers = #tpu.dot_dimension_numbers<[1], [0], [0], [1], [0, 0, 1, 1], [], []>} : vector<1x128xbf16>, vector<128x128xbf16>, vector<1x128xf32> -> vector<1x128xf32>
    %c0_105 = arith.constant 0 : index
    %c0_106 = arith.constant 0 : index
    %160 = vector.load %arg3[%c0_105, %c0_106] : memref<1x128xf32, #tpu.memory_space<vmem>>, vector<1x128xf32>
    %161 = arith.addf %159, %160 : vector<1x128xf32>
    %cst_107 = arith.constant 0.000000e+00 : f32
    %162 = vector.broadcast %cst_107 : f32 to vector<1x128xf32>
    %163 = arith.maximumf %161, %162 : vector<1x128xf32>
    %164 = arith.truncf %163 : vector<1x128xf32> to vector<1x128xbf16>
    %c0_108 = arith.constant 0 : index
    %c0_109 = arith.constant 0 : index
    %165 = vector.load %arg12[%c0_108, %c0_109] : memref<1x256xbf16, #tpu.memory_space<vmem>>, vector<1x128xbf16>
    tpu.vector_store %arg12[%c0_108, %c0_109], %164 {strides = array<i32>} : memref<1x256xbf16, #tpu.memory_space<vmem>>, vector<1x128xbf16>,
    %c0_110 = arith.constant 0 : index
    %c0_111 = arith.constant 0 : index
    %166 = vector.load %arg12[%c0_110, %c0_111] : memref<1x256xbf16, #tpu.memory_space<vmem>>, vector<1x256xbf16>
    %c0_112 = arith.constant 0 : index
    %c0_113 = arith.constant 0 : index
    %167 = vector.load %arg4[%c0_112, %c0_113] : memref<256x512xbf16, #tpu.memory_space<vmem>>, vector<256x512xbf16>
    %cst_114 = arith.constant dense<0.000000e+00> : vector<1x512xf32>
    %168 = tpu.matmul %166, %167, %cst_114 {dimension_numbers = #tpu.dot_dimension_numbers<[1], [0], [0], [1], [0, 0, 1, 1], [], []>} : vector<1x256xbf16>, vector<256x512xbf16>, vector<1x512xf32> -> vector<1x512xf32>
    %c0_115 = arith.constant 0 : index
    %c0_116 = arith.constant 0 : index
    %169 = vector.load %arg5[%c0_115, %c0_116] : memref<1x512xf32, #tpu.memory_space<vmem>>, vector<1x512xf32>
    %170 = arith.addf %168, %169 : vector<1x512xf32>
    %171 = vector.extract_strided_slice %170 {offsets = [0, 0], sizes = [1, 128], strides = [1, 1]} : vector<1x512xf32> to vector<1x128xf32>
    %172 = arith.negf %171 : vector<1x128xf32>
    %173 = math.exp %172 : vector<1x128xf32>
    %cst_117 = arith.constant 1.000000e+00 : f32
    %174 = vector.broadcast %cst_117 : f32 to vector<1x128xf32>
    %175 = arith.addf %174, %173 : vector<1x128xf32>
    %176 = arith.divf %174, %175 : vector<1x128xf32>
    %177 = vector.extract_strided_slice %170 {offsets = [0, 128], sizes = [1, 128], strides = [1, 1]} : vector<1x512xf32> to vector<1x128xf32>
    %178 = arith.negf %177 : vector<1x128xf32>
    %179 = math.exp %178 : vector<1x128xf32>
    %cst_118 = arith.constant 1.000000e+00 : f32
    %180 = vector.broadcast %cst_118 : f32 to vector<1x128xf32>
    %181 = arith.addf %180, %179 : vector<1x128xf32>
    %182 = arith.divf %180, %181 : vector<1x128xf32>
    %183 = vector.extract_strided_slice %170 {offsets = [0, 256], sizes = [1, 128], strides = [1, 1]} : vector<1x512xf32> to vector<1x128xf32>
    %184 = math.tanh %183 : vector<1x128xf32>
    %185 = vector.extract_strided_slice %170 {offsets = [0, 384], sizes = [1, 128], strides = [1, 1]} : vector<1x512xf32> to vector<1x128xf32>
    %186 = arith.negf %185 : vector<1x128xf32>
    %187 = math.exp %186 : vector<1x128xf32>
    %cst_119 = arith.constant 1.000000e+00 : f32
    %188 = vector.broadcast %cst_119 : f32 to vector<1x128xf32>
    %189 = arith.addf %188, %187 : vector<1x128xf32>
    %190 = arith.divf %188, %189 : vector<1x128xf32>
    %c1_120 = arith.constant 1 : index
    %c0_121 = arith.constant 0 : index
    %191 = vector.load %arg11[%c1_120, %c0_121] : memref<2x128xf32, #tpu.memory_space<vmem>>, vector<1x128xf32>
    %192 = arith.mulf %182, %191 : vector<1x128xf32>
    %193 = arith.mulf %176, %184 : vector<1x128xf32>
    %194 = arith.addf %192, %193 : vector<1x128xf32>
    %195 = math.tanh %194 : vector<1x128xf32>
    %196 = arith.mulf %190, %195 : vector<1x128xf32>
    %c0_122 = arith.constant 0 : index
    %c0_123 = arith.constant 0 : index
    %197 = vector.load %arg11[%c0_122, %c0_123] : memref<2x128xf32, #tpu.memory_space<vmem>>, vector<1x128xf32>
    tpu.vector_store %arg11[%c0_122, %c0_123], %196 {strides = array<i32>} : memref<2x128xf32, #tpu.memory_space<vmem>>, vector<1x128xf32>,
    %c1_124 = arith.constant 1 : index
    %c0_125 = arith.constant 0 : index
    %198 = vector.load %arg11[%c1_124, %c0_125] : memref<2x128xf32, #tpu.memory_space<vmem>>, vector<1x128xf32>
    tpu.vector_store %arg11[%c1_124, %c0_125], %194 {strides = array<i32>} : memref<2x128xf32, #tpu.memory_space<vmem>>, vector<1x128xf32>,
    %199 = arith.truncf %196 : vector<1x128xf32> to vector<1x128xbf16>
    %c0_126 = arith.constant 0 : index
    %c128_127 = arith.constant 128 : index
    %200 = vector.load %arg12[%c0_126, %c128_127] : memref<1x256xbf16, #tpu.memory_space<vmem>>, vector<1x128xbf16>
    tpu.vector_store %arg12[%c0_126, %c128_127], %199 {strides = array<i32>} : memref<1x256xbf16, #tpu.memory_space<vmem>>, vector<1x128xbf16>,
    %201 = arith.truncf %196 : vector<1x128xf32> to vector<1x128xbf16>
    %c0_128 = arith.constant 0 : index
    %c0_129 = arith.constant 0 : index
    %202 = vector.load %arg6[%c0_128, %c0_129] : memref<128x128xbf16, #tpu.memory_space<vmem>>, vector<128x128xbf16>
    %cst_130 = arith.constant dense<0.000000e+00> : vector<1x128xf32>
    %203 = tpu.matmul %201, %202, %cst_130 {dimension_numbers = #tpu.dot_dimension_numbers<[1], [0], [0], [1], [0, 0, 1, 1], [], []>} : vector<1x128xbf16>, vector<128x128xbf16>, vector<1x128xf32> -> vector<1x128xf32>
    %c0_131 = arith.constant 0 : index
    %c0_132 = arith.constant 0 : index
    %204 = vector.load %arg7[%c0_131, %c0_132] : memref<1x128xf32, #tpu.memory_space<vmem>>, vector<1x128xf32>
    %205 = arith.addf %203, %204 : vector<1x128xf32>
    %c3_133 = arith.constant 3 : index
    %c0_134 = arith.constant 0 : index
    %206 = vector.load %arg9[%c3_133, %c0_134] : memref<8x128xf32, #tpu.memory_space<vmem>>, vector<1x128xf32>
    tpu.vector_store %arg9[%c3_133, %c0_134], %205 {strides = array<i32>} : memref<8x128xf32, #tpu.memory_space<vmem>>, vector<1x128xf32>,
    %c4 = arith.constant 4 : index
    %c0_135 = arith.constant 0 : index
    %207 = vector.load %arg1[%c4, %c0_135] : memref<8x128xf32, #tpu.memory_space<vmem>>, vector<1x128xf32>
    %208 = arith.truncf %207 : vector<1x128xf32> to vector<1x128xbf16>
    %c0_136 = arith.constant 0 : index
    %c0_137 = arith.constant 0 : index
    %209 = vector.load %arg2[%c0_136, %c0_137] : memref<128x128xbf16, #tpu.memory_space<vmem>>, vector<128x128xbf16>
    %cst_138 = arith.constant dense<0.000000e+00> : vector<1x128xf32>
    %210 = tpu.matmul %208, %209, %cst_138 {dimension_numbers = #tpu.dot_dimension_numbers<[1], [0], [0], [1], [0, 0, 1, 1], [], []>} : vector<1x128xbf16>, vector<128x128xbf16>, vector<1x128xf32> -> vector<1x128xf32>
    %c0_139 = arith.constant 0 : index
    %c0_140 = arith.constant 0 : index
    %211 = vector.load %arg3[%c0_139, %c0_140] : memref<1x128xf32, #tpu.memory_space<vmem>>, vector<1x128xf32>
    %212 = arith.addf %210, %211 : vector<1x128xf32>
    %cst_141 = arith.constant 0.000000e+00 : f32
    %213 = vector.broadcast %cst_141 : f32 to vector<1x128xf32>
    %214 = arith.maximumf %212, %213 : vector<1x128xf32>
    %215 = arith.truncf %214 : vector<1x128xf32> to vector<1x128xbf16>
    %c0_142 = arith.constant 0 : index
    %c0_143 = arith.constant 0 : index
    %216 = vector.load %arg12[%c0_142, %c0_143] : memref<1x256xbf16, #tpu.memory_space<vmem>>, vector<1x128xbf16>
    tpu.vector_store %arg12[%c0_142, %c0_143], %215 {strides = array<i32>} : memref<1x256xbf16, #tpu.memory_space<vmem>>, vector<1x128xbf16>,
    %c0_144 = arith.constant 0 : index
    %c0_145 = arith.constant 0 : index
    %217 = vector.load %arg12[%c0_144, %c0_145] : memref<1x256xbf16, #tpu.memory_space<vmem>>, vector<1x256xbf16>
    %c0_146 = arith.constant 0 : index
    %c0_147 = arith.constant 0 : index
    %218 = vector.load %arg4[%c0_146, %c0_147] : memref<256x512xbf16, #tpu.memory_space<vmem>>, vector<256x512xbf16>
    %cst_148 = arith.constant dense<0.000000e+00> : vector<1x512xf32>
    %219 = tpu.matmul %217, %218, %cst_148 {dimension_numbers = #tpu.dot_dimension_numbers<[1], [0], [0], [1], [0, 0, 1, 1], [], []>} : vector<1x256xbf16>, vector<256x512xbf16>, vector<1x512xf32> -> vector<1x512xf32>
    %c0_149 = arith.constant 0 : index
    %c0_150 = arith.constant 0 : index
    %220 = vector.load %arg5[%c0_149, %c0_150] : memref<1x512xf32, #tpu.memory_space<vmem>>, vector<1x512xf32>
    %221 = arith.addf %219, %220 : vector<1x512xf32>
    %222 = vector.extract_strided_slice %221 {offsets = [0, 0], sizes = [1, 128], strides = [1, 1]} : vector<1x512xf32> to vector<1x128xf32>
    %223 = arith.negf %222 : vector<1x128xf32>
    %224 = math.exp %223 : vector<1x128xf32>
    %cst_151 = arith.constant 1.000000e+00 : f32
    %225 = vector.broadcast %cst_151 : f32 to vector<1x128xf32>
    %226 = arith.addf %225, %224 : vector<1x128xf32>
    %227 = arith.divf %225, %226 : vector<1x128xf32>
    %228 = vector.extract_strided_slice %221 {offsets = [0, 128], sizes = [1, 128], strides = [1, 1]} : vector<1x512xf32> to vector<1x128xf32>
    %229 = arith.negf %228 : vector<1x128xf32>
    %230 = math.exp %229 : vector<1x128xf32>
    %cst_152 = arith.constant 1.000000e+00 : f32
    %231 = vector.broadcast %cst_152 : f32 to vector<1x128xf32>
    %232 = arith.addf %231, %230 : vector<1x128xf32>
    %233 = arith.divf %231, %232 : vector<1x128xf32>
    %234 = vector.extract_strided_slice %221 {offsets = [0, 256], sizes = [1, 128], strides = [1, 1]} : vector<1x512xf32> to vector<1x128xf32>
    %235 = math.tanh %234 : vector<1x128xf32>
    %236 = vector.extract_strided_slice %221 {offsets = [0, 384], sizes = [1, 128], strides = [1, 1]} : vector<1x512xf32> to vector<1x128xf32>
    %237 = arith.negf %236 : vector<1x128xf32>
    %238 = math.exp %237 : vector<1x128xf32>
    %cst_153 = arith.constant 1.000000e+00 : f32
    %239 = vector.broadcast %cst_153 : f32 to vector<1x128xf32>
    %240 = arith.addf %239, %238 : vector<1x128xf32>
    %241 = arith.divf %239, %240 : vector<1x128xf32>
    %c1_154 = arith.constant 1 : index
    %c0_155 = arith.constant 0 : index
    %242 = vector.load %arg11[%c1_154, %c0_155] : memref<2x128xf32, #tpu.memory_space<vmem>>, vector<1x128xf32>
    %243 = arith.mulf %233, %242 : vector<1x128xf32>
    %244 = arith.mulf %227, %235 : vector<1x128xf32>
    %245 = arith.addf %243, %244 : vector<1x128xf32>
    %246 = math.tanh %245 : vector<1x128xf32>
    %247 = arith.mulf %241, %246 : vector<1x128xf32>
    %c0_156 = arith.constant 0 : index
    %c0_157 = arith.constant 0 : index
    %248 = vector.load %arg11[%c0_156, %c0_157] : memref<2x128xf32, #tpu.memory_space<vmem>>, vector<1x128xf32>
    tpu.vector_store %arg11[%c0_156, %c0_157], %247 {strides = array<i32>} : memref<2x128xf32, #tpu.memory_space<vmem>>, vector<1x128xf32>,
    %c1_158 = arith.constant 1 : index
    %c0_159 = arith.constant 0 : index
    %249 = vector.load %arg11[%c1_158, %c0_159] : memref<2x128xf32, #tpu.memory_space<vmem>>, vector<1x128xf32>
    tpu.vector_store %arg11[%c1_158, %c0_159], %245 {strides = array<i32>} : memref<2x128xf32, #tpu.memory_space<vmem>>, vector<1x128xf32>,
    %250 = arith.truncf %247 : vector<1x128xf32> to vector<1x128xbf16>
    %c0_160 = arith.constant 0 : index
    %c128_161 = arith.constant 128 : index
    %251 = vector.load %arg12[%c0_160, %c128_161] : memref<1x256xbf16, #tpu.memory_space<vmem>>, vector<1x128xbf16>
    tpu.vector_store %arg12[%c0_160, %c128_161], %250 {strides = array<i32>} : memref<1x256xbf16, #tpu.memory_space<vmem>>, vector<1x128xbf16>,
    %252 = arith.truncf %247 : vector<1x128xf32> to vector<1x128xbf16>
    %c0_162 = arith.constant 0 : index
    %c0_163 = arith.constant 0 : index
    %253 = vector.load %arg6[%c0_162, %c0_163] : memref<128x128xbf16, #tpu.memory_space<vmem>>, vector<128x128xbf16>
    %cst_164 = arith.constant dense<0.000000e+00> : vector<1x128xf32>
    %254 = tpu.matmul %252, %253, %cst_164 {dimension_numbers = #tpu.dot_dimension_numbers<[1], [0], [0], [1], [0, 0, 1, 1], [], []>} : vector<1x128xbf16>, vector<128x128xbf16>, vector<1x128xf32> -> vector<1x128xf32>
    %c0_165 = arith.constant 0 : index
    %c0_166 = arith.constant 0 : index
    %255 = vector.load %arg7[%c0_165, %c0_166] : memref<1x128xf32, #tpu.memory_space<vmem>>, vector<1x128xf32>
    %256 = arith.addf %254, %255 : vector<1x128xf32>
    %c4_167 = arith.constant 4 : index
    %c0_168 = arith.constant 0 : index
    %257 = vector.load %arg9[%c4_167, %c0_168] : memref<8x128xf32, #tpu.memory_space<vmem>>, vector<1x128xf32>
    tpu.vector_store %arg9[%c4_167, %c0_168], %256 {strides = array<i32>} : memref<8x128xf32, #tpu.memory_space<vmem>>, vector<1x128xf32>,
    %c5 = arith.constant 5 : index
    %c0_169 = arith.constant 0 : index
    %258 = vector.load %arg1[%c5, %c0_169] : memref<8x128xf32, #tpu.memory_space<vmem>>, vector<1x128xf32>
    %259 = arith.truncf %258 : vector<1x128xf32> to vector<1x128xbf16>
    %c0_170 = arith.constant 0 : index
    %c0_171 = arith.constant 0 : index
    %260 = vector.load %arg2[%c0_170, %c0_171] : memref<128x128xbf16, #tpu.memory_space<vmem>>, vector<128x128xbf16>
    %cst_172 = arith.constant dense<0.000000e+00> : vector<1x128xf32>
    %261 = tpu.matmul %259, %260, %cst_172 {dimension_numbers = #tpu.dot_dimension_numbers<[1], [0], [0], [1], [0, 0, 1, 1], [], []>} : vector<1x128xbf16>, vector<128x128xbf16>, vector<1x128xf32> -> vector<1x128xf32>
    %c0_173 = arith.constant 0 : index
    %c0_174 = arith.constant 0 : index
    %262 = vector.load %arg3[%c0_173, %c0_174] : memref<1x128xf32, #tpu.memory_space<vmem>>, vector<1x128xf32>
    %263 = arith.addf %261, %262 : vector<1x128xf32>
    %cst_175 = arith.constant 0.000000e+00 : f32
    %264 = vector.broadcast %cst_175 : f32 to vector<1x128xf32>
    %265 = arith.maximumf %263, %264 : vector<1x128xf32>
    %266 = arith.truncf %265 : vector<1x128xf32> to vector<1x128xbf16>
    %c0_176 = arith.constant 0 : index
    %c0_177 = arith.constant 0 : index
    %267 = vector.load %arg12[%c0_176, %c0_177] : memref<1x256xbf16, #tpu.memory_space<vmem>>, vector<1x128xbf16>
    tpu.vector_store %arg12[%c0_176, %c0_177], %266 {strides = array<i32>} : memref<1x256xbf16, #tpu.memory_space<vmem>>, vector<1x128xbf16>,
    %c0_178 = arith.constant 0 : index
    %c0_179 = arith.constant 0 : index
    %268 = vector.load %arg12[%c0_178, %c0_179] : memref<1x256xbf16, #tpu.memory_space<vmem>>, vector<1x256xbf16>
    %c0_180 = arith.constant 0 : index
    %c0_181 = arith.constant 0 : index
    %269 = vector.load %arg4[%c0_180, %c0_181] : memref<256x512xbf16, #tpu.memory_space<vmem>>, vector<256x512xbf16>
    %cst_182 = arith.constant dense<0.000000e+00> : vector<1x512xf32>
    %270 = tpu.matmul %268, %269, %cst_182 {dimension_numbers = #tpu.dot_dimension_numbers<[1], [0], [0], [1], [0, 0, 1, 1], [], []>} : vector<1x256xbf16>, vector<256x512xbf16>, vector<1x512xf32> -> vector<1x512xf32>
    %c0_183 = arith.constant 0 : index
    %c0_184 = arith.constant 0 : index
    %271 = vector.load %arg5[%c0_183, %c0_184] : memref<1x512xf32, #tpu.memory_space<vmem>>, vector<1x512xf32>
    %272 = arith.addf %270, %271 : vector<1x512xf32>
    %273 = vector.extract_strided_slice %272 {offsets = [0, 0], sizes = [1, 128], strides = [1, 1]} : vector<1x512xf32> to vector<1x128xf32>
    %274 = arith.negf %273 : vector<1x128xf32>
    %275 = math.exp %274 : vector<1x128xf32>
    %cst_185 = arith.constant 1.000000e+00 : f32
    %276 = vector.broadcast %cst_185 : f32 to vector<1x128xf32>
    %277 = arith.addf %276, %275 : vector<1x128xf32>
    %278 = arith.divf %276, %277 : vector<1x128xf32>
    %279 = vector.extract_strided_slice %272 {offsets = [0, 128], sizes = [1, 128], strides = [1, 1]} : vector<1x512xf32> to vector<1x128xf32>
    %280 = arith.negf %279 : vector<1x128xf32>
    %281 = math.exp %280 : vector<1x128xf32>
    %cst_186 = arith.constant 1.000000e+00 : f32
    %282 = vector.broadcast %cst_186 : f32 to vector<1x128xf32>
    %283 = arith.addf %282, %281 : vector<1x128xf32>
    %284 = arith.divf %282, %283 : vector<1x128xf32>
    %285 = vector.extract_strided_slice %272 {offsets = [0, 256], sizes = [1, 128], strides = [1, 1]} : vector<1x512xf32> to vector<1x128xf32>
    %286 = math.tanh %285 : vector<1x128xf32>
    %287 = vector.extract_strided_slice %272 {offsets = [0, 384], sizes = [1, 128], strides = [1, 1]} : vector<1x512xf32> to vector<1x128xf32>
    %288 = arith.negf %287 : vector<1x128xf32>
    %289 = math.exp %288 : vector<1x128xf32>
    %cst_187 = arith.constant 1.000000e+00 : f32
    %290 = vector.broadcast %cst_187 : f32 to vector<1x128xf32>
    %291 = arith.addf %290, %289 : vector<1x128xf32>
    %292 = arith.divf %290, %291 : vector<1x128xf32>
    %c1_188 = arith.constant 1 : index
    %c0_189 = arith.constant 0 : index
    %293 = vector.load %arg11[%c1_188, %c0_189] : memref<2x128xf32, #tpu.memory_space<vmem>>, vector<1x128xf32>
    %294 = arith.mulf %284, %293 : vector<1x128xf32>
    %295 = arith.mulf %278, %286 : vector<1x128xf32>
    %296 = arith.addf %294, %295 : vector<1x128xf32>
    %297 = math.tanh %296 : vector<1x128xf32>
    %298 = arith.mulf %292, %297 : vector<1x128xf32>
    %c0_190 = arith.constant 0 : index
    %c0_191 = arith.constant 0 : index
    %299 = vector.load %arg11[%c0_190, %c0_191] : memref<2x128xf32, #tpu.memory_space<vmem>>, vector<1x128xf32>
    tpu.vector_store %arg11[%c0_190, %c0_191], %298 {strides = array<i32>} : memref<2x128xf32, #tpu.memory_space<vmem>>, vector<1x128xf32>,
    %c1_192 = arith.constant 1 : index
    %c0_193 = arith.constant 0 : index
    %300 = vector.load %arg11[%c1_192, %c0_193] : memref<2x128xf32, #tpu.memory_space<vmem>>, vector<1x128xf32>
    tpu.vector_store %arg11[%c1_192, %c0_193], %296 {strides = array<i32>} : memref<2x128xf32, #tpu.memory_space<vmem>>, vector<1x128xf32>,
    %301 = arith.truncf %298 : vector<1x128xf32> to vector<1x128xbf16>
    %c0_194 = arith.constant 0 : index
    %c128_195 = arith.constant 128 : index
    %302 = vector.load %arg12[%c0_194, %c128_195] : memref<1x256xbf16, #tpu.memory_space<vmem>>, vector<1x128xbf16>
    tpu.vector_store %arg12[%c0_194, %c128_195], %301 {strides = array<i32>} : memref<1x256xbf16, #tpu.memory_space<vmem>>, vector<1x128xbf16>,
    %303 = arith.truncf %298 : vector<1x128xf32> to vector<1x128xbf16>
    %c0_196 = arith.constant 0 : index
    %c0_197 = arith.constant 0 : index
    %304 = vector.load %arg6[%c0_196, %c0_197] : memref<128x128xbf16, #tpu.memory_space<vmem>>, vector<128x128xbf16>
    %cst_198 = arith.constant dense<0.000000e+00> : vector<1x128xf32>
    %305 = tpu.matmul %303, %304, %cst_198 {dimension_numbers = #tpu.dot_dimension_numbers<[1], [0], [0], [1], [0, 0, 1, 1], [], []>} : vector<1x128xbf16>, vector<128x128xbf16>, vector<1x128xf32> -> vector<1x128xf32>
    %c0_199 = arith.constant 0 : index
    %c0_200 = arith.constant 0 : index
    %306 = vector.load %arg7[%c0_199, %c0_200] : memref<1x128xf32, #tpu.memory_space<vmem>>, vector<1x128xf32>
    %307 = arith.addf %305, %306 : vector<1x128xf32>
    %c5_201 = arith.constant 5 : index
    %c0_202 = arith.constant 0 : index
    %308 = vector.load %arg9[%c5_201, %c0_202] : memref<8x128xf32, #tpu.memory_space<vmem>>, vector<1x128xf32>
    tpu.vector_store %arg9[%c5_201, %c0_202], %307 {strides = array<i32>} : memref<8x128xf32, #tpu.memory_space<vmem>>, vector<1x128xf32>,
    %c6 = arith.constant 6 : index
    %c0_203 = arith.constant 0 : index
    %309 = vector.load %arg1[%c6, %c0_203] : memref<8x128xf32, #tpu.memory_space<vmem>>, vector<1x128xf32>
    %310 = arith.truncf %309 : vector<1x128xf32> to vector<1x128xbf16>
    %c0_204 = arith.constant 0 : index
    %c0_205 = arith.constant 0 : index
    %311 = vector.load %arg2[%c0_204, %c0_205] : memref<128x128xbf16, #tpu.memory_space<vmem>>, vector<128x128xbf16>
    %cst_206 = arith.constant dense<0.000000e+00> : vector<1x128xf32>
    %312 = tpu.matmul %310, %311, %cst_206 {dimension_numbers = #tpu.dot_dimension_numbers<[1], [0], [0], [1], [0, 0, 1, 1], [], []>} : vector<1x128xbf16>, vector<128x128xbf16>, vector<1x128xf32> -> vector<1x128xf32>
    %c0_207 = arith.constant 0 : index
    %c0_208 = arith.constant 0 : index
    %313 = vector.load %arg3[%c0_207, %c0_208] : memref<1x128xf32, #tpu.memory_space<vmem>>, vector<1x128xf32>
    %314 = arith.addf %312, %313 : vector<1x128xf32>
    %cst_209 = arith.constant 0.000000e+00 : f32
    %315 = vector.broadcast %cst_209 : f32 to vector<1x128xf32>
    %316 = arith.maximumf %314, %315 : vector<1x128xf32>
    %317 = arith.truncf %316 : vector<1x128xf32> to vector<1x128xbf16>
    %c0_210 = arith.constant 0 : index
    %c0_211 = arith.constant 0 : index
    %318 = vector.load %arg12[%c0_210, %c0_211] : memref<1x256xbf16, #tpu.memory_space<vmem>>, vector<1x128xbf16>
    tpu.vector_store %arg12[%c0_210, %c0_211], %317 {strides = array<i32>} : memref<1x256xbf16, #tpu.memory_space<vmem>>, vector<1x128xbf16>,
    %c0_212 = arith.constant 0 : index
    %c0_213 = arith.constant 0 : index
    %319 = vector.load %arg12[%c0_212, %c0_213] : memref<1x256xbf16, #tpu.memory_space<vmem>>, vector<1x256xbf16>
    %c0_214 = arith.constant 0 : index
    %c0_215 = arith.constant 0 : index
    %320 = vector.load %arg4[%c0_214, %c0_215] : memref<256x512xbf16, #tpu.memory_space<vmem>>, vector<256x512xbf16>
    %cst_216 = arith.constant dense<0.000000e+00> : vector<1x512xf32>
    %321 = tpu.matmul %319, %320, %cst_216 {dimension_numbers = #tpu.dot_dimension_numbers<[1], [0], [0], [1], [0, 0, 1, 1], [], []>} : vector<1x256xbf16>, vector<256x512xbf16>, vector<1x512xf32> -> vector<1x512xf32>
    %c0_217 = arith.constant 0 : index
    %c0_218 = arith.constant 0 : index
    %322 = vector.load %arg5[%c0_217, %c0_218] : memref<1x512xf32, #tpu.memory_space<vmem>>, vector<1x512xf32>
    %323 = arith.addf %321, %322 : vector<1x512xf32>
    %324 = vector.extract_strided_slice %323 {offsets = [0, 0], sizes = [1, 128], strides = [1, 1]} : vector<1x512xf32> to vector<1x128xf32>
    %325 = arith.negf %324 : vector<1x128xf32>
    %326 = math.exp %325 : vector<1x128xf32>
    %cst_219 = arith.constant 1.000000e+00 : f32
    %327 = vector.broadcast %cst_219 : f32 to vector<1x128xf32>
    %328 = arith.addf %327, %326 : vector<1x128xf32>
    %329 = arith.divf %327, %328 : vector<1x128xf32>
    %330 = vector.extract_strided_slice %323 {offsets = [0, 128], sizes = [1, 128], strides = [1, 1]} : vector<1x512xf32> to vector<1x128xf32>
    %331 = arith.negf %330 : vector<1x128xf32>
    %332 = math.exp %331 : vector<1x128xf32>
    %cst_220 = arith.constant 1.000000e+00 : f32
    %333 = vector.broadcast %cst_220 : f32 to vector<1x128xf32>
    %334 = arith.addf %333, %332 : vector<1x128xf32>
    %335 = arith.divf %333, %334 : vector<1x128xf32>
    %336 = vector.extract_strided_slice %323 {offsets = [0, 256], sizes = [1, 128], strides = [1, 1]} : vector<1x512xf32> to vector<1x128xf32>
    %337 = math.tanh %336 : vector<1x128xf32>
    %338 = vector.extract_strided_slice %323 {offsets = [0, 384], sizes = [1, 128], strides = [1, 1]} : vector<1x512xf32> to vector<1x128xf32>
    %339 = arith.negf %338 : vector<1x128xf32>
    %340 = math.exp %339 : vector<1x128xf32>
    %cst_221 = arith.constant 1.000000e+00 : f32
    %341 = vector.broadcast %cst_221 : f32 to vector<1x128xf32>
    %342 = arith.addf %341, %340 : vector<1x128xf32>
    %343 = arith.divf %341, %342 : vector<1x128xf32>
    %c1_222 = arith.constant 1 : index
    %c0_223 = arith.constant 0 : index
    %344 = vector.load %arg11[%c1_222, %c0_223] : memref<2x128xf32, #tpu.memory_space<vmem>>, vector<1x128xf32>
    %345 = arith.mulf %335, %344 : vector<1x128xf32>
    %346 = arith.mulf %329, %337 : vector<1x128xf32>
    %347 = arith.addf %345, %346 : vector<1x128xf32>
    %348 = math.tanh %347 : vector<1x128xf32>
    %349 = arith.mulf %343, %348 : vector<1x128xf32>
    %c0_224 = arith.constant 0 : index
    %c0_225 = arith.constant 0 : index
    %350 = vector.load %arg11[%c0_224, %c0_225] : memref<2x128xf32, #tpu.memory_space<vmem>>, vector<1x128xf32>
    tpu.vector_store %arg11[%c0_224, %c0_225], %349 {strides = array<i32>} : memref<2x128xf32, #tpu.memory_space<vmem>>, vector<1x128xf32>,
    %c1_226 = arith.constant 1 : index
    %c0_227 = arith.constant 0 : index
    %351 = vector.load %arg11[%c1_226, %c0_227] : memref<2x128xf32, #tpu.memory_space<vmem>>, vector<1x128xf32>
    tpu.vector_store %arg11[%c1_226, %c0_227], %347 {strides = array<i32>} : memref<2x128xf32, #tpu.memory_space<vmem>>, vector<1x128xf32>,
    %352 = arith.truncf %349 : vector<1x128xf32> to vector<1x128xbf16>
    %c0_228 = arith.constant 0 : index
    %c128_229 = arith.constant 128 : index
    %353 = vector.load %arg12[%c0_228, %c128_229] : memref<1x256xbf16, #tpu.memory_space<vmem>>, vector<1x128xbf16>
    tpu.vector_store %arg12[%c0_228, %c128_229], %352 {strides = array<i32>} : memref<1x256xbf16, #tpu.memory_space<vmem>>, vector<1x128xbf16>,
    %354 = arith.truncf %349 : vector<1x128xf32> to vector<1x128xbf16>
    %c0_230 = arith.constant 0 : index
    %c0_231 = arith.constant 0 : index
    %355 = vector.load %arg6[%c0_230, %c0_231] : memref<128x128xbf16, #tpu.memory_space<vmem>>, vector<128x128xbf16>
    %cst_232 = arith.constant dense<0.000000e+00> : vector<1x128xf32>
    %356 = tpu.matmul %354, %355, %cst_232 {dimension_numbers = #tpu.dot_dimension_numbers<[1], [0], [0], [1], [0, 0, 1, 1], [], []>} : vector<1x128xbf16>, vector<128x128xbf16>, vector<1x128xf32> -> vector<1x128xf32>
    %c0_233 = arith.constant 0 : index
    %c0_234 = arith.constant 0 : index
    %357 = vector.load %arg7[%c0_233, %c0_234] : memref<1x128xf32, #tpu.memory_space<vmem>>, vector<1x128xf32>
    %358 = arith.addf %356, %357 : vector<1x128xf32>
    %c6_235 = arith.constant 6 : index
    %c0_236 = arith.constant 0 : index
    %359 = vector.load %arg9[%c6_235, %c0_236] : memref<8x128xf32, #tpu.memory_space<vmem>>, vector<1x128xf32>
    tpu.vector_store %arg9[%c6_235, %c0_236], %358 {strides = array<i32>} : memref<8x128xf32, #tpu.memory_space<vmem>>, vector<1x128xf32>,
    %c7 = arith.constant 7 : index
    %c0_237 = arith.constant 0 : index
    %360 = vector.load %arg1[%c7, %c0_237] : memref<8x128xf32, #tpu.memory_space<vmem>>, vector<1x128xf32>
    %361 = arith.truncf %360 : vector<1x128xf32> to vector<1x128xbf16>
    %c0_238 = arith.constant 0 : index
    %c0_239 = arith.constant 0 : index
    %362 = vector.load %arg2[%c0_238, %c0_239] : memref<128x128xbf16, #tpu.memory_space<vmem>>, vector<128x128xbf16>
    %cst_240 = arith.constant dense<0.000000e+00> : vector<1x128xf32>
    %363 = tpu.matmul %361, %362, %cst_240 {dimension_numbers = #tpu.dot_dimension_numbers<[1], [0], [0], [1], [0, 0, 1, 1], [], []>} : vector<1x128xbf16>, vector<128x128xbf16>, vector<1x128xf32> -> vector<1x128xf32>
    %c0_241 = arith.constant 0 : index
    %c0_242 = arith.constant 0 : index
    %364 = vector.load %arg3[%c0_241, %c0_242] : memref<1x128xf32, #tpu.memory_space<vmem>>, vector<1x128xf32>
    %365 = arith.addf %363, %364 : vector<1x128xf32>
    %cst_243 = arith.constant 0.000000e+00 : f32
    %366 = vector.broadcast %cst_243 : f32 to vector<1x128xf32>
    %367 = arith.maximumf %365, %366 : vector<1x128xf32>
    %368 = arith.truncf %367 : vector<1x128xf32> to vector<1x128xbf16>
    %c0_244 = arith.constant 0 : index
    %c0_245 = arith.constant 0 : index
    %369 = vector.load %arg12[%c0_244, %c0_245] : memref<1x256xbf16, #tpu.memory_space<vmem>>, vector<1x128xbf16>
    tpu.vector_store %arg12[%c0_244, %c0_245], %368 {strides = array<i32>} : memref<1x256xbf16, #tpu.memory_space<vmem>>, vector<1x128xbf16>,
    %c0_246 = arith.constant 0 : index
    %c0_247 = arith.constant 0 : index
    %370 = vector.load %arg12[%c0_246, %c0_247] : memref<1x256xbf16, #tpu.memory_space<vmem>>, vector<1x256xbf16>
    %c0_248 = arith.constant 0 : index
    %c0_249 = arith.constant 0 : index
    %371 = vector.load %arg4[%c0_248, %c0_249] : memref<256x512xbf16, #tpu.memory_space<vmem>>, vector<256x512xbf16>
    %cst_250 = arith.constant dense<0.000000e+00> : vector<1x512xf32>
    %372 = tpu.matmul %370, %371, %cst_250 {dimension_numbers = #tpu.dot_dimension_numbers<[1], [0], [0], [1], [0, 0, 1, 1], [], []>} : vector<1x256xbf16>, vector<256x512xbf16>, vector<1x512xf32> -> vector<1x512xf32>
    %c0_251 = arith.constant 0 : index
    %c0_252 = arith.constant 0 : index
    %373 = vector.load %arg5[%c0_251, %c0_252] : memref<1x512xf32, #tpu.memory_space<vmem>>, vector<1x512xf32>
    %374 = arith.addf %372, %373 : vector<1x512xf32>
    %375 = vector.extract_strided_slice %374 {offsets = [0, 0], sizes = [1, 128], strides = [1, 1]} : vector<1x512xf32> to vector<1x128xf32>
    %376 = arith.negf %375 : vector<1x128xf32>
    %377 = math.exp %376 : vector<1x128xf32>
    %cst_253 = arith.constant 1.000000e+00 : f32
    %378 = vector.broadcast %cst_253 : f32 to vector<1x128xf32>
    %379 = arith.addf %378, %377 : vector<1x128xf32>
    %380 = arith.divf %378, %379 : vector<1x128xf32>
    %381 = vector.extract_strided_slice %374 {offsets = [0, 128], sizes = [1, 128], strides = [1, 1]} : vector<1x512xf32> to vector<1x128xf32>
    %382 = arith.negf %381 : vector<1x128xf32>
    %383 = math.exp %382 : vector<1x128xf32>
    %cst_254 = arith.constant 1.000000e+00 : f32
    %384 = vector.broadcast %cst_254 : f32 to vector<1x128xf32>
    %385 = arith.addf %384, %383 : vector<1x128xf32>
    %386 = arith.divf %384, %385 : vector<1x128xf32>
    %387 = vector.extract_strided_slice %374 {offsets = [0, 256], sizes = [1, 128], strides = [1, 1]} : vector<1x512xf32> to vector<1x128xf32>
    %388 = math.tanh %387 : vector<1x128xf32>
    %389 = vector.extract_strided_slice %374 {offsets = [0, 384], sizes = [1, 128], strides = [1, 1]} : vector<1x512xf32> to vector<1x128xf32>
    %390 = arith.negf %389 : vector<1x128xf32>
    %391 = math.exp %390 : vector<1x128xf32>
    %cst_255 = arith.constant 1.000000e+00 : f32
    %392 = vector.broadcast %cst_255 : f32 to vector<1x128xf32>
    %393 = arith.addf %392, %391 : vector<1x128xf32>
    %394 = arith.divf %392, %393 : vector<1x128xf32>
    %c1_256 = arith.constant 1 : index
    %c0_257 = arith.constant 0 : index
    %395 = vector.load %arg11[%c1_256, %c0_257] : memref<2x128xf32, #tpu.memory_space<vmem>>, vector<1x128xf32>
    %396 = arith.mulf %386, %395 : vector<1x128xf32>
    %397 = arith.mulf %380, %388 : vector<1x128xf32>
    %398 = arith.addf %396, %397 : vector<1x128xf32>
    %399 = math.tanh %398 : vector<1x128xf32>
    %400 = arith.mulf %394, %399 : vector<1x128xf32>
    %c0_258 = arith.constant 0 : index
    %c0_259 = arith.constant 0 : index
    %401 = vector.load %arg11[%c0_258, %c0_259] : memref<2x128xf32, #tpu.memory_space<vmem>>, vector<1x128xf32>
    tpu.vector_store %arg11[%c0_258, %c0_259], %400 {strides = array<i32>} : memref<2x128xf32, #tpu.memory_space<vmem>>, vector<1x128xf32>,
    %c1_260 = arith.constant 1 : index
    %c0_261 = arith.constant 0 : index
    %402 = vector.load %arg11[%c1_260, %c0_261] : memref<2x128xf32, #tpu.memory_space<vmem>>, vector<1x128xf32>
    tpu.vector_store %arg11[%c1_260, %c0_261], %398 {strides = array<i32>} : memref<2x128xf32, #tpu.memory_space<vmem>>, vector<1x128xf32>,
    %403 = arith.truncf %400 : vector<1x128xf32> to vector<1x128xbf16>
    %c0_262 = arith.constant 0 : index
    %c128_263 = arith.constant 128 : index
    %404 = vector.load %arg12[%c0_262, %c128_263] : memref<1x256xbf16, #tpu.memory_space<vmem>>, vector<1x128xbf16>
    tpu.vector_store %arg12[%c0_262, %c128_263], %403 {strides = array<i32>} : memref<1x256xbf16, #tpu.memory_space<vmem>>, vector<1x128xbf16>,
    %405 = arith.truncf %400 : vector<1x128xf32> to vector<1x128xbf16>
    %c0_264 = arith.constant 0 : index
    %c0_265 = arith.constant 0 : index
    %406 = vector.load %arg6[%c0_264, %c0_265] : memref<128x128xbf16, #tpu.memory_space<vmem>>, vector<128x128xbf16>
    %cst_266 = arith.constant dense<0.000000e+00> : vector<1x128xf32>
    %407 = tpu.matmul %405, %406, %cst_266 {dimension_numbers = #tpu.dot_dimension_numbers<[1], [0], [0], [1], [0, 0, 1, 1], [], []>} : vector<1x128xbf16>, vector<128x128xbf16>, vector<1x128xf32> -> vector<1x128xf32>
    %c0_267 = arith.constant 0 : index
    %c0_268 = arith.constant 0 : index
    %408 = vector.load %arg7[%c0_267, %c0_268] : memref<1x128xf32, #tpu.memory_space<vmem>>, vector<1x128xf32>
    %409 = arith.addf %407, %408 : vector<1x128xf32>
    %c7_269 = arith.constant 7 : index
    %c0_270 = arith.constant 0 : index
    %410 = vector.load %arg9[%c7_269, %c0_270] : memref<8x128xf32, #tpu.memory_space<vmem>>, vector<1x128xf32>
    tpu.vector_store %arg9[%c7_269, %c0_270], %409 {strides = array<i32>} : memref<8x128xf32, #tpu.memory_space<vmem>>, vector<1x128xf32>,
    %c1_i32 = arith.constant 1 : i32
    %411 = arith.cmpi eq, %arg0, %c1_i32 : i32
    %412 = arith.extui %411 : i1 to i32
    %c0_i32_271 = arith.constant 0 : i32
    %413 = arith.cmpi ne, %412, %c0_i32_271 : i32
    scf.if %413 {
      %c0_272 = arith.constant 0 : index
      %c0_273 = arith.constant 0 : index
      %414 = vector.load %arg11[%c0_272, %c0_273] : memref<2x128xf32, #tpu.memory_space<vmem>>, vector<2x128xf32>
      %c0_274 = arith.constant 0 : index
      %c0_275 = arith.constant 0 : index
      %415 = vector.load %arg10[%c0_274, %c0_275] : memref<2x128xf32, #tpu.memory_space<vmem>>, vector<2x128xf32>
      tpu.vector_store %arg10[%c0_274, %c0_275], %414 {strides = array<i32>} : memref<2x128xf32, #tpu.memory_space<vmem>>, vector<2x128xf32>,
    } else {
    }
    return
  }
  func.func @transform_0(%arg0: i32) -> (i32, i32) {
    %c0_i32 = arith.constant 0 : i32
    %c0_i32_0 = arith.constant 0 : i32
    return %arg0, %c0_i32 : i32, i32
  }
  func.func @transform_1(%arg0: i32) -> (i32, i32) {
    %c0_i32 = arith.constant 0 : i32
    %c0_i32_0 = arith.constant 0 : i32
    %c0_i32_1 = arith.constant 0 : i32
    return %c0_i32, %c0_i32_0 : i32, i32
  }
  func.func @transform_2(%arg0: i32) -> (i32, i32) {
    %c0_i32 = arith.constant 0 : i32
    %c0_i32_0 = arith.constant 0 : i32
    %c0_i32_1 = arith.constant 0 : i32
    return %c0_i32, %c0_i32_0 : i32, i32
  }
  func.func @transform_3(%arg0: i32) -> (i32, i32) {
    %c0_i32 = arith.constant 0 : i32
    %c0_i32_0 = arith.constant 0 : i32
    %c0_i32_1 = arith.constant 0 : i32
    return %c0_i32, %c0_i32_0 : i32, i32
  }
  func.func @transform_4(%arg0: i32) -> (i32, i32) {
    %c0_i32 = arith.constant 0 : i32
    %c0_i32_0 = arith.constant 0 : i32
    %c0_i32_1 = arith.constant 0 : i32
    return %c0_i32, %c0_i32_0 : i32, i32
  }
  func.func @transform_5(%arg0: i32) -> (i32, i32) {
    %c0_i32 = arith.constant 0 : i32
    %c0_i32_0 = arith.constant 0 : i32
    %c0_i32_1 = arith.constant 0 : i32
    return %c0_i32, %c0_i32_0 : i32, i32
  }
  func.func @transform_6(%arg0: i32) -> (i32, i32) {
    %c0_i32 = arith.constant 0 : i32
    %c0_i32_0 = arith.constant 0 : i32
    %c0_i32_1 = arith.constant 0 : i32
    return %c0_i32, %c0_i32_0 : i32, i32
  }
  func.func @transform_7(%arg0: i32) -> (i32, i32) {
    %c0_i32 = arith.constant 0 : i32
    %c0_i32_0 = arith.constant 0 : i32
    %c0_i32_1 = arith.constant 0 : i32
    return %c0_i32, %c0_i32_0 : i32, i32
  }
  func.func @transform_8(%arg0: i32) -> (i32, i32) {
    %c0_i32 = arith.constant 0 : i32
    %c0_i32_0 = arith.constant 0 : i32
    return %arg0, %c0_i32 : i32, i32
  }
  func.func @transform_9(%arg0: i32) -> (i32, i32) {
    %c0_i32 = arith.constant 0 : i32
    %c0_i32_0 = arith.constant 0 : i32
    %c0_i32_1 = arith.constant 0 : i32
    return %c0_i32, %c0_i32_0 : i32, i32
  }
}

</mosaic_0001>

<bundles_post_ra>
// kernel: rcombinet_forward_seq.1
= control target key start
LH: loop header
LB: loop body
LE: loop exit
PB: predicated region body
PF: predicated region fallthrough
CT: control target
= control target key end

     0   :  { %s10340_s0 = inlined_call_operand.vmem [shape: f32[16,128], index: 0, kind: input, shape index: {}]   ;;  %s10341_s1 = inlined_call_operand.hbm [shape: bf16[128,128], index: 1, kind: input, shape index: {}]   ;;  %s10342_s2 = inlined_call_operand.vmem [shape: f32[1,128], index: 2, kind: input, shape index: {}]   ;;  %s10343_s3 = inlined_call_operand.hbm [shape: bf16[256,512], index: 3, kind: input, shape index: {}]   ;;  %s10344_s4 = inlined_call_operand.vmem [shape: f32[1,512], index: 4, kind: input, shape index: {}]   ;;  %s10345_s5 = inlined_call_operand.hbm [shape: bf16[128,128], index: 5, kind: input, shape index: {}]   ;;  %s10346_s6 = inlined_call_operand.vmem [shape: f32[1,128], index: 6, kind: input, shape index: {}]   ;;  %s10347_s7 = inlined_call_operand.hbm [shape: f32[2,128], index: 7, kind: input, shape index: {}, may-alias: {7,9}]   ;;  %s10348_s8 = inlined_call_operand.hbm [shape: f32[16,128], index: 8, kind: output, shape index: {0}]   ;;  %s10349_s9 = inlined_call_operand.hbm [shape: f32[2,128], index: 9, kind: output, shape index: {1}, may-alias: {7,9}]  }
   0x1   :  { %10380 = sst [smem:[#allocation31_spill]] %s10343_s3 }
   0x2   :  { %15 = vsyncpa [#allocation5], 0 }
   0x3   :  { %16 = vsyncpa [#allocation8], 0 }
   0x4   :  { %17 = vsyncpa [#allocation11], 0 }
   0x5   :  { %18 = vsyncpa [#allocation6], 0 }
   0x6   :  { %20 = vsyncpa [#allocation6 + $0x1], 0 }
   0x7   :  { %21 = vsyncpa [#allocation14], 0  ;;  %s8861_s30 = smov 0   ;;  %s8863_s10 = smov 0  }
   0x8   :  { %s8865_s11 = smov 0   ;;  %s8867_s12 = smov 0  }
   0x9 LB: > { %10381 = sst [smem:[#allocation20_spill]] %s8792_s11  ;;  %s8882_s13 = sadd.s32 4294967295, %s8796_s12   ;;  %s8796_s12 = sphi %s8867_s12, %s10450_s12   ;;  %s8792_s11 = sphi %s8865_s11, %s10452_s11   ;;  %s8788_s10 = sphi %s8863_s10, %s10454_s10   ;;  %s8784_s30 = sphi %s8861_s30, %s10453_s30  }
   0xa   : > { %s6648_s14 = sadd.s32 4294967294, %s8796_s12   ;;  %s8886_s15 = sadd.s32 1, %s8796_s12  }
   0xb   : > { %10382 = sst [smem:[#allocation21_spill]] %s8886_s15  ;;  %s207_s16 = sadd.s32 1, %s8792_s11 }
   0xc   : > { %s204_s17 = ssub.s32 %s8796_s12, %s8886_s15  ;;  %p217_p0 = scmp.ne.s32.totalorder %s8792_s11, %s8788_s10 }
   0xd   : > { %p205_p1 = scmp.eq.s32.totalorder %s204_s17, 0  ;;  %p10350_p2 = scmp.eq.s32.totalorder %s8882_s13, 1 }
   0xe   : > { %p223_p3 = scmp.ne.s32.totalorder %s8788_s10, %s8784_s30  ;;  %p224_p4 = scmp.eq.s32.totalorder %s6648_s14, 1 }
   0xf   : > { %s8897_s18 = scalar_select %p205_p1, %s8792_s11, %s207_s16  }
  0x10   : > { %p8901_p5 = por %p10350_p2, %p217_p0  ;;  %p8905_p6 = por %p224_p4, %p223_p3 }
  0x11   : > { %10383 = sst [smem:[#allocation22_spill]] %s8897_s18  ;;  %p6649_p7 = scmp.ge.s32.totalorder %s8796_s12, 1 }
  0x12   : > { %s10384_s19 = scalar_select %p8901_p5, 1, 0 }
  0x13   : > { %s10385_s20 = scalar_select %p8905_p6, 1, 0 }
  0x14   : > { %p252_p8 = scmp.lt.s32.totalorder %s8796_s12, 3  ;;  %p10351_p10 = scmp.eq.s32.totalorder %s8882_s13, 0 }
  0x15   : > { %10386 = sst [smem:[#allocation23_spill]] %s10385_s20  ;;  %s8798_s22 = smov [#allocation7]  }
  0x16   : > { %p8913_p11 = pnand %p6649_p7, %p252_p8  ;;  %s280_s23 = sshll.u32 %s8798_s22, 4  ;;  %s281_s23 = int_to_ptr.vmem [resolvable:$true] %s280_s23 }
  0x17   : > { %s8799_s25 = smov [#allocation4]   ;;  %s10389_s3 = sld [smem:[#allocation31_spill]] }
  0x18   : > { %s10387_s21 = scalar_select %p8913_p11, 1, 0 }
  0x19   : > { %p7828_p12 = pneg %p8913_p11  ;;  %s264_s26 = sshll.u32 %s8799_s25, 4  ;;  %s8925_s26 = int_to_ptr.vmem [resolvable:$true] %s264_s26 }
  0x1b   : > { %p8921_p13 = pnand %p10351_p10, %p7828_p12 }
  0x1d   : > { %s8580_s29 = scalar_lea.hbm %s10389_s3, 8192  ;;  %p8935_p1 = pneg %p8921_p13 }
  0x1e   : > { %p8581_p0 = scmp.ne.s32.totalorder %s10389_s3, %s8580_s29  ;;  %p8587_p7 = scmp.lt.u32.totalorder %s8580_s29, %s10389_s3 }
  0x20   : > { %p8583_p3 = pnand %p8935_p1, %p8581_p0 }
  0x22   : > { %p8584_p4 = pneg %p8583_p3 }
  0x24   : > { %p8589_p8 = pnand %p8587_p7, %p8584_p4 }
  0x26   : > { %8592 = shalt.err (!%p8589_p8)
}
  0x27   : > { %s8593_s27 = scalar_lea.vmem %s281_s23, 8192  ;;  %p8601_p10 = scmp.lt.s32.totalorder %s281_s23, %s281_s23 }
  0x28   : > { %p8594_p12 = scmp.ne.s32.totalorder %s281_s23, %s8593_s27  ;;  %p8602_p6 = scmp.lt.s32.totalorder %s8593_s27, %s8593_s27 }
  0x2a   : > { %p8596_p2 = pnand %p8594_p12, %p8935_p1  ;;  %p8603_p5 = por %p8602_p6, %p8601_p10 }
  0x2c   : > { %p8597_p9 = pneg %p8596_p2 }
  0x2e   : > { %p8604_p11 = pnand %p8603_p5, %p8597_p9 }
  0x30   : > { %8607 = shalt.err (!%p8604_p11)
}
  0x31   : > { %s8800_s28 = smov 256   ;;  %s8801_s14 = smov 16  }
  0x32   : > { %7834 = dma.hbm_to_vmem [thread:$0]  (!%p8921_p13), %s10389_s3, 8192, %s281_s23, [#allocation8], %s8800_s28, %s8800_s28, %s8801_s14  }
  0x33   : > { %s8608_s18 = scalar_lea.hbm %s10341_s1, 1024 }
  0x34   : > { %p8609_p2 = scmp.ne.s32.totalorder %s10341_s1, %s8608_s18  ;;  %p8615_p9 = scmp.lt.u32.totalorder %s8608_s18, %s10341_s1 }
  0x36   : > { %p8611_p5 = pnand %p8609_p2, %p8935_p1 }
  0x38   : > { %p8612_p6 = pneg %p8611_p5 }
  0x3a   : > { %p8617_p10 = pnand %p8615_p9, %p8612_p6 }
  0x3c   : > { %8620 = shalt.err (!%p8617_p10)
}
  0x3d   : > { %s8621_s23 = scalar_lea.vmem %s8925_s26, 1024  ;;  %p8629_p4 = scmp.lt.s32.totalorder %s8925_s26, %s8925_s26 }
  0x3e   : > { %p8622_p11 = scmp.ne.s32.totalorder %s8925_s26, %s8621_s23  ;;  %p8630_p7 = scmp.lt.s32.totalorder %s8621_s23, %s8621_s23 }
  0x40   : > { %p8624_p0 = pnand %p8622_p11, %p8935_p1  ;;  %p8631_p8 = por %p8630_p7, %p8629_p4 }
  0x42   : > { %p8625_p3 = pneg %p8624_p0 }
  0x44   : > { %p8632_p12 = pnand %p8631_p8, %p8625_p3 }
  0x46   : > { %8635 = shalt.err (!%p8632_p12)
}
  0x47   : > { %s8802_s11 = smov 64   ;;  %s8803_s15 = smov 4  }
  0x48   : > { %7831 = dma.hbm_to_vmem [thread:$0]  (!%p8921_p13), %s10341_s1, 1024, %s8925_s26, [#allocation5], %s8802_s11, %s8802_s11, %s8803_s15  }
  0x49   : > { %s8804_s28 = smov [#allocation9]   ;;  %s8805_s16 = smov [#allocation10]  }
  0x4a   : > { %s296_s14 = sshll.u32 %s8804_s28, 4  ;;  %s313_s29 = sshll.u32 %s8805_s16, 4  ;;  %s297_s14 = int_to_ptr.vmem [resolvable:$true] %s296_s14  ;;  %s8974_s29 = int_to_ptr.vmem [resolvable:$true] %s313_s29 }
  0x4b   : > { %s8636_s27 = scalar_lea.hbm %s10345_s5, 1024 }
  0x4c   : > { %p8637_p2 = scmp.ne.s32.totalorder %s10345_s5, %s8636_s27  ;;  %p8643_p9 = scmp.lt.u32.totalorder %s8636_s27, %s10345_s5 }
  0x4e   : > { %p8639_p5 = pnand %p8637_p2, %p8935_p1 }
  0x50   : > { %p8640_p6 = pneg %p8639_p5 }
  0x52   : > { %p8645_p10 = pnand %p8643_p9, %p8640_p6 }
  0x54   : > { %8648 = shalt.err (!%p8645_p10)
}
  0x55   : > { %s8649_s20 = scalar_lea.vmem %s297_s14, 1024  ;;  %p8657_p4 = scmp.lt.s32.totalorder %s297_s14, %s297_s14 }
  0x56   : > { %p8650_p11 = scmp.ne.s32.totalorder %s297_s14, %s8649_s20  ;;  %p8658_p7 = scmp.lt.s32.totalorder %s8649_s20, %s8649_s20 }
  0x58   : > { %p8652_p0 = pnand %p8650_p11, %p8935_p1  ;;  %p8659_p8 = por %p8658_p7, %p8657_p4 }
  0x5a   : > { %p8653_p3 = pneg %p8652_p0 }
  0x5c   : > { %p8660_p12 = pnand %p8659_p8, %p8653_p3 }
  0x5e   : > { %8663 = shalt.err (!%p8660_p12)
}
  0x5f   : > { %7837 = dma.hbm_to_vmem [thread:$0]  (!%p8921_p13), %s10345_s5, 1024, %s297_s14, [#allocation8], %s8802_s11, %s8802_s11, %s8803_s15  }
  0x60   : > { %s8664_s25 = scalar_lea.hbm %s10347_s7, 32 }
  0x61   : > { %p8665_p2 = scmp.ne.s32.totalorder %s10347_s7, %s8664_s25  ;;  %p8671_p9 = scmp.lt.u32.totalorder %s8664_s25, %s10347_s7 }
  0x63   : > { %p8667_p5 = pnand %p8665_p2, %p8935_p1 }
  0x65   : > { %p8668_p6 = pneg %p8667_p5 }
  0x67   : > { %p8673_p10 = pnand %p8671_p9, %p8668_p6 }
  0x69   : > { %8676 = shalt.err (!%p8673_p10)
}
  0x6a   : > { %s8677_s11 = scalar_lea.vmem %s8974_s29, 32  ;;  %p8685_p4 = scmp.lt.s32.totalorder %s8974_s29, %s8974_s29 }
  0x6b   : > { %p8678_p11 = scmp.ne.s32.totalorder %s8974_s29, %s8677_s11  ;;  %p8686_p7 = scmp.lt.s32.totalorder %s8677_s11, %s8677_s11 }
  0x6d   : > { %p8680_p0 = pnand %p8678_p11, %p8935_p1  ;;  %p8687_p8 = por %p8686_p7, %p8685_p4 }
  0x6f   : > { %p8681_p3 = pneg %p8680_p0 }
  0x71   : > { %p8688_p12 = pnand %p8687_p8, %p8681_p3 }
  0x73   : > { %8691 = shalt.err (!%p8688_p12)
}
  0x74   : > { %7840 = dma.hbm_to_vmem [thread:$0]  (!%p8921_p13), %s10347_s7, 32, %s8974_s29, [#allocation11]  }
  0x75   : > { %p10391_p2 = scmp.ne.s32.totalorder %s10387_s21, 0 }
  0x77   : > { %333 = sbr.rel (%p10391_p2) target bundleno = 3208 (0xc88), region = 52 }
  0x7e   : > { %p10392_p5 = scmp.eq.s32.totalorder %s8882_s13, 0 }
  0x80   : > { %8763 = dma.done.wait (%p10392_p5), [#allocation5], 1024   ;;  %p10393_p1 = pmov %p10392_p5 }
  0x82   : > { %8765 = vsyncadd (%p10393_p1), [#allocation5], 4294966272  ;;  %p10394_p6 = pmov %p10393_p1 }
  0x83   : > { %p10395_p9 = pmov %p10393_p1 }
  0x84   : > { %8767 = dma.done.wait (%p10394_p6), [#allocation8], 9216  }
  0x85   : > { %8769 = vsyncadd (%p10395_p9), [#allocation8], 4294958080  ;;  %p10396_p10 = pmov %p10393_p1 }
  0x86   : > { %p10397_p13 = pmov %p10393_p1 }
  0x87   : > { %8771 = dma.done.wait (%p10396_p10), [#allocation11], 32  }
  0x88   : > { %8773 = vsyncadd (%p10397_p13), [#allocation11], 4294967264  ;;  %s375_s21 = sand.u32 1, %s8788_s10   ;;  %p380_p11 = scmp.lt.s32.totalorder %s8882_s13, 1 }
  0x89   : > { %s6660_s24 = sshll.u32 %s375_s21, 3  ;;  %p10398_p0 = scmp.ne.s32.totalorder %s8882_s13, 0 }
  0x8a   : > { %s381_s17 = scalar_select %p380_p11, %s8882_s13, 1 }
  0x8b   : > { %s9041_s16 = scalar_lea.vmem [#allocation12], %s6660_s24  ;;  %388 = sbr.rel (%p10398_p0) target bundleno = 146 (0x92), region = 72  ;;  %v389_v0 = vld [vmem:[#allocation10] sm:$0x3] (!%p10398_p0)  ;;  %vm393_vm0 = vcmask (!%p10398_p0), 1040384  }
  0x8c   : > { %s6661_s29 = sshll.u32 %s381_s17, 3  ;;  %v391_v1 = vld [vmem:[#allocation10] sm:$0x1] (!%p10398_p0)  ;;  %390 = vst [vmem:[#allocation2] sm:$0x3] (!%p10398_p0), %v389_v0 }
  0x8d   : > { %s9039_s28 = scalar_lea.vmem %s10340_s0, %s6661_s29  ;;  %v392_v2 = vpack.c.bf16 (!%p10398_p0), %v391_v1, %v391_v1  ;;  %vm394_vm1 = vsmask.f32 (!%p10398_p0), 256  ;;  %v396_v3 = vld [vmem:[#allocation3 + $0x1] sm:$0x1] (!%p10398_p0) }
  0x8e   : > { %vm395_vm2 = vmand (!%p10398_p0), %vm393_vm0, %vm394_vm1 }
  0x8f   : > { %v397_v4 = vsel (!%p10398_p0), %vm395_vm2, %v392_v2, %v396_v3 }
  0x90   : > { %398 = vst [vmem:[#allocation3 + $0x1] sm:$0x1] (!%p10398_p0), %v397_v4 }
  0x92 PF: > { %v7900_v5 = vld [vmem:[#allocation4] sm:$0xff]   ;;  %v10364_v6 = vmov 0.0   ;;  %v7901_v7 = vld [vmem:[#allocation4 + $0x8] sm:$0xff]   ;;  %vm8807_vm3 = vmmov 0   ;;  %v7902_v8 = vld [vmem:[#allocation4 + $0x10] sm:$0xff]   ;;  %vm508_vm4 = vcmask 1040384  }
  0x93   : > { %7486 = vmatprep.subr.bf16.mxu0 %v10364_v6  ;;  %7502 = vmatprep.mubr.msk.bf16.mxu0 %vm8807_vm3, %v10364_v6  ;;  %v7903_v9 = vld [vmem:[#allocation4 + $0x18] sm:$0xff]   ;;  %v7911_v10 = vld [vmem:[#allocation7 + $0x4] ss:$16 sps:$4 sm:$0xff]   ;;  %v7913_v11 = vld [vmem:[#allocation7] ss:$16 sps:$4 sm:$0xff]   ;;  %p7335_p3 = scmp.ne.s32.totalorder %s8882_s13, 1 }
  0x94   : > { %7487 = vmatpush3.bf16.msra.mxu0 %v7900_v5  ;;  %946 = vmatprep.subr.bf16.mxu1 %v7911_v10  ;;  %v7917_v12 = vld [vmem:[#allocation7 + $0x24] ss:$16 sps:$4 sm:$0xff]   ;;  %v7919_v13 = vld [vmem:[#allocation7 + $0x20] ss:$16 sps:$4 sm:$0xff]   ;;  %v7905_v17 = vld [vmem:[#allocation4 + $0x28] sm:$0xff]  }
  0x95   : > { %7488 = vmatprep.subr.bf16.mxu0 %v10364_v6  ;;  %947 = vmatpush1.bf16.msra.mxu1 %v7913_v11  ;;  %v7904_v14 = vld [vmem:[#allocation4 + $0x20] sm:$0xff]   ;;  %v7906_v20 = vld [vmem:[#allocation4 + $0x30] sm:$0xff]   ;;  %v7907_v22 = vld [vmem:[#allocation4 + $0x38] sm:$0xff]   ;;  %vm509_vm5 = vsmask.f32 256 }
  0x96   : > { %948 = vmatprep.subr.bf16.mxu1 %v7917_v12  ;;  %v7923_v15 = vld [vmem:[#allocation7 + $0x44] ss:$16 sps:$4 sm:$0xff]   ;;  %v7925_v16 = vld [vmem:[#allocation7 + $0x40] ss:$16 sps:$4 sm:$0xff]   ;;  %v399_v24 = vld [vmem:[%s9039_s28] sm:$0x1] }
  0x97   : > { %v7929_v18 = vld [vmem:[#allocation7 + $0x64] ss:$16 sps:$4 sm:$0xff]   ;;  %v7931_v19 = vld [vmem:[#allocation7 + $0x60] ss:$16 sps:$4 sm:$0xff]   ;;  %v7910_v26 = vld [vmem:[#allocation7 + $0xc] ss:$16 sps:$4 sm:$0xff]   ;;  %v400_v27 = vpack.c.bf16 %v399_v24, %v399_v24 }
  0x98   : > { %7489 = vmatpush3.bf16.msra.mxu0 %v7901_v7  ;;  %v7935_v21 = vld [vmem:[#allocation7 + $0x84] ss:$16 sps:$4 sm:$0xff]   ;;  %v7937_v23 = vld [vmem:[#allocation7 + $0x80] ss:$16 sps:$4 sm:$0xff]   ;;  %v7908_v29 = vld [vmem:[#allocation7 + $0x8] ss:$16 sps:$4 sm:$0xff]  }
  0x99   : > { %7490 = vmatprep.subr.bf16.mxu0 %v10364_v6  ;;  %949 = vmatpush1.bf16.msra.mxu1 %v7919_v13  ;;  %v7941_v25 = vld [vmem:[#allocation7 + $0xa4] ss:$16 sps:$4 sm:$0xff]   ;;  %v7943_v28 = vld [vmem:[#allocation7 + $0xa0] ss:$16 sps:$4 sm:$0xff]   ;;  %v7916_v31 = vld [vmem:[#allocation7 + $0x2c] ss:$16 sps:$4 sm:$0xff]  }
  0x9a   : > { %950 = vmatprep.subr.bf16.mxu1 %v7923_v15  ;;  %v7947_v30 = vld [vmem:[#allocation7 + $0xc4] ss:$16 sps:$4 sm:$0xff]   ;;  %v7949_v32 = vld [vmem:[#allocation7 + $0xc0] ss:$16 sps:$4 sm:$0xff]   ;;  %v7914_v33 = vld [vmem:[#allocation7 + $0x28] ss:$16 sps:$4 sm:$0xff]  }
  0x9b   : > { %v7953_v34 = vld [vmem:[#allocation7 + $0xe4] ss:$16 sps:$4 sm:$0xff]   ;;  %v7922_v35 = vld [vmem:[#allocation7 + $0x4c] ss:$16 sps:$4 sm:$0xff]   ;;  %v7920_v36 = vld [vmem:[#allocation7 + $0x48] ss:$16 sps:$4 sm:$0xff]  }
  0x9c   : > { %7491 = vmatpush3.bf16.msra.mxu0 %v7902_v8  ;;  %v7928_v37 = vld [vmem:[#allocation7 + $0x6c] ss:$16 sps:$4 sm:$0xff]   ;;  %v7955_v38 = vld [vmem:[#allocation7 + $0xe0] ss:$16 sps:$4 sm:$0xff]   ;;  %v7959_v39 = vld [vmem:[#allocation7 + $0x104] ss:$16 sps:$4 sm:$0xff]  }
  0x9d   : > { %7492 = vmatprep.subr.bf16.mxu0 %v10364_v6  ;;  %951 = vmatpush1.bf16.msra.mxu1 %v7925_v16  ;;  %v7961_v40 = vld [vmem:[#allocation7 + $0x100] ss:$16 sps:$4 sm:$0xff]   ;;  %v7926_v41 = vld [vmem:[#allocation7 + $0x68] ss:$16 sps:$4 sm:$0xff]   ;;  %v7965_v42 = vld [vmem:[#allocation7 + $0x124] ss:$16 sps:$4 sm:$0xff]  }
  0x9e   : > { %952 = vmatprep.subr.bf16.mxu1 %v7929_v18  ;;  %v7934_v43 = vld [vmem:[#allocation7 + $0x8c] ss:$16 sps:$4 sm:$0xff]   ;;  %v7967_v44 = vld [vmem:[#allocation7 + $0x120] ss:$16 sps:$4 sm:$0xff]   ;;  %v7932_v45 = vld [vmem:[#allocation7 + $0x88] ss:$16 sps:$4 sm:$0xff]  }
  0x9f   : > { %v7971_v46 = vld [vmem:[#allocation7 + $0x144] ss:$16 sps:$4 sm:$0xff]   ;;  %v7940_v47 = vld [vmem:[#allocation7 + $0xac] ss:$16 sps:$4 sm:$0xff]   ;;  %v7973_v48 = vld [vmem:[#allocation7 + $0x140] ss:$16 sps:$4 sm:$0xff]  }
  0xa0   : > { %7493 = vmatpush3.bf16.msra.mxu0 %v7903_v9  ;;  %v7938_v49 = vld [vmem:[#allocation7 + $0xa8] ss:$16 sps:$4 sm:$0xff]   ;;  %v7946_v50 = vld [vmem:[#allocation7 + $0xcc] ss:$16 sps:$4 sm:$0xff]   ;;  %v9072_v62 = vld [vmem:[#allocation7 + $0x164] ss:$16 sps:$4 sm:$0xff]  }
  0xa1   : > { %7494 = vmatprep.subr.bf16.mxu0 %v10364_v6  ;;  %953 = vmatpush1.bf16.msra.mxu1 %v7931_v19  ;;  %v7944_v51 = vld [vmem:[#allocation7 + $0xc8] ss:$16 sps:$4 sm:$0xff]   ;;  %v7952_v52 = vld [vmem:[#allocation7 + $0xec] ss:$16 sps:$4 sm:$0xff]   ;;  %v9075_v63 = vld [vmem:[#allocation7 + $0x160] ss:$16 sps:$4 sm:$0xff]  }
  0xa2   : > { %954 = vmatprep.subr.bf16.mxu1 %v7935_v21  ;;  %v7950_v53 = vld [vmem:[#allocation7 + $0xe8] ss:$16 sps:$4 sm:$0xff]   ;;  %v7958_v54 = vld [vmem:[#allocation7 + $0x10c] ss:$16 sps:$4 sm:$0xff]   ;;  %v9084_v2 = vld [vmem:[#allocation7 + $0x184] ss:$16 sps:$4 sm:$0xff]  }
  0xa3   : > { %v7956_v55 = vld [vmem:[#allocation7 + $0x108] ss:$16 sps:$4 sm:$0xff]   ;;  %v9056_v56 = vld [vmem:[#allocation7 + $0x12c] ss:$16 sps:$4 sm:$0xff]   ;;  %v9087_v3 = vld [vmem:[#allocation7 + $0x180] ss:$16 sps:$4 sm:$0xff]  }
  0xa4   : > { %7495 = vmatpush3.bf16.msra.mxu0 %v7904_v14  ;;  %v9058_v57 = vld [vmem:[#allocation7 + $0x128] ss:$16 sps:$4 sm:$0xff]   ;;  %v9060_v58 = vld [vmem:[#allocation7 + $0x14c] ss:$16 sps:$4 sm:$0xff]   ;;  %v9096_v7 = vld [vmem:[#allocation7 + $0x1a4] ss:$16 sps:$4 sm:$0xff]  }
  0xa5   : > { %7496 = vmatprep.subr.bf16.mxu0 %v10364_v6  ;;  %955 = vmatpush1.bf16.msra.mxu1 %v7937_v23  ;;  %v9063_v59 = vld [vmem:[#allocation7 + $0x148] ss:$16 sps:$4 sm:$0xff]   ;;  %v9068_v60 = vld [vmem:[#allocation7 + $0x16c] ss:$16 sps:$4 sm:$0xff]   ;;  %v9099_v8 = vld [vmem:[#allocation7 + $0x1a0] ss:$16 sps:$4 sm:$0xff]  }
  0xa6   : > { %956 = vmatprep.subr.bf16.mxu1 %v7941_v25  ;;  %v9070_v61 = vld [vmem:[#allocation7 + $0x168] ss:$16 sps:$4 sm:$0xff]   ;;  %v9080_v0 = vld [vmem:[#allocation7 + $0x18c] ss:$16 sps:$4 sm:$0xff]   ;;  %v9108_v11 = vld [vmem:[#allocation7 + $0x1c4] ss:$16 sps:$4 sm:$0xff]  }
  0xa7   : > { %v9082_v1 = vld [vmem:[#allocation7 + $0x188] ss:$16 sps:$4 sm:$0xff]   ;;  %v9092_v4 = vld [vmem:[#allocation7 + $0x1ac] ss:$16 sps:$4 sm:$0xff]   ;;  %v9111_v12 = vld [vmem:[#allocation7 + $0x1c0] ss:$16 sps:$4 sm:$0xff]  }
  0xa8   : > { %7497 = vmatpush3.bf16.msra.mxu0 %v7905_v17  ;;  %v9094_v5 = vld [vmem:[#allocation7 + $0x1a8] ss:$16 sps:$4 sm:$0xff]   ;;  %v9104_v9 = vld [vmem:[#allocation7 + $0x1cc] ss:$16 sps:$4 sm:$0xff]   ;;  %v9120_v15 = vld [vmem:[#allocation7 + $0x1e4] ss:$16 sps:$4 sm:$0xff]  }
  0xa9   : > { %7498 = vmatprep.subr.bf16.mxu0 %v10364_v6  ;;  %957 = vmatpush1.bf16.msra.mxu1 %v7943_v28  ;;  %v9106_v10 = vld [vmem:[#allocation7 + $0x1c8] ss:$16 sps:$4 sm:$0xff]   ;;  %v9116_v13 = vld [vmem:[#allocation7 + $0x1ec] ss:$16 sps:$4 sm:$0xff]   ;;  %v9122_v16 = vld [vmem:[#allocation7 + $0x1e0] ss:$16 sps:$4 sm:$0xff]  }
  0xaa   : > { %958 = vmatprep.subr.bf16.mxu1 %v7947_v30  ;;  %v9118_v14 = vld [vmem:[#allocation7 + $0x1e8] ss:$16 sps:$4 sm:$0xff]   ;;  %v417_v17 = vld [vmem:[%s10342_s2] sm:$0x1]  ;;  %vm9133_vm6 = vmand %vm508_vm4, %vm509_vm5  ;;  %v8808_v28 = vmov 1966171168   ;;  %v592_v30 = vlaneseq }
  0xab   : > { %v511_v25 = vld [vmem:[#allocation3] sm:$0x1] }
  0xac   : > { %7499 = vmatpush3.bf16.msra.mxu0 %v7906_v20 }
  0xad   : > { %7500 = vmatprep.subr.bf16.mxu0 %v10364_v6  ;;  %959 = vmatpush1.bf16.msra.mxu1 %v7949_v32  ;;  %v9139_v32 = vshrl.u32 %v592_v30, 7 }
  0xae   : > { %960 = vmatprep.subr.bf16.mxu1 %v7953_v34 }
  0xaf   : > { %v9192_v30 = vsub.s32 3, %v9139_v32 }
  0xb0   : > { %7501 = vmatpush3.bf16.msra.mxu0 %v7907_v22 }
  0xb1   : > { %987 = vmatprep.subr.bf16.mxu0 %v7910_v26  ;;  %961 = vmatpush1.bf16.msra.mxu1 %v7955_v38 }
  0xb2   : > { %962 = vmatprep.subr.bf16.mxu1 %v7959_v39  ;;  %v8005_v39 = vld [vmem:[#allocation4 + $0x8] sm:$0xff]  }
  0xb3   : > { %7503 = vmatmul.mubr.bf16.vlgmr.msra.gmra.mrb[0].mxu0 %v400_v27 }
  0xb4   : > { %988 = vmatpush1.bf16.msra.mxu0 %v7908_v29  ;;  %v590_v29 = vunpack.c.l.s4 %v8808_v28 }
  0xb5   : > { %989 = vmatprep.subr.bf16.mxu0 %v7916_v31  ;;  %963 = vmatpush1.bf16.msra.mxu1 %v7961_v40  ;;  %v8006_v40 = vld [vmem:[#allocation4 + $0x10] sm:$0xff]  }
  0xb6   : > { %964 = vmatprep.subr.bf16.mxu1 %v7965_v42  ;;  %v591_v31 = vunpack.c.0.s8 %v590_v29  ;;  %v8008_v42 = vld [vmem:[#allocation4 + $0x20] sm:$0xff]  }
  0xb8   : > { %990 = vmatpush1.bf16.msra.mxu0 %v7914_v33  ;;  %v9142_v34 = vsub.s32 %v591_v31, %v9139_v32 }
  0xb9   : > { %991 = vmatprep.subr.bf16.mxu0 %v7922_v35  ;;  %965 = vmatpush1.bf16.msra.mxu1 %v7967_v44  ;;  %v8010_v44 = vld [vmem:[#allocation4 + $0x30] sm:$0xff]  }
  0xba   : > { %966 = vmatprep.subr.bf16.mxu1 %v7971_v46  ;;  %v1165_v46 = vld [vmem:[%s9039_s28 + $0x1] sm:$0x1] }
  0xbc   : > { %992 = vmatpush1.bf16.msra.mxu0 %v7920_v36 }
  0xbd   : > { %993 = vmatprep.subr.bf16.mxu0 %v7928_v37  ;;  %967 = vmatpush1.bf16.msra.mxu1 %v7973_v48  ;;  %v8004_v37 = vld [vmem:[#allocation4] sm:$0xff]   ;;  %v8540_v48 = vld [vmem:[#allocation7 + $0xc] ss:$16 sps:$4 sm:$0xff]  }
  0xbe   : > { %968 = vmatprep.subr.bf16.mxu1 %v9072_v62 }
  0xc0   : > { %994 = vmatpush1.bf16.msra.mxu0 %v7926_v41  ;;  %v8007_v41 = vld [vmem:[#allocation4 + $0x18] sm:$0xff]  }
  0xc1   : > { %995 = vmatprep.subr.bf16.mxu0 %v7934_v43  ;;  %969 = vmatpush1.bf16.msra.mxu1 %v9075_v63  ;;  %v8009_v43 = vld [vmem:[#allocation4 + $0x28] sm:$0xff]  }
  0xc2   : > { %970 = vmatprep.subr.bf16.mxu1 %v9084_v2 }
  0xc4   : > { %996 = vmatpush1.bf16.msra.mxu0 %v7932_v45  ;;  %v8011_v45 = vld [vmem:[#allocation4 + $0x38] sm:$0xff]  }
  0xc5   : > { %997 = vmatprep.subr.bf16.mxu0 %v7940_v47  ;;  %971 = vmatpush1.bf16.msra.mxu1 %v9087_v3  ;;  %v1166_v47 = vpack.c.bf16 %v1165_v46, %v1165_v46 }
  0xc6   : > { %972 = vmatprep.subr.bf16.mxu1 %v9096_v7 }
  0xc8   : > { %998 = vmatpush1.bf16.msra.mxu0 %v7938_v49  ;;  %v8541_v49 = vld [vmem:[#allocation7 + $0x8] ss:$16 sps:$4 sm:$0xff]  }
  0xc9   : > { %999 = vmatprep.subr.bf16.mxu0 %v7946_v50  ;;  %973 = vmatpush1.bf16.msra.mxu1 %v9099_v8  ;;  %v8542_v50 = vld [vmem:[#allocation7 + $0x2c] ss:$16 sps:$4 sm:$0xff]  }
  0xca   : > { %974 = vmatprep.subr.bf16.mxu1 %v9108_v11 }
  0xcc   : > { %1000 = vmatpush1.bf16.msra.mxu0 %v7944_v51  ;;  %v8543_v51 = vld [vmem:[#allocation7 + $0x28] ss:$16 sps:$4 sm:$0xff]  }
  0xcd   : > { %1001 = vmatprep.subr.bf16.mxu0 %v7952_v52  ;;  %975 = vmatpush1.bf16.msra.mxu1 %v9111_v12  ;;  %v8544_v52 = vld [vmem:[#allocation7 + $0x4c] ss:$16 sps:$4 sm:$0xff]  }
  0xce   : > { %976 = vmatprep.subr.bf16.mxu1 %v9120_v15 }
  0xd0   : > { %1002 = vmatpush1.bf16.msra.mxu0 %v7950_v53  ;;  %v8545_v53 = vld [vmem:[#allocation7 + $0x48] ss:$16 sps:$4 sm:$0xff]  }
  0xd1   : > { %1003 = vmatprep.subr.bf16.mxu0 %v7958_v54  ;;  %977 = vmatpush1.bf16.msra.mxu1 %v9122_v16  ;;  %v8546_v54 = vld [vmem:[#allocation7 + $0x6c] ss:$16 sps:$4 sm:$0xff]  }
  0xd2   : > { %7506 = vmatprep.subr.bf16.mxu1 %v10364_v6 }
  0xd4   : > { %1004 = vmatpush1.bf16.msra.mxu0 %v7956_v55  ;;  %v8547_v55 = vld [vmem:[#allocation7 + $0x68] ss:$16 sps:$4 sm:$0xff]  }
  0xd5   : > { %1005 = vmatprep.subr.bf16.mxu0 %v9056_v56 }
  0xd8   : > { %1006 = vmatpush1.bf16.msra.mxu0 %v9058_v57 }
  0xd9   : > { %1007 = vmatprep.subr.bf16.mxu0 %v9060_v58 }
  0xdc   : > { %1008 = vmatpush1.bf16.msra.mxu0 %v9063_v59 }
  0xdd   : > { %1009 = vmatprep.subr.bf16.mxu0 %v9068_v60 }
  0xe0   : > { %1010 = vmatpush1.bf16.msra.mxu0 %v9070_v61 }
  0xe1   : > { %1011 = vmatprep.subr.bf16.mxu0 %v9080_v0 }
  0xe4   : > { %1012 = vmatpush1.bf16.msra.mxu0 %v9082_v1 }
  0xe5   : > { %1013 = vmatprep.subr.bf16.mxu0 %v9092_v4 }
  0xe8   : > { %1014 = vmatpush1.bf16.msra.mxu0 %v9094_v5 }
  0xe9   : > { %1015 = vmatprep.subr.bf16.mxu0 %v9104_v9 }
  0xec   : > { %1016 = vmatpush1.bf16.msra.mxu0 %v9106_v10 }
  0xed   : > { %1017 = vmatprep.subr.bf16.mxu0 %v9116_v13 }
  0xf0   : > { %1018 = vmatpush1.bf16.msra.mxu0 %v9118_v14 }
  0xf1   : > { %7526 = vmatprep.subr.bf16.mxu0 %v10364_v6 }
 0x186   : > { %v500_v18 = vpop.f32.mrb[0].mxu0 }
 0x187   : > { %v501_v19 = vadd.f32 %v500_v18, %v417_v17  ;;  %v7504_v20 = vpop.f32.mrb[1].mxu0  ;;  %v8548_v17 = vld [vmem:[#allocation7 + $0x8c] ss:$16 sps:$4 sm:$0xff]   ;;  %v8549_v18 = vld [vmem:[#allocation7 + $0x88] ss:$16 sps:$4 sm:$0xff]  }
 0x188   : > { %v503_v21 = vpop.f32.mrb[2].mxu0  ;;  %v8551_v20 = vld [vmem:[#allocation7 + $0xa8] ss:$16 sps:$4 sm:$0xff]  }
 0x189   : > { %v506_v22 = vmax.f32 %v501_v19, 0.0  ;;  %v7505_v23 = vpop.f32.mrb[3].mxu0  ;;  %v8550_v19 = vld [vmem:[#allocation7 + $0xac] ss:$16 sps:$4 sm:$0xff]  }
 0x18a   : > { %v8552_v21 = vld [vmem:[#allocation7 + $0xcc] ss:$16 sps:$4 sm:$0xff]  }
 0x18b   : > { %v507_v26 = vpack.c.bf16 %v506_v22, %v506_v22  ;;  %v8553_v22 = vld [vmem:[#allocation7 + $0xc8] ss:$16 sps:$4 sm:$0xff]   ;;  %v8554_v23 = vld [vmem:[#allocation7 + $0xec] ss:$16 sps:$4 sm:$0xff]  }
 0x18d   : > { %v512_v27 = vsel %vm9133_vm6, %v507_v26, %v511_v25  ;;  %v8555_v25 = vld [vmem:[#allocation7 + $0xe8] ss:$16 sps:$4 sm:$0xff]   ;;  %v8556_v26 = vld [vmem:[#allocation7 + $0x10c] ss:$16 sps:$4 sm:$0xff]  }
 0x18e   : > { %513 = vst [vmem:[#allocation3] sm:$0x1] %v512_v27  ;;  %v8557_v27 = vld [vmem:[#allocation7 + $0x108] ss:$16 sps:$4 sm:$0xff]  }
 0x195   : > { %v6671_v33 = vld.sshfl [vmem:[#allocation3] sm:$0x11 pattern:$0x75316420] }
 0x196   : > { %v588_v35 = vcombine.high %v6671_v33, %v6671_v33  ;;  %v595_v38 = vrot.slane %v6671_v33, %v9142_v34 }
 0x198   : > { %v602_v36 = vrot.slane %v588_v35, %v9142_v34 }
 0x19a   : > { %978 = vmatprep.mubr.bf16.mxu1 %v602_v36  ;;  %1019 = vmatprep.mubr.bf16.mxu0 %v602_v36 }
 0x19b   : > { %979 = vmatmul.mubr.bf16.vlgmr.msra.gmra.mrb[0].mxu1 %v595_v38  ;;  %1020 = vmatmul.mubr.bf16.vlgmr.msra.gmra.mrb[4].mxu0 %v595_v38 }
 0x19c   : > { %7527 = vmatpush3.bf16.msra.mxu0 %v8004_v37  ;;  %7542 = vmatprep.mubr.msk.bf16.mxu0 %vm8807_vm3, %v10364_v6 }
 0x19d   : > { %7528 = vmatprep.subr.bf16.mxu0 %v10364_v6  ;;  %7522 = vmatprep.mubr.msk.bf16.mxu1 %vm8807_vm3, %v10364_v6 }
 0x1a0   : > { %7529 = vmatpush3.bf16.msra.mxu0 %v8005_v39 }
 0x1a1   : > { %7530 = vmatprep.subr.bf16.mxu0 %v10364_v6 }
 0x1a4   : > { %7531 = vmatpush3.bf16.msra.mxu0 %v8006_v40 }
 0x1a5   : > { %7532 = vmatprep.subr.bf16.mxu0 %v10364_v6 }
 0x1a8   : > { %7533 = vmatpush3.bf16.msra.mxu0 %v8007_v41 }
 0x1a9   : > { %7534 = vmatprep.subr.bf16.mxu0 %v10364_v6 }
 0x1ac   : > { %7535 = vmatpush3.bf16.msra.mxu0 %v8008_v42 }
 0x1ad   : > { %7536 = vmatprep.subr.bf16.mxu0 %v10364_v6 }
 0x1b0   : > { %7537 = vmatpush3.bf16.msra.mxu0 %v8009_v43 }
 0x1b1   : > { %7538 = vmatprep.subr.bf16.mxu0 %v10364_v6 }
 0x1b4   : > { %7539 = vmatpush3.bf16.msra.mxu0 %v8010_v44  ;;  %v9196_v44 = vsub.s32 2, %v9139_v32 }
 0x1b5   : > { %7540 = vmatprep.subr.bf16.mxu0 %v10364_v6 }
 0x1b8   : > { %7541 = vmatpush3.bf16.msra.mxu0 %v8011_v45 }
 0x1b9   : > { %1750 = vmatprep.subr.bf16.mxu0 %v8540_v48 }
 0x1bb   : > { %7543 = vmatmul.mubr.bf16.vlgmr.msra.gmra.mrb[8].mxu0 %v1166_v47 }
 0x1bc   : > { %1751 = vmatpush1.bf16.msra.mxu0 %v8541_v49 }
 0x1bd   : > { %1752 = vmatprep.subr.bf16.mxu0 %v8542_v50 }
 0x1c0   : > { %1753 = vmatpush1.bf16.msra.mxu0 %v8543_v51 }
 0x1c1   : > { %1754 = vmatprep.subr.bf16.mxu0 %v8544_v52 }
 0x1c4   : > { %1755 = vmatpush1.bf16.msra.mxu0 %v8545_v53 }
 0x1c5   : > { %1756 = vmatprep.subr.bf16.mxu0 %v8546_v54 }
 0x1c8   : > { %1757 = vmatpush1.bf16.msra.mxu0 %v8547_v55  ;;  %v1047_v55 = vld [vmem:[#allocation2 + $0x1] sm:$0x1] }
 0x1c9   : > { %1758 = vmatprep.subr.bf16.mxu0 %v8548_v17 }
 0x1cc   : > { %1759 = vmatpush1.bf16.msra.mxu0 %v8549_v18 }
 0x1cd   : > { %1760 = vmatprep.subr.bf16.mxu0 %v8550_v19 }
 0x1d0   : > { %1761 = vmatpush1.bf16.msra.mxu0 %v8551_v20 }
 0x1d1   : > { %1762 = vmatprep.subr.bf16.mxu0 %v8552_v21  ;;  %v1183_v21 = vld [vmem:[%s10342_s2] sm:$0x1] }
 0x1d4   : > { %1763 = vmatpush1.bf16.msra.mxu0 %v8553_v22 }
 0x1d5   : > { %1764 = vmatprep.subr.bf16.mxu0 %v8554_v23 }
 0x1d8   : > { %1765 = vmatpush1.bf16.msra.mxu0 %v8555_v25 }
 0x1d9   : > { %1766 = vmatprep.subr.bf16.mxu0 %v8556_v26 }
 0x1dc   : > { %1767 = vmatpush1.bf16.msra.mxu0 %v8557_v27 }
 0x1dd   : > { %1768 = vmatprep.subr.bf16.mxu0 %v9056_v56  ;;  %v8012_v56 = vld [vmem:[#allocation9] sm:$0xff]  }
 0x1de   : > { %7507 = vmatpush3.bf16.msra.mxu1 %v8012_v56 }
 0x1df   : > { %7508 = vmatprep.subr.bf16.mxu1 %v10364_v6 }
 0x1e0   : > { %1769 = vmatpush1.bf16.msra.mxu0 %v9058_v57  ;;  %v8013_v57 = vld [vmem:[#allocation9 + $0x8] sm:$0xff]  }
 0x1e1   : > { %1770 = vmatprep.subr.bf16.mxu0 %v9060_v58  ;;  %v8014_v58 = vld [vmem:[#allocation9 + $0x10] sm:$0xff]  }
 0x1e2   : > { %7509 = vmatpush3.bf16.msra.mxu1 %v8013_v57 }
 0x1e3   : > { %7510 = vmatprep.subr.bf16.mxu1 %v10364_v6 }
 0x1e4   : > { %1771 = vmatpush1.bf16.msra.mxu0 %v9063_v59  ;;  %v8015_v59 = vld [vmem:[#allocation9 + $0x18] sm:$0xff]  }
 0x1e5   : > { %1772 = vmatprep.subr.bf16.mxu0 %v9068_v60  ;;  %v8016_v60 = vld [vmem:[#allocation9 + $0x20] sm:$0xff]  }
 0x1e6   : > { %7511 = vmatpush3.bf16.msra.mxu1 %v8014_v58 }
 0x1e7   : > { %7512 = vmatprep.subr.bf16.mxu1 %v10364_v6 }
 0x1e8   : > { %1773 = vmatpush1.bf16.msra.mxu0 %v9070_v61  ;;  %v8017_v61 = vld [vmem:[#allocation9 + $0x28] sm:$0xff]  }
 0x1e9   : > { %1774 = vmatprep.subr.bf16.mxu0 %v9080_v0  ;;  %v8018_v0 = vld [vmem:[#allocation9 + $0x30] sm:$0xff]  }
 0x1ea   : > { %7513 = vmatpush3.bf16.msra.mxu1 %v8015_v59  ;;  %v1274_v59 = vld [vmem:[#allocation3] sm:$0x1] }
 0x1eb   : > { %7514 = vmatprep.subr.bf16.mxu1 %v10364_v6 }
 0x1ec   : > { %1775 = vmatpush1.bf16.msra.mxu0 %v9082_v1  ;;  %v8019_v1 = vld [vmem:[#allocation9 + $0x38] sm:$0xff]  }
 0x1ed   : > { %1776 = vmatprep.subr.bf16.mxu0 %v9092_v4  ;;  %v8558_v4 = vld [vmem:[#allocation7 + $0x4] ss:$16 sps:$4 sm:$0xff]  }
 0x1ee   : > { %7515 = vmatpush3.bf16.msra.mxu1 %v8016_v60 }
 0x1ef   : > { %7516 = vmatprep.subr.bf16.mxu1 %v10364_v6 }
 0x1f0   : > { %1777 = vmatpush1.bf16.msra.mxu0 %v9094_v5  ;;  %v9181_v5 = vsub.s32 0, %v9139_v32 }
 0x1f1   : > { %1778 = vmatprep.subr.bf16.mxu0 %v9104_v9  ;;  %v579_v9 = vld [vmem:[%s10344_s4] sm:$0xf] }
 0x1f2   : > { %7517 = vmatpush3.bf16.msra.mxu1 %v8017_v61  ;;  %v941_v43 = vrot.slane %v579_v9, %v9192_v30  ;;  %v937_v46 = vrot.slane %v579_v9, %v9196_v44 }
 0x1f3   : > { %7518 = vmatprep.subr.bf16.mxu1 %v10364_v6 }
 0x1f4   : > { %1779 = vmatpush1.bf16.msra.mxu0 %v9106_v10  ;;  %v9187_v10 = vsub.s32 1, %v9139_v32 }
 0x1f5   : > { %1780 = vmatprep.subr.bf16.mxu0 %v9116_v13  ;;  %v929_v13 = vrot.slane %v579_v9, %v9181_v5 }
 0x1f6   : > { %7519 = vmatpush3.bf16.msra.mxu1 %v8018_v0 }
 0x1f7   : > { %7520 = vmatprep.subr.bf16.mxu1 %v10364_v6 }
 0x1f8   : > { %1781 = vmatpush1.bf16.msra.mxu0 %v9118_v14  ;;  %v933_v14 = vrot.slane %v579_v9, %v9187_v10 }
 0x1f9   : > { %7566 = vmatprep.subr.bf16.mxu0 %v10364_v6 }
 0x1fa   : > { %7521 = vmatpush3.bf16.msra.mxu1 %v8019_v1 }
 0x1fb   : > { %1709 = vmatprep.subr.bf16.mxu1 %v8558_v4  ;;  %v1056_v4 = vld [vmem:[#allocation3 + $0x1] sm:$0x1] }
 0x26e   : > { %v980_v28 = vpop.f32.mrb[0].mxu1  ;;  %v1021_v29 = vpop.f32.mrb[4].mxu0 }
 0x26f   : > { %v981_v31 = vadd.f32 %v980_v28, %v929_v13  ;;  %v982_v33 = vpop.f32.mrb[1].mxu1  ;;  %v1023_v35 = vpop.f32.mrb[5].mxu0  ;;  %v1022_v48 = vadd.f32 %v1021_v29, %v937_v46  ;;  %v8560_v28 = vld [vmem:[#allocation7 + $0x24] ss:$16 sps:$4 sm:$0xff]   ;;  %v8561_v29 = vld [vmem:[#allocation7 + $0x20] ss:$16 sps:$4 sm:$0xff]  }
 0x270   : > { %v983_v36 = vadd.f32 %v982_v33, %v933_v14  ;;  %v984_v37 = vpop.f32.mrb[2].mxu1  ;;  %v1025_v38 = vpop.f32.mrb[6].mxu0  ;;  %v1024_v45 = vadd.f32 %v1023_v35, %v941_v43  ;;  %v8559_v14 = vld [vmem:[#allocation7] ss:$16 sps:$4 sm:$0xff]   ;;  %v8021_v43 = vld [vmem:[#allocation4 + $0x8] sm:$0xff]  }
 0x271   : > { %v6736_v39 = vmul.f32 -1.442695, %v981_v31  ;;  %v985_v40 = vpop.f32.mrb[3].mxu1  ;;  %v1026_v41 = vpop.f32.mrb[7].mxu0  ;;  %v8562_v31 = vld [vmem:[#allocation7 + $0x44] ss:$16 sps:$4 sm:$0xff]  }
 0x272   : > { %v6737_v42 = vmul.f32 -1.442695, %v983_v36  ;;  %v6738_v47 = vmul.f32 -1.442695, %v1024_v45  ;;  %v8563_v35 = vld [vmem:[#allocation7 + $0x40] ss:$16 sps:$4 sm:$0xff]  }
 0x273   : > { %8412 = vpow2.f32 %v6736_v39  ;;  %v8564_v37 = vld [vmem:[#allocation7 + $0x64] ss:$16 sps:$4 sm:$0xff]   ;;  %v8565_v40 = vld [vmem:[#allocation7 + $0x60] ss:$16 sps:$4 sm:$0xff]  }
 0x274   : > { %8414 = vpow2.f32 %v6737_v42  ;;  %v8020_v39 = vld [vmem:[#allocation4] sm:$0xff]  }
 0x275   : > { %8416 = vpow2.f32 %v6738_v47  ;;  %v8566_v42 = vld [vmem:[#allocation7 + $0x84] ss:$16 sps:$4 sm:$0xff]   ;;  %v8567_v45 = vld [vmem:[#allocation7 + $0x80] ss:$16 sps:$4 sm:$0xff]  }
 0x276   : > { %8418 = vtanh.f32 %v1022_v48  ;;  %v8568_v46 = vld [vmem:[#allocation7 + $0xa4] ss:$16 sps:$4 sm:$0xff]   ;;  %v8569_v48 = vld [vmem:[#allocation7 + $0xa0] ss:$16 sps:$4 sm:$0xff]  }
 0x277   : > { %v8022_v47 = vld [vmem:[#allocation4 + $0x10] sm:$0xff]  }
 0x27d   : > { %v8413_v49 = vpop.eup %8412 }
 0x27e   : > { %v8415_v50 = vpop.eup %8414  ;;  %v1031_v51 = vadd.f32 1.0, %v8413_v49  ;;  %v8570_v49 = vld [vmem:[#allocation7 + $0xc4] ss:$16 sps:$4 sm:$0xff]  }
 0x27f   : > { %v1037_v52 = vadd.f32 1.0, %v8415_v50  ;;  %v8417_v53 = vpop.eup %8416  ;;  %v8023_v50 = vld [vmem:[#allocation4 + $0x18] sm:$0xff]  }
 0x280   : > { %8420 = vrcp.f32 %v1031_v51  ;;  %v8419_v54 = vpop.eup %8418  ;;  %v1044_v19 = vadd.f32 1.0, %v8417_v53  ;;  %v8571_v51 = vld [vmem:[#allocation7 + $0xc0] ss:$16 sps:$4 sm:$0xff]  }
 0x281   : > { %8422 = vrcp.f32 %v1037_v52  ;;  %v8572_v52 = vld [vmem:[#allocation7 + $0xe4] ss:$16 sps:$4 sm:$0xff]  }
 0x282   : > { %8424 = vrcp.f32 %v1044_v19  ;;  %v8024_v53 = vld [vmem:[#allocation4 + $0x20] sm:$0xff]   ;;  %v8026_v19 = vld [vmem:[#allocation4 + $0x30] sm:$0xff]  }
 0x28a   : > { %v8421_v17 = vpop.eup %8420 }
 0x28b   : > { %v8423_v32 = vpop.eup %8422  ;;  %v1049_v18 = vmul.f32 %v8421_v17, %v8419_v54  ;;  %v8573_v54 = vld [vmem:[#allocation7 + $0xe0] ss:$16 sps:$4 sm:$0xff]   ;;  %v8025_v17 = vld [vmem:[#allocation4 + $0x28] sm:$0xff]  }
 0x28c   : > { %v1048_v20 = vmul.f32 %v8423_v32, %v1047_v55  ;;  %v8425_v61 = vpop.eup %8424  ;;  %v8574_v55 = vld [vmem:[#allocation7 + $0x104] ss:$16 sps:$4 sm:$0xff]   ;;  %v8575_v32 = vld [vmem:[#allocation7 + $0x100] ss:$16 sps:$4 sm:$0xff]  }
 0x28e   : > { %v1050_v22 = vadd.f32 %v1049_v18, %v1048_v20  ;;  %v1266_v23 = vpop.f32.mrb[8].mxu0  ;;  %v8576_v18 = vld [vmem:[#allocation7 + $0x124] ss:$16 sps:$4 sm:$0xff]   ;;  %v8577_v20 = vld [vmem:[#allocation7 + $0x120] ss:$16 sps:$4 sm:$0xff]  }
 0x28f   : > { %v1267_v25 = vadd.f32 %v1266_v23, %v1183_v21  ;;  %v7544_v26 = vpop.f32.mrb[9].mxu0  ;;  %v8578_v21 = vld [vmem:[#allocation7 + $0x144] ss:$16 sps:$4 sm:$0xff]   ;;  %v1928_v23 = vld [vmem:[%s9039_s28 + $0x2] sm:$0x1] }
 0x290   : > { %8426 = vtanh.f32 %v1050_v22  ;;  %1054 = vst [vmem:[#allocation2 + $0x1] sm:$0x1] %v1050_v22  ;;  %v1269_v27 = vpop.f32.mrb[10].mxu0  ;;  %v8027_v22 = vld [vmem:[#allocation4 + $0x38] sm:$0xff]   ;;  %v1929_v26 = vpack.c.bf16 %v1928_v23, %v1928_v23 }
 0x291   : > { %v1272_v56 = vmax.f32 %v1267_v25, 0.0  ;;  %v7545_v57 = vpop.f32.mrb[11].mxu0  ;;  %v8579_v25 = vld [vmem:[#allocation7 + $0x140] ss:$16 sps:$4 sm:$0xff]  }
 0x292   : > { %v8043_v27 = vld [vmem:[#allocation9] sm:$0xff]   ;;  %v9267_v57 = vld [vmem:[#allocation7 + $0xa8] ss:$16 sps:$4 sm:$0xff]  }
 0x293   : > { %v1273_v58 = vpack.c.bf16 %v1272_v56, %v1272_v56  ;;  %v9265_v56 = vld [vmem:[#allocation7 + $0xac] ss:$16 sps:$4 sm:$0xff]  }
 0x295   : > { %v1275_v60 = vsel %vm9133_vm6, %v1273_v58, %v1274_v59  ;;  %v8047_v58 = vld [vmem:[#allocation9 + $0x8] sm:$0xff]  }
 0x296   : > { %1276 = vst [vmem:[#allocation3] sm:$0x1] %v1275_v60  ;;  %v9272_v59 = vld [vmem:[#allocation7 + $0xcc] ss:$16 sps:$4 sm:$0xff]   ;;  %v9274_v60 = vld [vmem:[#allocation7 + $0xc8] ss:$16 sps:$4 sm:$0xff]  }
 0x29a   : > { %v8427_v0 = vpop.eup %8426 }
 0x29b   : > { %v1052_v1 = vmul.f32 %v8427_v0, %v8425_v61  ;;  %v8051_v61 = vld [vmem:[#allocation9 + $0x10] sm:$0xff]   ;;  %v9279_v0 = vld [vmem:[#allocation7 + $0xec] ss:$16 sps:$4 sm:$0xff]  }
 0x29d   : > { %1053 = vst [vmem:[#allocation2] sm:$0x1] %v1052_v1  ;;  %v1055_v9 = vpack.c.bf16 %v1052_v1, %v1052_v1  ;;  %v9281_v1 = vld [vmem:[#allocation7 + $0xe8] ss:$16 sps:$4 sm:$0xff]  }
 0x29f   : > { %v1057_v13 = vsel %vm9133_vm6, %v1055_v9, %v1056_v4  ;;  %7523 = vmatmul.mubr.bf16.vlgmr.msra.gmra.mrb[4].mxu1 %v1055_v9  ;;  %v8055_v4 = vld [vmem:[#allocation9 + $0x18] sm:$0xff]  }
 0x2a0   : > { %1058 = vst [vmem:[#allocation3 + $0x1] sm:$0x1] %v1057_v13  ;;  %1710 = vmatpush1.bf16.msra.mxu1 %v8559_v14  ;;  %v9286_v9 = vld [vmem:[#allocation7 + $0x10c] ss:$16 sps:$4 sm:$0xff]   ;;  %v9288_v13 = vld [vmem:[#allocation7 + $0x108] ss:$16 sps:$4 sm:$0xff]  }
 0x2a1   : > { %1711 = vmatprep.subr.bf16.mxu1 %v8560_v28  ;;  %v8059_v14 = vld [vmem:[#allocation9 + $0x20] sm:$0xff]   ;;  %v9293_v28 = vld [vmem:[#allocation7 + $0x12c] ss:$16 sps:$4 sm:$0xff]  }
 0x2a4   : > { %1712 = vmatpush1.bf16.msra.mxu1 %v8561_v29  ;;  %v9295_v29 = vld [vmem:[#allocation7 + $0x128] ss:$16 sps:$4 sm:$0xff]  }
 0x2a5   : > { %1713 = vmatprep.subr.bf16.mxu1 %v8562_v31  ;;  %v8063_v31 = vld [vmem:[#allocation9 + $0x28] sm:$0xff]  }
 0x2a7   : > { %v6755_v33 = vld.sshfl [vmem:[#allocation3] sm:$0x11 pattern:$0x75316420] }
 0x2a8   : > { %1714 = vmatpush1.bf16.msra.mxu1 %v8563_v35  ;;  %v1351_v36 = vcombine.high %v6755_v33, %v6755_v33  ;;  %v9208_v41 = vrot.slane %v6755_v33, %v9142_v34  ;;  %v9299_v33 = vld [vmem:[#allocation7 + $0x14c] ss:$16 sps:$4 sm:$0xff]   ;;  %v9302_v35 = vld [vmem:[#allocation7 + $0x148] ss:$16 sps:$4 sm:$0xff]  }
 0x2a9   : > { %1715 = vmatprep.subr.bf16.mxu1 %v8564_v37  ;;  %v8067_v37 = vld [vmem:[#allocation9 + $0x30] sm:$0xff]  }
 0x2aa   : > { %v1365_v38 = vrot.slane %v1351_v36, %v9142_v34  ;;  %v9305_v36 = vld [vmem:[#allocation7 + $0x16c] ss:$16 sps:$4 sm:$0xff]  }
 0x2ac   : > { %1716 = vmatpush1.bf16.msra.mxu1 %v8565_v40  ;;  %1741 = vmatprep.mubr.bf16.mxu1 %v1365_v38  ;;  %v8071_v40 = vld [vmem:[#allocation9 + $0x38] sm:$0xff]  }
 0x2ad   : > { %1782 = vmatprep.mubr.bf16.mxu0 %v1365_v38  ;;  %1717 = vmatprep.subr.bf16.mxu1 %v8566_v42  ;;  %v9309_v38 = vld [vmem:[#allocation7 + $0x168] ss:$16 sps:$4 sm:$0xff]  }
 0x2ae   : > { %1783 = vmatmul.mubr.bf16.vlgmr.msra.gmra.mrb[12].mxu0 %v9208_v41  ;;  %v9318_v42 = vld [vmem:[#allocation7 + $0x188] ss:$16 sps:$4 sm:$0xff]  }
 0x2af   : > { %7567 = vmatpush3.bf16.msra.mxu0 %v8020_v39  ;;  %7582 = vmatprep.mubr.msk.bf16.mxu0 %vm8807_vm3, %v10364_v6  ;;  %v9312_v39 = vld [vmem:[#allocation7 + $0x18c] ss:$16 sps:$4 sm:$0xff]  }
 0x2b0   : > { %1718 = vmatpush1.bf16.msra.mxu1 %v8567_v45  ;;  %7568 = vmatprep.subr.bf16.mxu0 %v10364_v6  ;;  %v9325_v45 = vld [vmem:[#allocation7 + $0x1a8] ss:$16 sps:$4 sm:$0xff]  }
 0x2b1   : > { %1719 = vmatprep.subr.bf16.mxu1 %v8568_v46  ;;  %v9329_v46 = vld [vmem:[#allocation7 + $0x1cc] ss:$16 sps:$4 sm:$0xff]  }
 0x2b3   : > { %7569 = vmatpush3.bf16.msra.mxu0 %v8021_v43  ;;  %v9323_v43 = vld [vmem:[#allocation7 + $0x1ac] ss:$16 sps:$4 sm:$0xff]  }
 0x2b4   : > { %1720 = vmatpush1.bf16.msra.mxu1 %v8569_v48  ;;  %7570 = vmatprep.subr.bf16.mxu0 %v10364_v6  ;;  %v9335_v48 = vld [vmem:[#allocation7 + $0x1ec] ss:$16 sps:$4 sm:$0xff]  }
 0x2b5   : > { %1721 = vmatprep.subr.bf16.mxu1 %v8570_v49  ;;  %v9337_v49 = vld [vmem:[#allocation7 + $0x1e8] ss:$16 sps:$4 sm:$0xff]  }
 0x2b7   : > { %7571 = vmatpush3.bf16.msra.mxu0 %v8022_v47  ;;  %v9331_v47 = vld [vmem:[#allocation7 + $0x1c8] ss:$16 sps:$4 sm:$0xff]  }
 0x2b8   : > { %1722 = vmatpush1.bf16.msra.mxu1 %v8571_v51  ;;  %7572 = vmatprep.subr.bf16.mxu0 %v10364_v6 }
 0x2b9   : > { %1723 = vmatprep.subr.bf16.mxu1 %v8572_v52 }
 0x2bb   : > { %7573 = vmatpush3.bf16.msra.mxu0 %v8023_v50  ;;  %v1075_v50 = vld [vmem:[%s10346_s6] sm:$0x1] }
 0x2bc   : > { %1724 = vmatpush1.bf16.msra.mxu1 %v8573_v54  ;;  %7574 = vmatprep.subr.bf16.mxu0 %v10364_v6 }
 0x2bd   : > { %1725 = vmatprep.subr.bf16.mxu1 %v8574_v55 }
 0x2bf   : > { %7575 = vmatpush3.bf16.msra.mxu0 %v8024_v53 }
 0x2c0   : > { %1726 = vmatpush1.bf16.msra.mxu1 %v8575_v32  ;;  %7576 = vmatprep.subr.bf16.mxu0 %v10364_v6 }
 0x2c1   : > { %1727 = vmatprep.subr.bf16.mxu1 %v8576_v18 }
 0x2c3   : > { %7577 = vmatpush3.bf16.msra.mxu0 %v8025_v17 }
 0x2c4   : > { %1728 = vmatpush1.bf16.msra.mxu1 %v8577_v20  ;;  %7578 = vmatprep.subr.bf16.mxu0 %v10364_v6  ;;  %v1946_v20 = vld [vmem:[%s10342_s2] sm:$0x1] }
 0x2c5   : > { %1729 = vmatprep.subr.bf16.mxu1 %v8578_v21 }
 0x2c7   : > { %7579 = vmatpush3.bf16.msra.mxu0 %v8026_v19 }
 0x2c8   : > { %1730 = vmatpush1.bf16.msra.mxu1 %v8579_v25  ;;  %7580 = vmatprep.subr.bf16.mxu0 %v10364_v6 }
 0x2c9   : > { %1731 = vmatprep.subr.bf16.mxu1 %v9072_v62  ;;  %v9235_v62 = vld [vmem:[#allocation7 + $0x8] ss:$16 sps:$4 sm:$0xff]  }
 0x2cb   : > { %7581 = vmatpush3.bf16.msra.mxu0 %v8027_v22 }
 0x2cc   : > { %1732 = vmatpush1.bf16.msra.mxu1 %v9075_v63  ;;  %v9237_v63 = vld [vmem:[#allocation7 + $0xc] ss:$16 sps:$4 sm:$0xff]  }
 0x2cd   : > { %1733 = vmatprep.subr.bf16.mxu1 %v9084_v2  ;;  %2513 = vmatprep.subr.bf16.mxu0 %v9237_v63  ;;  %v9241_v2 = vld [vmem:[#allocation7 + $0x2c] ss:$16 sps:$4 sm:$0xff]  }
 0x2ce   : > { %7583 = vmatmul.mubr.bf16.vlgmr.msra.gmra.mrb[16].mxu0 %v1929_v26 }
 0x2cf   : > { %2514 = vmatpush1.bf16.msra.mxu0 %v9235_v62 }
 0x2d0   : > { %1734 = vmatpush1.bf16.msra.mxu1 %v9087_v3  ;;  %v9243_v3 = vld [vmem:[#allocation7 + $0x28] ss:$16 sps:$4 sm:$0xff]   ;;  %2515 = vmatprep.subr.bf16.mxu0 %v9241_v2 }
 0x2d1   : > { %1735 = vmatprep.subr.bf16.mxu1 %v9096_v7  ;;  %v9247_v7 = vld [vmem:[#allocation7 + $0x4c] ss:$16 sps:$4 sm:$0xff]  }
 0x2d3   : > { %2516 = vmatpush1.bf16.msra.mxu0 %v9243_v3 }
 0x2d4   : > { %1736 = vmatpush1.bf16.msra.mxu1 %v9099_v8  ;;  %v9249_v8 = vld [vmem:[#allocation7 + $0x48] ss:$16 sps:$4 sm:$0xff]   ;;  %2517 = vmatprep.subr.bf16.mxu0 %v9247_v7 }
 0x2d5   : > { %1737 = vmatprep.subr.bf16.mxu1 %v9108_v11  ;;  %v9253_v11 = vld [vmem:[#allocation7 + $0x6c] ss:$16 sps:$4 sm:$0xff]  }
 0x2d7   : > { %2518 = vmatpush1.bf16.msra.mxu0 %v9249_v8 }
 0x2d8   : > { %1738 = vmatpush1.bf16.msra.mxu1 %v9111_v12  ;;  %v9255_v12 = vld [vmem:[#allocation7 + $0x68] ss:$16 sps:$4 sm:$0xff]   ;;  %2519 = vmatprep.subr.bf16.mxu0 %v9253_v11 }
 0x2d9   : > { %1739 = vmatprep.subr.bf16.mxu1 %v9120_v15  ;;  %v9259_v15 = vld [vmem:[#allocation7 + $0x8c] ss:$16 sps:$4 sm:$0xff]  }
 0x2db   : > { %2520 = vmatpush1.bf16.msra.mxu0 %v9255_v12 }
 0x2dc   : > { %1740 = vmatpush1.bf16.msra.mxu1 %v9122_v16  ;;  %v9261_v16 = vld [vmem:[#allocation7 + $0x88] ss:$16 sps:$4 sm:$0xff]   ;;  %2521 = vmatprep.subr.bf16.mxu0 %v9259_v15 }
 0x2dd   : > { %7546 = vmatprep.subr.bf16.mxu1 %v10364_v6 }
 0x2df   : > { %1742 = vmatmul.mubr.bf16.vlgmr.msra.gmra.mrb[8].mxu1 %v9208_v41  ;;  %2522 = vmatpush1.bf16.msra.mxu0 %v9261_v16  ;;  %v9315_v41 = vld [vmem:[#allocation7 + $0x4] ss:$16 sps:$4 sm:$0xff]  }
 0x2e0   : > { %7562 = vmatprep.mubr.msk.bf16.mxu1 %vm8807_vm3, %v10364_v6  ;;  %7547 = vmatpush3.bf16.msra.mxu1 %v8043_v27 }
 0x2e1   : > { %2523 = vmatprep.subr.bf16.mxu0 %v9265_v56  ;;  %7548 = vmatprep.subr.bf16.mxu1 %v10364_v6 }
 0x2e3   : > { %2524 = vmatpush1.bf16.msra.mxu0 %v9267_v57 }
 0x2e4   : > { %7549 = vmatpush3.bf16.msra.mxu1 %v8047_v58  ;;  %2525 = vmatprep.subr.bf16.mxu0 %v9272_v59 }
 0x2e5   : > { %7550 = vmatprep.subr.bf16.mxu1 %v10364_v6 }
 0x2e7   : > { %2526 = vmatpush1.bf16.msra.mxu0 %v9274_v60 }
 0x2e8   : > { %7551 = vmatpush3.bf16.msra.mxu1 %v8051_v61  ;;  %2527 = vmatprep.subr.bf16.mxu0 %v9279_v0  ;;  %v2037_v61 = vld [vmem:[#allocation3] sm:$0x1] }
 0x2e9   : > { %7552 = vmatprep.subr.bf16.mxu1 %v10364_v6 }
 0x2eb   : > { %2528 = vmatpush1.bf16.msra.mxu0 %v9281_v1 }
 0x2ec   : > { %7553 = vmatpush3.bf16.msra.mxu1 %v8055_v4  ;;  %2529 = vmatprep.subr.bf16.mxu0 %v9286_v9 }
 0x2ed   : > { %7554 = vmatprep.subr.bf16.mxu1 %v10364_v6 }
 0x2ef   : > { %2530 = vmatpush1.bf16.msra.mxu0 %v9288_v13 }
 0x2f0   : > { %7555 = vmatpush3.bf16.msra.mxu1 %v8059_v14  ;;  %2531 = vmatprep.subr.bf16.mxu0 %v9293_v28  ;;  %v1342_v14 = vld [vmem:[%s10344_s4] sm:$0xf] }
 0x2f1   : > { %7556 = vmatprep.subr.bf16.mxu1 %v10364_v6 }
 0x2f3   : > { %2532 = vmatpush1.bf16.msra.mxu0 %v9295_v29 }
 0x2f4   : > { %2533 = vmatprep.subr.bf16.mxu0 %v9299_v33  ;;  %7557 = vmatpush3.bf16.msra.mxu1 %v8063_v31  ;;  %v1692_v31 = vrot.slane %v1342_v14, %v9181_v5 }
 0x2f5   : > { %7558 = vmatprep.subr.bf16.mxu1 %v10364_v6 }
 0x2f7   : > { %2534 = vmatpush1.bf16.msra.mxu0 %v9302_v35 }
 0x2f8   : > { %2535 = vmatprep.subr.bf16.mxu0 %v9305_v36  ;;  %7559 = vmatpush3.bf16.msra.mxu1 %v8067_v37  ;;  %v1696_v37 = vrot.slane %v1342_v14, %v9187_v10 }
 0x2f9   : > { %7560 = vmatprep.subr.bf16.mxu1 %v10364_v6 }
 0x2fb   : > { %2536 = vmatpush1.bf16.msra.mxu0 %v9309_v38 }
 0x2fc   : > { %2537 = vmatprep.subr.bf16.mxu0 %v9312_v39  ;;  %7561 = vmatpush3.bf16.msra.mxu1 %v8071_v40 }
 0x2fd   : > { %2472 = vmatprep.subr.bf16.mxu1 %v9315_v41 }
 0x2ff   : > { %2538 = vmatpush1.bf16.msra.mxu0 %v9318_v42 }
 0x300   : > { %2539 = vmatprep.subr.bf16.mxu0 %v9323_v43 }
 0x303   : > { %2540 = vmatpush1.bf16.msra.mxu0 %v9325_v45 }
 0x304   : > { %2541 = vmatprep.subr.bf16.mxu0 %v9329_v46 }
 0x307   : > { %2542 = vmatpush1.bf16.msra.mxu0 %v9331_v47 }
 0x308   : > { %2543 = vmatprep.subr.bf16.mxu0 %v9335_v48 }
 0x30b   : > { %2544 = vmatpush1.bf16.msra.mxu0 %v9337_v49 }
 0x30c   : > { %7606 = vmatprep.subr.bf16.mxu0 %v10364_v6 }
 0x372   : > { %v1158_v51 = vpop.f32.mrb[4].mxu1 }
 0x373   : > { %v1159_v52 = vadd.f32 %v1158_v51, %v1075_v50  ;;  %v7524_v53 = vpop.f32.mrb[5].mxu1 }
 0x374   : > { %v1161_v54 = vpop.f32.mrb[6].mxu1 }
 0x375   : > { %1164 = vst [vmem:[%s9041_s16] sm:$0x1] %v1159_v52  ;;  %v7525_v55 = vpop.f32.mrb[7].mxu1 }
 0x381   : > { %v1784_v17 = vpop.f32.mrb[12].mxu0 }
 0x382   : > { %v1786_v32 = vpop.f32.mrb[13].mxu0 }
 0x383   : > { %v1788_v18 = vpop.f32.mrb[14].mxu0 }
 0x384   : > { %v1789_v19 = vpop.f32.mrb[15].mxu0  ;;  %v1704_v18 = vrot.slane %v1342_v14, %v9192_v30 }
 0x3a1   : > { %v2029_v21 = vpop.f32.mrb[16].mxu0 }
 0x3a2   : > { %v2030_v22 = vadd.f32 %v2029_v21, %v1946_v20  ;;  %v7584_v23 = vpop.f32.mrb[17].mxu0  ;;  %v1787_v20 = vadd.f32 %v1786_v32, %v1704_v18  ;;  %v1700_v21 = vrot.slane %v1342_v14, %v9196_v44  ;;  %v9360_v18 = vld [vmem:[#allocation7 + $0x24] ss:$16 sps:$4 sm:$0xff]  }
 0x3a3   : > { %v2032_v25 = vpop.f32.mrb[18].mxu0 }
 0x3a4   : > { %v2035_v26 = vmax.f32 %v2030_v22, 0.0  ;;  %v7585_v27 = vpop.f32.mrb[19].mxu0  ;;  %v6822_v22 = vmul.f32 -1.442695, %v1787_v20  ;;  %v1785_v23 = vadd.f32 %v1784_v17, %v1700_v21  ;;  %v9365_v21 = vld [vmem:[#allocation7 + $0x20] ss:$16 sps:$4 sm:$0xff]  }
 0x3a6   : > { %v2036_v58 = vpack.c.bf16 %v2035_v26, %v2035_v26 }
 0x3a8   : > { %v2038_v4 = vsel %vm9133_vm6, %v2036_v58, %v2037_v61 }
 0x3a9   : > { %2039 = vst [vmem:[#allocation3] sm:$0x1] %v2038_v4 }
 0x3b2   : > { %v1743_v40 = vpop.f32.mrb[8].mxu1 }
 0x3b3   : > { %v1744_v50 = vadd.f32 %v1743_v40, %v1692_v31  ;;  %v1745_v51 = vpop.f32.mrb[9].mxu1 }
 0x3b4   : > { %v1746_v52 = vadd.f32 %v1745_v51, %v1696_v37  ;;  %v1747_v53 = vpop.f32.mrb[10].mxu1  ;;  %v1810_v51 = vld [vmem:[#allocation2 + $0x1] sm:$0x1] }
 0x3b5   : > { %v6820_v54 = vmul.f32 -1.442695, %v1744_v50  ;;  %v1748_v55 = vpop.f32.mrb[11].mxu1 }
 0x3b6   : > { %v6821_v19 = vmul.f32 -1.442695, %v1746_v52 }
 0x3b7   : > { %8428 = vpow2.f32 %v6820_v54  ;;  %v9358_v54 = vld [vmem:[#allocation7] ss:$16 sps:$4 sm:$0xff]  }
 0x3b8   : > { %8430 = vpow2.f32 %v6821_v19  ;;  %v1819_v19 = vld [vmem:[#allocation3 + $0x1] sm:$0x1] }
 0x3b9   : > { %8432 = vpow2.f32 %v6822_v22  ;;  %v9368_v22 = vld [vmem:[#allocation7 + $0x44] ss:$16 sps:$4 sm:$0xff]  }
 0x3ba   : > { %8434 = vtanh.f32 %v1785_v23  ;;  %v9371_v23 = vld [vmem:[#allocation7 + $0x40] ss:$16 sps:$4 sm:$0xff]  }
 0x3c1   : > { %v8429_v25 = vpop.eup %8428 }
 0x3c2   : > { %v8431_v26 = vpop.eup %8430  ;;  %v1794_v27 = vadd.f32 1.0, %v8429_v25  ;;  %v9374_v25 = vld [vmem:[#allocation7 + $0x64] ss:$16 sps:$4 sm:$0xff]  }
 0x3c3   : > { %v1800_v58 = vadd.f32 1.0, %v8431_v26  ;;  %v8433_v61 = vpop.eup %8432 }
 0x3c4   : > { %8436 = vrcp.f32 %v1794_v27  ;;  %v8435_v4 = vpop.eup %8434  ;;  %v1807_v40 = vadd.f32 1.0, %v8433_v61  ;;  %v9377_v27 = vld [vmem:[#allocation7 + $0x60] ss:$16 sps:$4 sm:$0xff]   ;;  %v9380_v61 = vld [vmem:[#allocation7 + $0x84] ss:$16 sps:$4 sm:$0xff]  }
 0x3c5   : > { %8438 = vrcp.f32 %v1800_v58 }
 0x3c6   : > { %8440 = vrcp.f32 %v1807_v40  ;;  %v9387_v40 = vld [vmem:[#allocation7 + $0x80] ss:$16 sps:$4 sm:$0xff]  }
 0x3ce   : > { %v8437_v31 = vpop.eup %8436 }
 0x3cf   : > { %v8439_v37 = vpop.eup %8438  ;;  %v1812_v50 = vmul.f32 %v8437_v31, %v8435_v4  ;;  %v8096_v31 = vld [vmem:[#allocation4] sm:$0xff]  }
 0x3d0   : > { %v1811_v32 = vmul.f32 %v8439_v37, %v1810_v51  ;;  %v8441_v17 = vpop.eup %8440  ;;  %v8100_v51 = vld [vmem:[#allocation4 + $0x8] sm:$0xff]  }
 0x3d2   : > { %v1813_v52 = vadd.f32 %v1812_v50, %v1811_v32  ;;  %v9390_v50 = vld [vmem:[#allocation7 + $0xa4] ss:$16 sps:$4 sm:$0xff]   ;;  %v9397_v32 = vld [vmem:[#allocation7 + $0xa0] ss:$16 sps:$4 sm:$0xff]  }
 0x3d4   : > { %8442 = vtanh.f32 %v1813_v52  ;;  %1817 = vst [vmem:[#allocation2 + $0x1] sm:$0x1] %v1813_v52  ;;  %v9400_v52 = vld [vmem:[#allocation7 + $0xc4] ss:$16 sps:$4 sm:$0xff]  }
 0x3de   : > { %v8443_v14 = vpop.eup %8442 }
 0x3df   : > { %v1815_v53 = vmul.f32 %v8443_v14, %v8441_v17  ;;  %v8104_v17 = vld [vmem:[#allocation4 + $0x10] sm:$0xff]  }
 0x3e0   : > { %v9404_v14 = vld [vmem:[#allocation7 + $0xc0] ss:$16 sps:$4 sm:$0xff]  }
 0x3e1   : > { %1816 = vst [vmem:[#allocation2] sm:$0x1] %v1815_v53  ;;  %v1818_v55 = vpack.c.bf16 %v1815_v53, %v1815_v53  ;;  %v9407_v53 = vld [vmem:[#allocation7 + $0xe4] ss:$16 sps:$4 sm:$0xff]  }
 0x3e3   : > { %v1820_v20 = vsel %vm9133_vm6, %v1818_v55, %v1819_v19  ;;  %7563 = vmatmul.mubr.bf16.vlgmr.msra.gmra.mrb[12].mxu1 %v1818_v55  ;;  %v8108_v55 = vld [vmem:[#allocation4 + $0x18] sm:$0xff]   ;;  %v9411_v19 = vld [vmem:[#allocation7 + $0xe0] ss:$16 sps:$4 sm:$0xff]  }
 0x3e4   : > { %1821 = vst [vmem:[#allocation3 + $0x1] sm:$0x1] %v1820_v20  ;;  %2473 = vmatpush1.bf16.msra.mxu1 %v9358_v54  ;;  %10401 = vst [vmem:[#allocation24_spill] sm:$0xff] %v9411_v19  ;;  %v9414_v20 = vld [vmem:[#allocation7 + $0x104] ss:$16 sps:$4 sm:$0xff]  }
 0x3e5   : > { %2474 = vmatprep.subr.bf16.mxu1 %v9360_v18  ;;  %10402 = vst [vmem:[#allocation25_spill] sm:$0xff] %v9414_v20 }
 0x3e8   : > { %2475 = vmatpush1.bf16.msra.mxu1 %v9365_v21 }
 0x3e9   : > { %2476 = vmatprep.subr.bf16.mxu1 %v9368_v22 }
 0x3eb   : > { %v6839_v26 = vld.sshfl [vmem:[#allocation3] sm:$0x11 pattern:$0x75316420] }
 0x3ec   : > { %2477 = vmatpush1.bf16.msra.mxu1 %v9371_v23  ;;  %v2114_v58 = vcombine.high %v6839_v26, %v6839_v26  ;;  %v9385_v37 = vrot.slane %v6839_v26, %v9142_v34  ;;  %v8112_v26 = vld [vmem:[#allocation4 + $0x20] sm:$0xff]  }
 0x3ed   : > { %2478 = vmatprep.subr.bf16.mxu1 %v9374_v25 }
 0x3ee   : > { %v2128_v4 = vrot.slane %v2114_v58, %v9142_v34  ;;  %v9418_v58 = vld [vmem:[#allocation7 + $0x100] ss:$16 sps:$4 sm:$0xff]  }
 0x3ef   : > { %10403 = vst [vmem:[#allocation26_spill] sm:$0xff] %v9418_v58 }
 0x3f0   : > { %2479 = vmatpush1.bf16.msra.mxu1 %v9377_v27  ;;  %2504 = vmatprep.mubr.bf16.mxu1 %v2128_v4 }
 0x3f1   : > { %2545 = vmatprep.mubr.bf16.mxu0 %v2128_v4  ;;  %2480 = vmatprep.subr.bf16.mxu1 %v9380_v61  ;;  %v9421_v4 = vld [vmem:[#allocation7 + $0x124] ss:$16 sps:$4 sm:$0xff]  }
 0x3f2   : > { %2546 = vmatmul.mubr.bf16.vlgmr.msra.gmra.mrb[20].mxu0 %v9385_v37  ;;  %10404 = vst [vmem:[#allocation27_spill] sm:$0xff] %v9421_v4 }
 0x3f3   : > { %7607 = vmatpush3.bf16.msra.mxu0 %v8096_v31  ;;  %7622 = vmatprep.mubr.msk.bf16.mxu0 %vm8807_vm3, %v10364_v6  ;;  %v8116_v31 = vld [vmem:[#allocation4 + $0x28] sm:$0xff]  }
 0x3f4   : > { %2481 = vmatpush1.bf16.msra.mxu1 %v9387_v40  ;;  %7608 = vmatprep.subr.bf16.mxu0 %v10364_v6 }
 0x3f5   : > { %2482 = vmatprep.subr.bf16.mxu1 %v9390_v50 }
 0x3f7   : > { %7609 = vmatpush3.bf16.msra.mxu0 %v8100_v51  ;;  %v9425_v51 = vld [vmem:[#allocation7 + $0x120] ss:$16 sps:$4 sm:$0xff]  }
 0x3f8   : > { %2483 = vmatpush1.bf16.msra.mxu1 %v9397_v32  ;;  %7610 = vmatprep.subr.bf16.mxu0 %v10364_v6  ;;  %10405 = vst [vmem:[#allocation28_spill] sm:$0xff] %v9425_v51 }
 0x3f9   : > { %2484 = vmatprep.subr.bf16.mxu1 %v9400_v52 }
 0x3fb   : > { %7611 = vmatpush3.bf16.msra.mxu0 %v8104_v17  ;;  %v9428_v17 = vld [vmem:[#allocation7 + $0x144] ss:$16 sps:$4 sm:$0xff]  }
 0x3fc   : > { %2485 = vmatpush1.bf16.msra.mxu1 %v9404_v14  ;;  %7612 = vmatprep.subr.bf16.mxu0 %v10364_v6  ;;  %10406 = vst [vmem:[#allocation29_spill] sm:$0xff] %v9428_v17 }
 0x3fd   : > { %2486 = vmatprep.subr.bf16.mxu1 %v9407_v53 }
 0x3ff   : > { %7613 = vmatpush3.bf16.msra.mxu0 %v8108_v55  ;;  %v8120_v55 = vld [vmem:[#allocation4 + $0x30] sm:$0xff]  }
 0x400   : > { %2487 = vmatpush1.bf16.msra.mxu1 %v9411_v19  ;;  %7614 = vmatprep.subr.bf16.mxu0 %v10364_v6  ;;  %v2691_v19 = vld [vmem:[%s9039_s28 + $0x3] sm:$0x1] }
 0x401   : > { %2488 = vmatprep.subr.bf16.mxu1 %v9414_v20  ;;  %v9432_v20 = vld [vmem:[#allocation7 + $0x140] ss:$16 sps:$4 sm:$0xff]  }
 0x403   : > { %7615 = vmatpush3.bf16.msra.mxu0 %v8112_v26  ;;  %v9435_v26 = vld [vmem:[#allocation7 + $0x164] ss:$16 sps:$4 sm:$0xff]  }
 0x404   : > { %2489 = vmatpush1.bf16.msra.mxu1 %v9418_v58  ;;  %7616 = vmatprep.subr.bf16.mxu0 %v10364_v6  ;;  %v8124_v58 = vld [vmem:[#allocation4 + $0x38] sm:$0xff]  }
 0x405   : > { %2490 = vmatprep.subr.bf16.mxu1 %v9421_v4  ;;  %v9440_v4 = vld [vmem:[#allocation7 + $0x160] ss:$16 sps:$4 sm:$0xff]  }
 0x407   : > { %7617 = vmatpush3.bf16.msra.mxu0 %v8116_v31  ;;  %v9443_v31 = vld [vmem:[#allocation7 + $0x184] ss:$16 sps:$4 sm:$0xff]  }
 0x408   : > { %2491 = vmatpush1.bf16.msra.mxu1 %v9425_v51  ;;  %7618 = vmatprep.subr.bf16.mxu0 %v10364_v6  ;;  %v2692_v51 = vpack.c.bf16 %v2691_v19, %v2691_v19  ;;  %v9458_v19 = vld [vmem:[#allocation7 + $0x1c4] ss:$16 sps:$4 sm:$0xff]  }
 0x409   : > { %2492 = vmatprep.subr.bf16.mxu1 %v9428_v17  ;;  %v9446_v17 = vld [vmem:[#allocation7 + $0x180] ss:$16 sps:$4 sm:$0xff]  }
 0x40b   : > { %7619 = vmatpush3.bf16.msra.mxu0 %v8120_v55  ;;  %v9450_v55 = vld [vmem:[#allocation7 + $0x1a4] ss:$16 sps:$4 sm:$0xff]  }
 0x40c   : > { %2493 = vmatpush1.bf16.msra.mxu1 %v9432_v20  ;;  %7620 = vmatprep.subr.bf16.mxu0 %v10364_v6  ;;  %v9454_v6 = vld [vmem:[#allocation7 + $0x1a0] ss:$16 sps:$4 sm:$0xff]  }
 0x40d   : > { %2494 = vmatprep.subr.bf16.mxu1 %v9435_v26 }
 0x40f   : > { %7621 = vmatpush3.bf16.msra.mxu0 %v8124_v58 }
 0x410   : > { %2495 = vmatpush1.bf16.msra.mxu1 %v9440_v4  ;;  %3276 = vmatprep.subr.bf16.mxu0 %v9237_v63  ;;  %v9462_v63 = vld [vmem:[#allocation7 + $0x1c0] ss:$16 sps:$4 sm:$0xff]  }
 0x411   : > { %2496 = vmatprep.subr.bf16.mxu1 %v9443_v31 }
 0x412   : > { %7623 = vmatmul.mubr.bf16.vlgmr.msra.gmra.mrb[24].mxu0 %v2692_v51 }
 0x413   : > { %3277 = vmatpush1.bf16.msra.mxu0 %v9235_v62  ;;  %v9466_v62 = vld [vmem:[#allocation7 + $0x1e4] ss:$16 sps:$4 sm:$0xff]  }
 0x414   : > { %2497 = vmatpush1.bf16.msra.mxu1 %v9446_v17  ;;  %3278 = vmatprep.subr.bf16.mxu0 %v9241_v2  ;;  %v9470_v2 = vld [vmem:[#allocation7 + $0x1e0] ss:$16 sps:$4 sm:$0xff]  }
 0x415   : > { %2498 = vmatprep.subr.bf16.mxu1 %v9450_v55 }
 0x417   : > { %3279 = vmatpush1.bf16.msra.mxu0 %v9243_v3  ;;  %v10407_v3 = vmov 0.0  }
 0x418   : > { %2499 = vmatpush1.bf16.msra.mxu1 %v9454_v6  ;;  %3280 = vmatprep.subr.bf16.mxu0 %v9247_v7  ;;  %v8140_v7 = vld [vmem:[#allocation9] sm:$0xff]  }
 0x419   : > { %2500 = vmatprep.subr.bf16.mxu1 %v9458_v19 }
 0x41b   : > { %3281 = vmatpush1.bf16.msra.mxu0 %v9249_v8  ;;  %v8141_v8 = vld [vmem:[#allocation9 + $0x8] sm:$0xff]  }
 0x41c   : > { %2501 = vmatpush1.bf16.msra.mxu1 %v9462_v63  ;;  %3282 = vmatprep.subr.bf16.mxu0 %v9253_v11  ;;  %v8142_v11 = vld [vmem:[#allocation9 + $0x10] sm:$0xff]  }
 0x41d   : > { %2502 = vmatprep.subr.bf16.mxu1 %v9466_v62 }
 0x41f   : > { %3283 = vmatpush1.bf16.msra.mxu0 %v9255_v12  ;;  %v8143_v12 = vld [vmem:[#allocation9 + $0x18] sm:$0xff]  }
 0x420   : > { %2503 = vmatpush1.bf16.msra.mxu1 %v9470_v2  ;;  %3284 = vmatprep.subr.bf16.mxu0 %v9259_v15  ;;  %v8144_v15 = vld [vmem:[#allocation9 + $0x20] sm:$0xff]  }
 0x421   : > { %7586 = vmatprep.subr.bf16.mxu1 %v10407_v3 }
 0x423   : > { %2505 = vmatmul.mubr.bf16.vlgmr.msra.gmra.mrb[16].mxu1 %v9385_v37  ;;  %3285 = vmatpush1.bf16.msra.mxu0 %v9261_v16  ;;  %v8145_v16 = vld [vmem:[#allocation9 + $0x28] sm:$0xff]  }
 0x424   : > { %3286 = vmatprep.subr.bf16.mxu0 %v9265_v56  ;;  %7602 = vmatprep.mubr.msk.bf16.mxu1 %vm8807_vm3, %v10407_v3  ;;  %v8146_v56 = vld [vmem:[#allocation9 + $0x30] sm:$0xff]  }
 0x425   : > { %7587 = vmatpush3.bf16.msra.mxu1 %v8140_v7 }
 0x426   : > { %7588 = vmatprep.subr.bf16.mxu1 %v10407_v3 }
 0x427   : > { %3287 = vmatpush1.bf16.msra.mxu0 %v9267_v57  ;;  %v8147_v57 = vld [vmem:[#allocation9 + $0x38] sm:$0xff]  }
 0x428   : > { %3288 = vmatprep.subr.bf16.mxu0 %v9272_v59  ;;  %v1838_v59 = vld [vmem:[%s10346_s6] sm:$0x1] }
 0x429   : > { %7589 = vmatpush3.bf16.msra.mxu1 %v8141_v8 }
 0x42a   : > { %7590 = vmatprep.subr.bf16.mxu1 %v10407_v3 }
 0x42b   : > { %3289 = vmatpush1.bf16.msra.mxu0 %v9274_v60 }
 0x42c   : > { %3290 = vmatprep.subr.bf16.mxu0 %v9279_v0 }
 0x42d   : > { %7591 = vmatpush3.bf16.msra.mxu1 %v8142_v11 }
 0x42e   : > { %7592 = vmatprep.subr.bf16.mxu1 %v10407_v3 }
 0x42f   : > { %3291 = vmatpush1.bf16.msra.mxu0 %v9281_v1 }
 0x430   : > { %3292 = vmatprep.subr.bf16.mxu0 %v9286_v9 }
 0x431   : > { %7593 = vmatpush3.bf16.msra.mxu1 %v8143_v12 }
 0x432   : > { %7594 = vmatprep.subr.bf16.mxu1 %v10407_v3 }
 0x433   : > { %3293 = vmatpush1.bf16.msra.mxu0 %v9288_v13 }
 0x434   : > { %3294 = vmatprep.subr.bf16.mxu0 %v9293_v28 }
 0x435   : > { %7595 = vmatpush3.bf16.msra.mxu1 %v8144_v15 }
 0x436   : > { %7596 = vmatprep.subr.bf16.mxu1 %v10407_v3 }
 0x437   : > { %3295 = vmatpush1.bf16.msra.mxu0 %v9295_v29 }
 0x438   : > { %3296 = vmatprep.subr.bf16.mxu0 %v9299_v33 }
 0x439   : > { %7597 = vmatpush3.bf16.msra.mxu1 %v8145_v16 }
 0x43a   : > { %7598 = vmatprep.subr.bf16.mxu1 %v10407_v3 }
 0x43b   : > { %3297 = vmatpush1.bf16.msra.mxu0 %v9302_v35 }
 0x43c   : > { %3298 = vmatprep.subr.bf16.mxu0 %v9305_v36  ;;  %v2709_v36 = vld [vmem:[%s10342_s2] sm:$0x1] }
 0x43d   : > { %7599 = vmatpush3.bf16.msra.mxu1 %v8146_v56 }
 0x43e   : > { %7600 = vmatprep.subr.bf16.mxu1 %v10407_v3 }
 0x43f   : > { %3299 = vmatpush1.bf16.msra.mxu0 %v9309_v38 }
 0x440   : > { %3300 = vmatprep.subr.bf16.mxu0 %v9312_v39 }
 0x441   : > { %7601 = vmatpush3.bf16.msra.mxu1 %v8147_v57 }
 0x442   : > { %3235 = vmatprep.subr.bf16.mxu1 %v9315_v41 }
 0x443   : > { %3301 = vmatpush1.bf16.msra.mxu0 %v9318_v42 }
 0x444   : > { %3302 = vmatprep.subr.bf16.mxu0 %v9323_v43 }
 0x447   : > { %3303 = vmatpush1.bf16.msra.mxu0 %v9325_v45 }
 0x448   : > { %3304 = vmatprep.subr.bf16.mxu0 %v9329_v46 }
 0x44b   : > { %3305 = vmatpush1.bf16.msra.mxu0 %v9331_v47  ;;  %v2800_v47 = vld [vmem:[#allocation3] sm:$0x1] }
 0x44c   : > { %3306 = vmatprep.subr.bf16.mxu0 %v9335_v48 }
 0x44f   : > { %3307 = vmatpush1.bf16.msra.mxu0 %v9337_v49  ;;  %v2105_v49 = vld [vmem:[%s10344_s4] sm:$0xf] }
 0x450   : > { %7646 = vmatprep.subr.bf16.mxu0 %v10407_v3  ;;  %v2455_v37 = vrot.slane %v2105_v49, %v9181_v5  ;;  %v2459_v58 = vrot.slane %v2105_v49, %v9187_v10  ;;  %v2467_v56 = vrot.slane %v2105_v49, %v9192_v30 }
 0x4b6   : > { %v1921_v60 = vpop.f32.mrb[12].mxu1 }
 0x4b7   : > { %v1922_v0 = vadd.f32 %v1921_v60, %v1838_v59  ;;  %v7564_v1 = vpop.f32.mrb[13].mxu1  ;;  %v2463_v60 = vrot.slane %v2105_v49, %v9196_v44 }
 0x4b8   : > { %v1924_v9 = vpop.f32.mrb[14].mxu1 }
 0x4b9   : > { %1927 = vst [vmem:[%s9041_s16 + $0x1] sm:$0x1] %v1922_v0  ;;  %v7565_v13 = vpop.f32.mrb[15].mxu1 }
 0x4c5   : > { %v2547_v28 = vpop.f32.mrb[20].mxu0 }
 0x4c6   : > { %v2549_v29 = vpop.f32.mrb[21].mxu0  ;;  %v2548_v1 = vadd.f32 %v2547_v28, %v2463_v60  ;;  %v9616_v60 = vld [vmem:[#allocation7 + $0xc8] ss:$16 sps:$4 sm:$0xff]  }
 0x4c7   : > { %v2551_v33 = vpop.f32.mrb[22].mxu0  ;;  %v2550_v59 = vadd.f32 %v2549_v29, %v2467_v56  ;;  %v9609_v56 = vld [vmem:[#allocation7 + $0xa8] ss:$16 sps:$4 sm:$0xff]  }
 0x4c8   : > { %v2552_v35 = vpop.f32.mrb[23].mxu0 }
 0x4c9   : > { %v6906_v0 = vmul.f32 -1.442695, %v2550_v59  ;;  %v9614_v59 = vld [vmem:[#allocation7 + $0xcc] ss:$16 sps:$4 sm:$0xff]  }
 0x4e5   : > { %v2792_v38 = vpop.f32.mrb[24].mxu0 }
 0x4e6   : > { %v2793_v39 = vadd.f32 %v2792_v38, %v2709_v36  ;;  %v7624_v41 = vpop.f32.mrb[25].mxu0 }
 0x4e7   : > { %v2795_v42 = vpop.f32.mrb[26].mxu0 }
 0x4e8   : > { %v2798_v43 = vmax.f32 %v2793_v39, 0.0  ;;  %v7625_v45 = vpop.f32.mrb[27].mxu0 }
 0x4e9   : > { %v2573_v45 = vld [vmem:[#allocation2 + $0x1] sm:$0x1] }
 0x4ea   : > { %v2799_v46 = vpack.c.bf16 %v2798_v43, %v2798_v43 }
 0x4ec   : > { %v2801_v48 = vsel %vm9133_vm6, %v2799_v46, %v2800_v47 }
 0x4ed   : > { %2802 = vst [vmem:[#allocation3] sm:$0x1] %v2801_v48 }
 0x4f6   : > { %v2506_v51 = vpop.f32.mrb[16].mxu1 }
 0x4f7   : > { %v2507_v7 = vadd.f32 %v2506_v51, %v2455_v37  ;;  %v2508_v8 = vpop.f32.mrb[17].mxu1  ;;  %v2582_v37 = vld [vmem:[#allocation3 + $0x1] sm:$0x1] }
 0x4f8   : > { %v2509_v11 = vadd.f32 %v2508_v8, %v2459_v58  ;;  %v2510_v12 = vpop.f32.mrb[18].mxu1 }
 0x4f9   : > { %v6904_v15 = vmul.f32 -1.442695, %v2507_v7  ;;  %v2511_v16 = vpop.f32.mrb[19].mxu1  ;;  %v3454_v12 = vld [vmem:[%s9039_s28 + $0x4] sm:$0x1] }
 0x4fa   : > { %v6905_v57 = vmul.f32 -1.442695, %v2509_v11  ;;  %v8148_v11 = vld [vmem:[#allocation4] sm:$0xff]   ;;  %v9607_v16 = vld [vmem:[#allocation7 + $0xac] ss:$16 sps:$4 sm:$0xff]  }
 0x4fb   : > { %8444 = vpow2.f32 %v6904_v15  ;;  %v3455_v15 = vpack.c.bf16 %v3454_v12, %v3454_v12 }
 0x4fc   : > { %8446 = vpow2.f32 %v6905_v57  ;;  %v8175_v57 = vld [vmem:[#allocation9 + $0x8] sm:$0xff]  }
 0x4fd   : > { %8448 = vpow2.f32 %v6906_v0  ;;  %v8179_v0 = vld [vmem:[#allocation9 + $0x10] sm:$0xff]  }
 0x4fe   : > { %8450 = vtanh.f32 %v2548_v1  ;;  %v9621_v1 = vld [vmem:[#allocation7 + $0xec] ss:$16 sps:$4 sm:$0xff]  }
 0x505   : > { %v8445_v9 = vpop.eup %8444 }
 0x506   : > { %v8447_v13 = vpop.eup %8446  ;;  %v2557_v33 = vadd.f32 1.0, %v8445_v9  ;;  %v9623_v9 = vld [vmem:[#allocation7 + $0xe8] ss:$16 sps:$4 sm:$0xff]  }
 0x507   : > { %v2563_v35 = vadd.f32 1.0, %v8447_v13  ;;  %v8449_v36 = vpop.eup %8448  ;;  %v8183_v13 = vld [vmem:[#allocation9 + $0x18] sm:$0xff]  }
 0x508   : > { %8452 = vrcp.f32 %v2557_v33  ;;  %v8451_v38 = vpop.eup %8450  ;;  %v2570_v42 = vadd.f32 1.0, %v8449_v36  ;;  %v9628_v33 = vld [vmem:[#allocation7 + $0x10c] ss:$16 sps:$4 sm:$0xff]   ;;  %v8187_v36 = vld [vmem:[#allocation9 + $0x20] sm:$0xff]  }
 0x509   : > { %8454 = vrcp.f32 %v2563_v35  ;;  %v9630_v35 = vld [vmem:[#allocation7 + $0x108] ss:$16 sps:$4 sm:$0xff]  }
 0x50a   : > { %8456 = vrcp.f32 %v2570_v42  ;;  %v9641_v42 = vld [vmem:[#allocation7 + $0x14c] ss:$16 sps:$4 sm:$0xff]  }
 0x512   : > { %v8453_v39 = vpop.eup %8452 }
 0x513   : > { %v8455_v41 = vpop.eup %8454  ;;  %v2575_v43 = vmul.f32 %v8453_v39, %v8451_v38  ;;  %v9635_v38 = vld [vmem:[#allocation7 + $0x12c] ss:$16 sps:$4 sm:$0xff]   ;;  %v9637_v39 = vld [vmem:[#allocation7 + $0x128] ss:$16 sps:$4 sm:$0xff]  }
 0x514   : > { %v2574_v29 = vmul.f32 %v8455_v41, %v2573_v45  ;;  %v8457_v28 = vpop.eup %8456  ;;  %v8191_v41 = vld [vmem:[#allocation9 + $0x28] sm:$0xff]  }
 0x515   : > { %v9647_v45 = vld [vmem:[#allocation7 + $0x16c] ss:$16 sps:$4 sm:$0xff]  }
 0x516   : > { %v2576_v46 = vadd.f32 %v2575_v43, %v2574_v29  ;;  %v9644_v43 = vld [vmem:[#allocation7 + $0x148] ss:$16 sps:$4 sm:$0xff]   ;;  %v8195_v29 = vld [vmem:[#allocation9 + $0x30] sm:$0xff]  }
 0x518   : > { %8458 = vtanh.f32 %v2576_v46  ;;  %2580 = vst [vmem:[#allocation2 + $0x1] sm:$0x1] %v2576_v46  ;;  %v9651_v46 = vld [vmem:[#allocation7 + $0x168] ss:$16 sps:$4 sm:$0xff]  }
 0x522   : > { %v8459_v47 = vpop.eup %8458 }
 0x523   : > { %v2578_v48 = vmul.f32 %v8459_v47, %v8457_v28  ;;  %v9654_v28 = vld [vmem:[#allocation7 + $0x18c] ss:$16 sps:$4 sm:$0xff]  }
 0x524   : > { %v8199_v47 = vld [vmem:[#allocation9 + $0x38] sm:$0xff]  }
 0x525   : > { %2579 = vst [vmem:[#allocation2] sm:$0x1] %v2578_v48  ;;  %v2581_v49 = vpack.c.bf16 %v2578_v48, %v2578_v48  ;;  %v9657_v48 = vld [vmem:[#allocation7 + $0x4] ss:$16 sps:$4 sm:$0xff]  }
 0x527   : > { %v2583_v58 = vsel %vm9133_vm6, %v2581_v49, %v2582_v37  ;;  %7603 = vmatmul.mubr.bf16.vlgmr.msra.gmra.mrb[20].mxu1 %v2581_v49  ;;  %v9660_v49 = vld [vmem:[#allocation7 + $0x188] ss:$16 sps:$4 sm:$0xff]   ;;  %v9665_v37 = vld [vmem:[#allocation7 + $0x1ac] ss:$16 sps:$4 sm:$0xff]  }
 0x528   : > { %2584 = vst [vmem:[#allocation3 + $0x1] sm:$0x1] %v2583_v58  ;;  %3236 = vmatpush1.bf16.msra.mxu1 %v9358_v54  ;;  %v9667_v58 = vld [vmem:[#allocation7 + $0x1a8] ss:$16 sps:$4 sm:$0xff]  }
 0x529   : > { %3237 = vmatprep.subr.bf16.mxu1 %v9360_v18  ;;  %v8149_v18 = vld [vmem:[#allocation4 + $0x8] sm:$0xff]  }
 0x52c   : > { %3238 = vmatpush1.bf16.msra.mxu1 %v9365_v21  ;;  %v8150_v21 = vld [vmem:[#allocation4 + $0x10] sm:$0xff]  }
 0x52d   : > { %3239 = vmatprep.subr.bf16.mxu1 %v9368_v22  ;;  %v8151_v22 = vld [vmem:[#allocation4 + $0x18] sm:$0xff]  }
 0x52f   : > { %v6923_v51 = vld.sshfl [vmem:[#allocation3] sm:$0x11 pattern:$0x75316420] }
 0x530   : > { %3240 = vmatpush1.bf16.msra.mxu1 %v9371_v23  ;;  %v2877_v7 = vcombine.high %v6923_v51, %v6923_v51  ;;  %v2884_v54 = vrot.slane %v6923_v51, %v9142_v34  ;;  %v8152_v23 = vld [vmem:[#allocation4 + $0x20] sm:$0xff]   ;;  %v9671_v51 = vld [vmem:[#allocation7 + $0x1cc] ss:$16 sps:$4 sm:$0xff]  }
 0x531   : > { %3241 = vmatprep.subr.bf16.mxu1 %v9374_v25  ;;  %v10408_v25 = vld [vmem:[#allocation24_spill] sm:$0xff] }
 0x532   : > { %v2891_v8 = vrot.slane %v2877_v7, %v9142_v34  ;;  %v9673_v7 = vld [vmem:[#allocation7 + $0x1c8] ss:$16 sps:$4 sm:$0xff]  }
 0x534   : > { %3242 = vmatpush1.bf16.msra.mxu1 %v9377_v27  ;;  %3267 = vmatprep.mubr.bf16.mxu1 %v2891_v8  ;;  %v10409_v27 = vld [vmem:[#allocation25_spill] sm:$0xff] }
 0x535   : > { %3308 = vmatprep.mubr.bf16.mxu0 %v2891_v8  ;;  %3243 = vmatprep.subr.bf16.mxu1 %v9380_v61  ;;  %v8153_v61 = vld [vmem:[#allocation4 + $0x28] sm:$0xff]  }
 0x536   : > { %3309 = vmatmul.mubr.bf16.vlgmr.msra.gmra.mrb[28].mxu0 %v2884_v54  ;;  %v9677_v8 = vld [vmem:[#allocation7 + $0x1ec] ss:$16 sps:$4 sm:$0xff]  }
 0x537   : > { %7647 = vmatpush3.bf16.msra.mxu0 %v8148_v11  ;;  %7662 = vmatprep.mubr.msk.bf16.mxu0 %vm8807_vm3, %v10407_v3  ;;  %v9679_v11 = vld [vmem:[#allocation7 + $0x1e8] ss:$16 sps:$4 sm:$0xff]  }
 0x538   : > { %3244 = vmatpush1.bf16.msra.mxu1 %v9387_v40  ;;  %7648 = vmatprep.subr.bf16.mxu0 %v10407_v3  ;;  %v10410_v40 = vld [vmem:[#allocation26_spill] sm:$0xff] }
 0x539   : > { %3245 = vmatprep.subr.bf16.mxu1 %v9390_v50  ;;  %v10411_v50 = vld [vmem:[#allocation27_spill] sm:$0xff] }
 0x53b   : > { %7649 = vmatpush3.bf16.msra.mxu0 %v8149_v18 }
 0x53c   : > { %3246 = vmatpush1.bf16.msra.mxu1 %v9397_v32  ;;  %7650 = vmatprep.subr.bf16.mxu0 %v10407_v3  ;;  %v8154_v32 = vld [vmem:[#allocation4 + $0x30] sm:$0xff]  }
 0x53d   : > { %3247 = vmatprep.subr.bf16.mxu1 %v9400_v52  ;;  %v10412_v52 = vld [vmem:[#allocation28_spill] sm:$0xff] }
 0x53f   : > { %7651 = vmatpush3.bf16.msra.mxu0 %v8150_v21 }
 0x540   : > { %3248 = vmatpush1.bf16.msra.mxu1 %v9404_v14  ;;  %7652 = vmatprep.subr.bf16.mxu0 %v10407_v3  ;;  %v10413_v14 = vld [vmem:[#allocation29_spill] sm:$0xff] }
 0x541   : > { %3249 = vmatprep.subr.bf16.mxu1 %v9407_v53  ;;  %v8155_v53 = vld [vmem:[#allocation4 + $0x38] sm:$0xff]  }
 0x543   : > { %7653 = vmatpush3.bf16.msra.mxu0 %v8151_v22 }
 0x544   : > { %3250 = vmatpush1.bf16.msra.mxu1 %v10408_v25  ;;  %7654 = vmatprep.subr.bf16.mxu0 %v10407_v3 }
 0x545   : > { %3251 = vmatprep.subr.bf16.mxu1 %v10409_v27 }
 0x547   : > { %7655 = vmatpush3.bf16.msra.mxu0 %v8152_v23 }
 0x548   : > { %3252 = vmatpush1.bf16.msra.mxu1 %v10410_v40  ;;  %7656 = vmatprep.subr.bf16.mxu0 %v10407_v3 }
 0x549   : > { %3253 = vmatprep.subr.bf16.mxu1 %v10411_v50 }
 0x54b   : > { %7657 = vmatpush3.bf16.msra.mxu0 %v8153_v61 }
 0x54c   : > { %3254 = vmatpush1.bf16.msra.mxu1 %v10412_v52  ;;  %7658 = vmatprep.subr.bf16.mxu0 %v10407_v3 }
 0x54d   : > { %3255 = vmatprep.subr.bf16.mxu1 %v10413_v14 }
 0x54f   : > { %7659 = vmatpush3.bf16.msra.mxu0 %v8154_v32  ;;  %v3472_v32 = vld [vmem:[%s10342_s2] sm:$0x1] }
 0x550   : > { %3256 = vmatpush1.bf16.msra.mxu1 %v9432_v20  ;;  %7660 = vmatprep.subr.bf16.mxu0 %v10407_v3  ;;  %v9577_v20 = vld [vmem:[#allocation7 + $0x8] ss:$16 sps:$4 sm:$0xff]  }
 0x551   : > { %3257 = vmatprep.subr.bf16.mxu1 %v9435_v26  ;;  %v9589_v26 = vld [vmem:[#allocation7 + $0x4c] ss:$16 sps:$4 sm:$0xff]  }
 0x553   : > { %7661 = vmatpush3.bf16.msra.mxu0 %v8155_v53 }
 0x554   : > { %3258 = vmatpush1.bf16.msra.mxu1 %v9440_v4  ;;  %v9579_v4 = vld [vmem:[#allocation7 + $0xc] ss:$16 sps:$4 sm:$0xff]  }
 0x555   : > { %3259 = vmatprep.subr.bf16.mxu1 %v9443_v31  ;;  %4039 = vmatprep.subr.bf16.mxu0 %v9579_v4  ;;  %v9591_v31 = vld [vmem:[#allocation7 + $0x48] ss:$16 sps:$4 sm:$0xff]  }
 0x556   : > { %7663 = vmatmul.mubr.bf16.vlgmr.msra.gmra.mrb[32].mxu0 %v3455_v15 }
 0x557   : > { %4040 = vmatpush1.bf16.msra.mxu0 %v9577_v20 }
 0x558   : > { %3260 = vmatpush1.bf16.msra.mxu1 %v9446_v17  ;;  %v9585_v17 = vld [vmem:[#allocation7 + $0x28] ss:$16 sps:$4 sm:$0xff]  }
 0x559   : > { %3261 = vmatprep.subr.bf16.mxu1 %v9450_v55  ;;  %v9595_v55 = vld [vmem:[#allocation7 + $0x6c] ss:$16 sps:$4 sm:$0xff]  }
 0x55c   : > { %3262 = vmatpush1.bf16.msra.mxu1 %v9454_v6  ;;  %v9583_v6 = vld [vmem:[#allocation7 + $0x2c] ss:$16 sps:$4 sm:$0xff]  }
 0x55d   : > { %3263 = vmatprep.subr.bf16.mxu1 %v9458_v19  ;;  %4041 = vmatprep.subr.bf16.mxu0 %v9583_v6  ;;  %v9597_v19 = vld [vmem:[#allocation7 + $0x68] ss:$16 sps:$4 sm:$0xff]  }
 0x55e   : > { %4042 = vmatpush1.bf16.msra.mxu0 %v9585_v17 }
 0x55f   : > { %4043 = vmatprep.subr.bf16.mxu0 %v9589_v26 }
 0x560   : > { %3264 = vmatpush1.bf16.msra.mxu1 %v9462_v63  ;;  %v9601_v63 = vld [vmem:[#allocation7 + $0x8c] ss:$16 sps:$4 sm:$0xff]  }
 0x561   : > { %3265 = vmatprep.subr.bf16.mxu1 %v9466_v62  ;;  %v9603_v62 = vld [vmem:[#allocation7 + $0x88] ss:$16 sps:$4 sm:$0xff]  }
 0x562   : > { %4044 = vmatpush1.bf16.msra.mxu0 %v9591_v31 }
 0x563   : > { %4045 = vmatprep.subr.bf16.mxu0 %v9595_v55 }
 0x564   : > { %3266 = vmatpush1.bf16.msra.mxu1 %v9470_v2  ;;  %v8171_v2 = vld [vmem:[#allocation9] sm:$0xff]  }
 0x565   : > { %7626 = vmatprep.subr.bf16.mxu1 %v10407_v3 }
 0x566   : > { %4046 = vmatpush1.bf16.msra.mxu0 %v9597_v19 }
 0x567   : > { %3268 = vmatmul.mubr.bf16.vlgmr.msra.gmra.mrb[24].mxu1 %v2884_v54  ;;  %4047 = vmatprep.subr.bf16.mxu0 %v9601_v63  ;;  %v2601_v54 = vld [vmem:[%s10346_s6] sm:$0x1] }
 0x568   : > { %7642 = vmatprep.mubr.msk.bf16.mxu1 %vm8807_vm3, %v10407_v3  ;;  %7627 = vmatpush3.bf16.msra.mxu1 %v8171_v2 }
 0x569   : > { %7628 = vmatprep.subr.bf16.mxu1 %v10407_v3 }
 0x56a   : > { %4048 = vmatpush1.bf16.msra.mxu0 %v9603_v62 }
 0x56b   : > { %4049 = vmatprep.subr.bf16.mxu0 %v9607_v16 }
 0x56c   : > { %7629 = vmatpush3.bf16.msra.mxu1 %v8175_v57 }
 0x56d   : > { %7630 = vmatprep.subr.bf16.mxu1 %v10407_v3 }
 0x56e   : > { %4050 = vmatpush1.bf16.msra.mxu0 %v9609_v56 }
 0x56f   : > { %4051 = vmatprep.subr.bf16.mxu0 %v9614_v59 }
 0x570   : > { %7631 = vmatpush3.bf16.msra.mxu1 %v8179_v0  ;;  %v3563_v0 = vld [vmem:[#allocation3] sm:$0x1] }
 0x571   : > { %7632 = vmatprep.subr.bf16.mxu1 %v10407_v3 }
 0x572   : > { %4052 = vmatpush1.bf16.msra.mxu0 %v9616_v60 }
 0x573   : > { %4053 = vmatprep.subr.bf16.mxu0 %v9621_v1 }
 0x574   : > { %7633 = vmatpush3.bf16.msra.mxu1 %v8183_v13 }
 0x575   : > { %7634 = vmatprep.subr.bf16.mxu1 %v10407_v3 }
 0x576   : > { %4054 = vmatpush1.bf16.msra.mxu0 %v9623_v9 }
 0x577   : > { %4055 = vmatprep.subr.bf16.mxu0 %v9628_v33 }
 0x578   : > { %7635 = vmatpush3.bf16.msra.mxu1 %v8187_v36  ;;  %v2868_v36 = vld [vmem:[%s10344_s4] sm:$0xf] }
 0x579   : > { %7636 = vmatprep.subr.bf16.mxu1 %v10407_v3 }
 0x57a   : > { %4056 = vmatpush1.bf16.msra.mxu0 %v9630_v35 }
 0x57b   : > { %4057 = vmatprep.subr.bf16.mxu0 %v9635_v38 }
 0x57c   : > { %7637 = vmatpush3.bf16.msra.mxu1 %v8191_v41  ;;  %v3218_v41 = vrot.slane %v2868_v36, %v9181_v5 }
 0x57d   : > { %7638 = vmatprep.subr.bf16.mxu1 %v10407_v3 }
 0x57e   : > { %4058 = vmatpush1.bf16.msra.mxu0 %v9637_v39 }
 0x57f   : > { %4059 = vmatprep.subr.bf16.mxu0 %v9641_v42 }
 0x580   : > { %7639 = vmatpush3.bf16.msra.mxu1 %v8195_v29  ;;  %v3222_v29 = vrot.slane %v2868_v36, %v9187_v10 }
 0x581   : > { %7640 = vmatprep.subr.bf16.mxu1 %v10407_v3 }
 0x582   : > { %4060 = vmatpush1.bf16.msra.mxu0 %v9644_v43 }
 0x583   : > { %4061 = vmatprep.subr.bf16.mxu0 %v9647_v45 }
 0x584   : > { %7641 = vmatpush3.bf16.msra.mxu1 %v8199_v47 }
 0x585   : > { %3998 = vmatprep.subr.bf16.mxu1 %v9657_v48 }
 0x586   : > { %4062 = vmatpush1.bf16.msra.mxu0 %v9651_v46 }
 0x587   : > { %4063 = vmatprep.subr.bf16.mxu0 %v9654_v28 }
 0x58a   : > { %4064 = vmatpush1.bf16.msra.mxu0 %v9660_v49 }
 0x58b   : > { %4065 = vmatprep.subr.bf16.mxu0 %v9665_v37 }
 0x58e   : > { %4066 = vmatpush1.bf16.msra.mxu0 %v9667_v58 }
 0x58f   : > { %4067 = vmatprep.subr.bf16.mxu0 %v9671_v51 }
 0x592   : > { %4068 = vmatpush1.bf16.msra.mxu0 %v9673_v7 }
 0x593   : > { %4069 = vmatprep.subr.bf16.mxu0 %v9677_v8 }
 0x596   : > { %4070 = vmatpush1.bf16.msra.mxu0 %v9679_v11 }
 0x597   : > { %7686 = vmatprep.subr.bf16.mxu0 %v10407_v3 }
 0x5fa   : > { %v2684_v18 = vpop.f32.mrb[20].mxu1 }
 0x5fb   : > { %v2685_v21 = vadd.f32 %v2684_v18, %v2601_v54  ;;  %v7604_v22 = vpop.f32.mrb[21].mxu1 }
 0x5fc   : > { %v2687_v23 = vpop.f32.mrb[22].mxu1 }
 0x5fd   : > { %2690 = vst [vmem:[%s9041_s16 + $0x2] sm:$0x1] %v2685_v21  ;;  %v7605_v25 = vpop.f32.mrb[23].mxu1 }
 0x609   : > { %v3310_v27 = vpop.f32.mrb[28].mxu0 }
 0x60a   : > { %v3312_v61 = vpop.f32.mrb[29].mxu0 }
 0x60b   : > { %v3314_v40 = vpop.f32.mrb[30].mxu0 }
 0x60c   : > { %v3315_v50 = vpop.f32.mrb[31].mxu0  ;;  %v3230_v40 = vrot.slane %v2868_v36, %v9192_v30 }
 0x629   : > { %v3555_v52 = vpop.f32.mrb[32].mxu0 }
 0x62a   : > { %v3556_v14 = vadd.f32 %v3555_v52, %v3472_v32  ;;  %v7664_v53 = vpop.f32.mrb[33].mxu0  ;;  %v3313_v32 = vadd.f32 %v3312_v61, %v3230_v40  ;;  %v3226_v52 = vrot.slane %v2868_v36, %v9196_v44  ;;  %v9702_v40 = vld [vmem:[#allocation7 + $0x24] ss:$16 sps:$4 sm:$0xff]  }
 0x62b   : > { %v3558_v12 = vpop.f32.mrb[34].mxu0 }
 0x62c   : > { %v3561_v15 = vmax.f32 %v3556_v14, 0.0  ;;  %v7665_v2 = vpop.f32.mrb[35].mxu0  ;;  %v6990_v14 = vmul.f32 -1.442695, %v3313_v32  ;;  %v3311_v53 = vadd.f32 %v3310_v27, %v3226_v52  ;;  %v9707_v52 = vld [vmem:[#allocation7 + $0x20] ss:$16 sps:$4 sm:$0xff]  }
 0x62e   : > { %v3562_v57 = vpack.c.bf16 %v3561_v15, %v3561_v15 }
 0x630   : > { %v3564_v13 = vsel %vm9133_vm6, %v3562_v57, %v3563_v0 }
 0x631   : > { %3565 = vst [vmem:[#allocation3] sm:$0x1] %v3564_v13 }
 0x63a   : > { %v3269_v47 = vpop.f32.mrb[24].mxu1 }
 0x63b   : > { %v3270_v54 = vadd.f32 %v3269_v47, %v3218_v41  ;;  %v3271_v18 = vpop.f32.mrb[25].mxu1 }
 0x63c   : > { %v3272_v21 = vadd.f32 %v3271_v18, %v3222_v29  ;;  %v3273_v22 = vpop.f32.mrb[26].mxu1  ;;  %v3336_v18 = vld [vmem:[#allocation2 + $0x1] sm:$0x1] }
 0x63d   : > { %v6988_v23 = vmul.f32 -1.442695, %v3270_v54  ;;  %v3274_v25 = vpop.f32.mrb[27].mxu1 }
 0x63e   : > { %v6989_v50 = vmul.f32 -1.442695, %v3272_v21 }
 0x63f   : > { %8460 = vpow2.f32 %v6988_v23  ;;  %v9700_v23 = vld [vmem:[#allocation7] ss:$16 sps:$4 sm:$0xff]  }
 0x640   : > { %8462 = vpow2.f32 %v6989_v50  ;;  %v3345_v50 = vld [vmem:[#allocation3 + $0x1] sm:$0x1] }
 0x641   : > { %8464 = vpow2.f32 %v6990_v14  ;;  %v9710_v14 = vld [vmem:[#allocation7 + $0x44] ss:$16 sps:$4 sm:$0xff]  }
 0x642   : > { %8466 = vtanh.f32 %v3311_v53  ;;  %v9713_v53 = vld [vmem:[#allocation7 + $0x40] ss:$16 sps:$4 sm:$0xff]  }
 0x649   : > { %v8461_v12 = vpop.eup %8460 }
 0x64a   : > { %v8463_v15 = vpop.eup %8462  ;;  %v3320_v2 = vadd.f32 1.0, %v8461_v12  ;;  %v9716_v12 = vld [vmem:[#allocation7 + $0x64] ss:$16 sps:$4 sm:$0xff]  }
 0x64b   : > { %v3326_v57 = vadd.f32 1.0, %v8463_v15  ;;  %v8465_v0 = vpop.eup %8464 }
 0x64c   : > { %8468 = vrcp.f32 %v3320_v2  ;;  %v8467_v13 = vpop.eup %8466  ;;  %v3333_v47 = vadd.f32 1.0, %v8465_v0  ;;  %v9719_v2 = vld [vmem:[#allocation7 + $0x60] ss:$16 sps:$4 sm:$0xff]   ;;  %v9722_v0 = vld [vmem:[#allocation7 + $0x84] ss:$16 sps:$4 sm:$0xff]  }
 0x64d   : > { %8470 = vrcp.f32 %v3326_v57 }
 0x64e   : > { %8472 = vrcp.f32 %v3333_v47  ;;  %v9729_v47 = vld [vmem:[#allocation7 + $0x80] ss:$16 sps:$4 sm:$0xff]  }
 0x656   : > { %v8469_v41 = vpop.eup %8468 }
 0x657   : > { %v8471_v29 = vpop.eup %8470  ;;  %v3338_v54 = vmul.f32 %v8469_v41, %v8467_v13  ;;  %v8224_v41 = vld [vmem:[#allocation4] sm:$0xff]  }
 0x658   : > { %v3337_v61 = vmul.f32 %v8471_v29, %v3336_v18  ;;  %v8473_v27 = vpop.eup %8472  ;;  %v8228_v18 = vld [vmem:[#allocation4 + $0x8] sm:$0xff]  }
 0x65a   : > { %v3339_v21 = vadd.f32 %v3338_v54, %v3337_v61  ;;  %v9732_v54 = vld [vmem:[#allocation7 + $0xa4] ss:$16 sps:$4 sm:$0xff]   ;;  %v9739_v61 = vld [vmem:[#allocation7 + $0xa0] ss:$16 sps:$4 sm:$0xff]  }
 0x65c   : > { %8474 = vtanh.f32 %v3339_v21  ;;  %3343 = vst [vmem:[#allocation2 + $0x1] sm:$0x1] %v3339_v21  ;;  %v9742_v21 = vld [vmem:[#allocation7 + $0xc4] ss:$16 sps:$4 sm:$0xff]  }
 0x666   : > { %v8475_v36 = vpop.eup %8474 }
 0x667   : > { %v3341_v22 = vmul.f32 %v8475_v36, %v8473_v27  ;;  %v8232_v27 = vld [vmem:[#allocation4 + $0x10] sm:$0xff]  }
 0x668   : > { %v9746_v36 = vld [vmem:[#allocation7 + $0xc0] ss:$16 sps:$4 sm:$0xff]  }
 0x669   : > { %3342 = vst [vmem:[#allocation2] sm:$0x1] %v3341_v22  ;;  %v3344_v25 = vpack.c.bf16 %v3341_v22, %v3341_v22  ;;  %v9749_v22 = vld [vmem:[#allocation7 + $0xe4] ss:$16 sps:$4 sm:$0xff]  }
 0x66b   : > { %v3346_v32 = vsel %vm9133_vm6, %v3344_v25, %v3345_v50  ;;  %7643 = vmatmul.mubr.bf16.vlgmr.msra.gmra.mrb[28].mxu1 %v3344_v25  ;;  %v8236_v25 = vld [vmem:[#allocation4 + $0x18] sm:$0xff]   ;;  %v9753_v50 = vld [vmem:[#allocation7 + $0xe0] ss:$16 sps:$4 sm:$0xff]  }
 0x66c   : > { %3347 = vst [vmem:[#allocation3 + $0x1] sm:$0x1] %v3346_v32  ;;  %3999 = vmatpush1.bf16.msra.mxu1 %v9700_v23  ;;  %10414 = vst [vmem:[#allocation24_spill] sm:$0xff] %v9753_v50  ;;  %v9756_v32 = vld [vmem:[#allocation7 + $0x104] ss:$16 sps:$4 sm:$0xff]  }
 0x66d   : > { %4000 = vmatprep.subr.bf16.mxu1 %v9702_v40  ;;  %10415 = vst [vmem:[#allocation25_spill] sm:$0xff] %v9756_v32 }
 0x670   : > { %4001 = vmatpush1.bf16.msra.mxu1 %v9707_v52 }
 0x671   : > { %4002 = vmatprep.subr.bf16.mxu1 %v9710_v14 }
 0x673   : > { %v7007_v15 = vld.sshfl [vmem:[#allocation3] sm:$0x11 pattern:$0x75316420] }
 0x674   : > { %4003 = vmatpush1.bf16.msra.mxu1 %v9713_v53  ;;  %v3640_v57 = vcombine.high %v7007_v15, %v7007_v15  ;;  %v9727_v29 = vrot.slane %v7007_v15, %v9142_v34  ;;  %v8240_v15 = vld [vmem:[#allocation4 + $0x20] sm:$0xff]  }
 0x675   : > { %4004 = vmatprep.subr.bf16.mxu1 %v9716_v12 }
 0x676   : > { %v3654_v13 = vrot.slane %v3640_v57, %v9142_v34  ;;  %v9760_v57 = vld [vmem:[#allocation7 + $0x100] ss:$16 sps:$4 sm:$0xff]  }
 0x677   : > { %10416 = vst [vmem:[#allocation26_spill] sm:$0xff] %v9760_v57 }
 0x678   : > { %4005 = vmatpush1.bf16.msra.mxu1 %v9719_v2  ;;  %4030 = vmatprep.mubr.bf16.mxu1 %v3654_v13 }
 0x679   : > { %4071 = vmatprep.mubr.bf16.mxu0 %v3654_v13  ;;  %4006 = vmatprep.subr.bf16.mxu1 %v9722_v0  ;;  %v9763_v13 = vld [vmem:[#allocation7 + $0x124] ss:$16 sps:$4 sm:$0xff]  }
 0x67a   : > { %4072 = vmatmul.mubr.bf16.vlgmr.msra.gmra.mrb[36].mxu0 %v9727_v29  ;;  %10417 = vst [vmem:[#allocation27_spill] sm:$0xff] %v9763_v13 }
 0x67b   : > { %7687 = vmatpush3.bf16.msra.mxu0 %v8224_v41  ;;  %7702 = vmatprep.mubr.msk.bf16.mxu0 %vm8807_vm3, %v10407_v3  ;;  %v8244_v41 = vld [vmem:[#allocation4 + $0x28] sm:$0xff]  }
 0x67c   : > { %4007 = vmatpush1.bf16.msra.mxu1 %v9729_v47  ;;  %7688 = vmatprep.subr.bf16.mxu0 %v10407_v3 }
 0x67d   : > { %4008 = vmatprep.subr.bf16.mxu1 %v9732_v54 }
 0x67f   : > { %7689 = vmatpush3.bf16.msra.mxu0 %v8228_v18  ;;  %v9767_v18 = vld [vmem:[#allocation7 + $0x120] ss:$16 sps:$4 sm:$0xff]  }
 0x680   : > { %4009 = vmatpush1.bf16.msra.mxu1 %v9739_v61  ;;  %7690 = vmatprep.subr.bf16.mxu0 %v10407_v3  ;;  %10418 = vst [vmem:[#allocation28_spill] sm:$0xff] %v9767_v18 }
 0x681   : > { %4010 = vmatprep.subr.bf16.mxu1 %v9742_v21 }
 0x683   : > { %7691 = vmatpush3.bf16.msra.mxu0 %v8232_v27  ;;  %v9770_v27 = vld [vmem:[#allocation7 + $0x144] ss:$16 sps:$4 sm:$0xff]  }
 0x684   : > { %4011 = vmatpush1.bf16.msra.mxu1 %v9746_v36  ;;  %7692 = vmatprep.subr.bf16.mxu0 %v10407_v3  ;;  %10419 = vst [vmem:[#allocation29_spill] sm:$0xff] %v9770_v27 }
 0x685   : > { %4012 = vmatprep.subr.bf16.mxu1 %v9749_v22 }
 0x687   : > { %7693 = vmatpush3.bf16.msra.mxu0 %v8236_v25  ;;  %v8248_v25 = vld [vmem:[#allocation4 + $0x30] sm:$0xff]  }
 0x688   : > { %4013 = vmatpush1.bf16.msra.mxu1 %v9753_v50  ;;  %7694 = vmatprep.subr.bf16.mxu0 %v10407_v3  ;;  %v4217_v50 = vld [vmem:[%s9039_s28 + $0x5] sm:$0x1] }
 0x689   : > { %4014 = vmatprep.subr.bf16.mxu1 %v9756_v32  ;;  %v9774_v32 = vld [vmem:[#allocation7 + $0x140] ss:$16 sps:$4 sm:$0xff]  }
 0x68b   : > { %7695 = vmatpush3.bf16.msra.mxu0 %v8240_v15  ;;  %v9777_v15 = vld [vmem:[#allocation7 + $0x164] ss:$16 sps:$4 sm:$0xff]  }
 0x68c   : > { %4015 = vmatpush1.bf16.msra.mxu1 %v9760_v57  ;;  %7696 = vmatprep.subr.bf16.mxu0 %v10407_v3  ;;  %10420 = vst [vmem:[#allocation30_spill] sm:$0xff] %v9777_v15  ;;  %v8252_v57 = vld [vmem:[#allocation4 + $0x38] sm:$0xff]  }
 0x68d   : > { %4016 = vmatprep.subr.bf16.mxu1 %v9763_v13  ;;  %v9782_v13 = vld [vmem:[#allocation7 + $0x160] ss:$16 sps:$4 sm:$0xff]  }
 0x68f   : > { %7697 = vmatpush3.bf16.msra.mxu0 %v8244_v41  ;;  %v9785_v41 = vld [vmem:[#allocation7 + $0x184] ss:$16 sps:$4 sm:$0xff]  }
 0x690   : > { %4017 = vmatpush1.bf16.msra.mxu1 %v9767_v18  ;;  %7698 = vmatprep.subr.bf16.mxu0 %v10407_v3  ;;  %v4218_v18 = vpack.c.bf16 %v4217_v50, %v4217_v50  ;;  %v9800_v50 = vld [vmem:[#allocation7 + $0x1c4] ss:$16 sps:$4 sm:$0xff]  }
 0x691   : > { %4018 = vmatprep.subr.bf16.mxu1 %v9770_v27  ;;  %v9788_v27 = vld [vmem:[#allocation7 + $0x180] ss:$16 sps:$4 sm:$0xff]  }
 0x693   : > { %7699 = vmatpush3.bf16.msra.mxu0 %v8248_v25  ;;  %v9792_v25 = vld [vmem:[#allocation7 + $0x1a4] ss:$16 sps:$4 sm:$0xff]  }
 0x694   : > { %4019 = vmatpush1.bf16.msra.mxu1 %v9774_v32  ;;  %7700 = vmatprep.subr.bf16.mxu0 %v10407_v3 }
 0x695   : > { %4020 = vmatprep.subr.bf16.mxu1 %v9777_v15  ;;  %v9796_v15 = vld [vmem:[#allocation7 + $0x1a0] ss:$16 sps:$4 sm:$0xff]  }
 0x697   : > { %7701 = vmatpush3.bf16.msra.mxu0 %v8252_v57 }
 0x698   : > { %4021 = vmatpush1.bf16.msra.mxu1 %v9782_v13  ;;  %4802 = vmatprep.subr.bf16.mxu0 %v9579_v4  ;;  %v9804_v4 = vld [vmem:[#allocation7 + $0x1c0] ss:$16 sps:$4 sm:$0xff]  }
 0x699   : > { %4022 = vmatprep.subr.bf16.mxu1 %v9785_v41 }
 0x69a   : > { %7703 = vmatmul.mubr.bf16.vlgmr.msra.gmra.mrb[40].mxu0 %v4218_v18 }
 0x69b   : > { %4803 = vmatpush1.bf16.msra.mxu0 %v9577_v20  ;;  %v9808_v20 = vld [vmem:[#allocation7 + $0x1e4] ss:$16 sps:$4 sm:$0xff]  }
 0x69c   : > { %4023 = vmatpush1.bf16.msra.mxu1 %v9788_v27  ;;  %4804 = vmatprep.subr.bf16.mxu0 %v9583_v6  ;;  %v9812_v6 = vld [vmem:[#allocation7 + $0x1e0] ss:$16 sps:$4 sm:$0xff]  }
 0x69d   : > { %4024 = vmatprep.subr.bf16.mxu1 %v9792_v25 }
 0x69f   : > { %4805 = vmatpush1.bf16.msra.mxu0 %v9585_v17  ;;  %v8268_v17 = vld [vmem:[#allocation9] sm:$0xff]  }
 0x6a0   : > { %4025 = vmatpush1.bf16.msra.mxu1 %v9796_v15  ;;  %4806 = vmatprep.subr.bf16.mxu0 %v9589_v26  ;;  %v8269_v26 = vld [vmem:[#allocation9 + $0x8] sm:$0xff]  }
 0x6a1   : > { %4026 = vmatprep.subr.bf16.mxu1 %v9800_v50 }
 0x6a3   : > { %4807 = vmatpush1.bf16.msra.mxu0 %v9591_v31  ;;  %v8270_v31 = vld [vmem:[#allocation9 + $0x10] sm:$0xff]  }
 0x6a4   : > { %4027 = vmatpush1.bf16.msra.mxu1 %v9804_v4  ;;  %4808 = vmatprep.subr.bf16.mxu0 %v9595_v55  ;;  %v8271_v55 = vld [vmem:[#allocation9 + $0x18] sm:$0xff]  }
 0x6a5   : > { %4028 = vmatprep.subr.bf16.mxu1 %v9808_v20 }
 0x6a7   : > { %4809 = vmatpush1.bf16.msra.mxu0 %v9597_v19  ;;  %v8272_v19 = vld [vmem:[#allocation9 + $0x20] sm:$0xff]  }
 0x6a8   : > { %4029 = vmatpush1.bf16.msra.mxu1 %v9812_v6  ;;  %4810 = vmatprep.subr.bf16.mxu0 %v9601_v63  ;;  %v8273_v63 = vld [vmem:[#allocation9 + $0x28] sm:$0xff]  }
 0x6a9   : > { %7666 = vmatprep.subr.bf16.mxu1 %v10407_v3 }
 0x6ab   : > { %4031 = vmatmul.mubr.bf16.vlgmr.msra.gmra.mrb[32].mxu1 %v9727_v29  ;;  %4811 = vmatpush1.bf16.msra.mxu0 %v9603_v62  ;;  %v8274_v62 = vld [vmem:[#allocation9 + $0x30] sm:$0xff]  }
 0x6ac   : > { %4812 = vmatprep.subr.bf16.mxu0 %v9607_v16  ;;  %7682 = vmatprep.mubr.msk.bf16.mxu1 %vm8807_vm3, %v10407_v3  ;;  %v8275_v16 = vld [vmem:[#allocation9 + $0x38] sm:$0xff]  }
 0x6ad   : > { %7667 = vmatpush3.bf16.msra.mxu1 %v8268_v17 }
 0x6ae   : > { %7668 = vmatprep.subr.bf16.mxu1 %v10407_v3 }
 0x6af   : > { %4813 = vmatpush1.bf16.msra.mxu0 %v9609_v56  ;;  %v3364_v56 = vld [vmem:[%s10346_s6] sm:$0x1] }
 0x6b0   : > { %4814 = vmatprep.subr.bf16.mxu0 %v9614_v59 }
 0x6b1   : > { %7669 = vmatpush3.bf16.msra.mxu1 %v8269_v26 }
 0x6b2   : > { %7670 = vmatprep.subr.bf16.mxu1 %v10407_v3 }
 0x6b3   : > { %4815 = vmatpush1.bf16.msra.mxu0 %v9616_v60 }
 0x6b4   : > { %4816 = vmatprep.subr.bf16.mxu0 %v9621_v1 }
 0x6b5   : > { %7671 = vmatpush3.bf16.msra.mxu1 %v8270_v31 }
 0x6b6   : > { %7672 = vmatprep.subr.bf16.mxu1 %v10407_v3 }
 0x6b7   : > { %4817 = vmatpush1.bf16.msra.mxu0 %v9623_v9 }
 0x6b8   : > { %4818 = vmatprep.subr.bf16.mxu0 %v9628_v33 }
 0x6b9   : > { %7673 = vmatpush3.bf16.msra.mxu1 %v8271_v55 }
 0x6ba   : > { %7674 = vmatprep.subr.bf16.mxu1 %v10407_v3 }
 0x6bb   : > { %4819 = vmatpush1.bf16.msra.mxu0 %v9630_v35 }
 0x6bc   : > { %4820 = vmatprep.subr.bf16.mxu0 %v9635_v38 }
 0x6bd   : > { %7675 = vmatpush3.bf16.msra.mxu1 %v8272_v19 }
 0x6be   : > { %7676 = vmatprep.subr.bf16.mxu1 %v10407_v3 }
 0x6bf   : > { %4821 = vmatpush1.bf16.msra.mxu0 %v9637_v39 }
 0x6c0   : > { %4822 = vmatprep.subr.bf16.mxu0 %v9641_v42 }
 0x6c1   : > { %7677 = vmatpush3.bf16.msra.mxu1 %v8273_v63 }
 0x6c2   : > { %7678 = vmatprep.subr.bf16.mxu1 %v10407_v3 }
 0x6c3   : > { %4823 = vmatpush1.bf16.msra.mxu0 %v9644_v43  ;;  %v4235_v43 = vld [vmem:[%s10342_s2] sm:$0x1] }
 0x6c4   : > { %4824 = vmatprep.subr.bf16.mxu0 %v9647_v45 }
 0x6c5   : > { %7679 = vmatpush3.bf16.msra.mxu1 %v8274_v62 }
 0x6c6   : > { %7680 = vmatprep.subr.bf16.mxu1 %v10407_v3 }
 0x6c7   : > { %4825 = vmatpush1.bf16.msra.mxu0 %v9651_v46 }
 0x6c8   : > { %4826 = vmatprep.subr.bf16.mxu0 %v9654_v28 }
 0x6c9   : > { %7681 = vmatpush3.bf16.msra.mxu1 %v8275_v16 }
 0x6ca   : > { %4761 = vmatprep.subr.bf16.mxu1 %v9657_v48 }
 0x6cb   : > { %4827 = vmatpush1.bf16.msra.mxu0 %v9660_v49 }
 0x6cc   : > { %4828 = vmatprep.subr.bf16.mxu0 %v9665_v37 }
 0x6cf   : > { %4829 = vmatpush1.bf16.msra.mxu0 %v9667_v58 }
 0x6d0   : > { %4830 = vmatprep.subr.bf16.mxu0 %v9671_v51  ;;  %v4326_v51 = vld [vmem:[#allocation3] sm:$0x1] }
 0x6d3   : > { %4831 = vmatpush1.bf16.msra.mxu0 %v9673_v7 }
 0x6d4   : > { %4832 = vmatprep.subr.bf16.mxu0 %v9677_v8  ;;  %v3631_v8 = vld [vmem:[%s10344_s4] sm:$0xf] }
 0x6d5   : > { %v3985_v29 = vrot.slane %v3631_v8, %v9187_v10  ;;  %v3993_v63 = vrot.slane %v3631_v8, %v9192_v30 }
 0x6d7   : > { %4833 = vmatpush1.bf16.msra.mxu0 %v9679_v11  ;;  %v3981_v11 = vrot.slane %v3631_v8, %v9181_v5 }
 0x6d8   : > { %7726 = vmatprep.subr.bf16.mxu0 %v10407_v3 }
 0x73e   : > { %v3447_v59 = vpop.f32.mrb[28].mxu1 }
 0x73f   : > { %v3448_v60 = vadd.f32 %v3447_v59, %v3364_v56  ;;  %v7644_v1 = vpop.f32.mrb[29].mxu1  ;;  %v3989_v56 = vrot.slane %v3631_v8, %v9196_v44  ;;  %v4108_v8 = vld [vmem:[#allocation3 + $0x1] sm:$0x1] }
 0x740   : > { %v3450_v9 = vpop.f32.mrb[30].mxu1 }
 0x741   : > { %3453 = vst [vmem:[%s9041_s16 + $0x3] sm:$0x1] %v3448_v60  ;;  %v7645_v33 = vpop.f32.mrb[31].mxu1 }
 0x74d   : > { %v4073_v35 = vpop.f32.mrb[36].mxu0 }
 0x74e   : > { %v4075_v38 = vpop.f32.mrb[37].mxu0  ;;  %v4074_v60 = vadd.f32 %v4073_v35, %v3989_v56  ;;  %v9956_v56 = vld [vmem:[#allocation7 + $0xcc] ss:$16 sps:$4 sm:$0xff]  }
 0x74f   : > { %v4077_v39 = vpop.f32.mrb[38].mxu0  ;;  %v4076_v16 = vadd.f32 %v4075_v38, %v3993_v63  ;;  %v9949_v63 = vld [vmem:[#allocation7 + $0xac] ss:$16 sps:$4 sm:$0xff]  }
 0x750   : > { %v4078_v42 = vpop.f32.mrb[39].mxu0 }
 0x751   : > { %v7074_v59 = vmul.f32 -1.442695, %v4076_v16  ;;  %v8303_v16 = vld [vmem:[#allocation9 + $0x8] sm:$0xff]  }
 0x76d   : > { %v4318_v45 = vpop.f32.mrb[40].mxu0 }
 0x76e   : > { %v4319_v46 = vadd.f32 %v4318_v45, %v4235_v43  ;;  %v7704_v28 = vpop.f32.mrb[41].mxu0 }
 0x76f   : > { %v4321_v48 = vpop.f32.mrb[42].mxu0 }
 0x770   : > { %v4324_v49 = vmax.f32 %v4319_v46, 0.0  ;;  %v7705_v37 = vpop.f32.mrb[43].mxu0 }
 0x772   : > { %v4325_v58 = vpack.c.bf16 %v4324_v49, %v4324_v49  ;;  %v4099_v49 = vld [vmem:[#allocation2 + $0x1] sm:$0x1] }
 0x774   : > { %v4327_v7 = vsel %vm9133_vm6, %v4325_v58, %v4326_v51 }
 0x775   : > { %4328 = vst [vmem:[#allocation3] sm:$0x1] %v4327_v7 }
 0x77e   : > { %v4032_v57 = vpop.f32.mrb[32].mxu1 }
 0x77f   : > { %v4033_v18 = vadd.f32 %v4032_v57, %v3981_v11  ;;  %v4034_v17 = vpop.f32.mrb[33].mxu1 }
 0x780   : > { %v4035_v26 = vadd.f32 %v4034_v17, %v3985_v29  ;;  %v4036_v31 = vpop.f32.mrb[34].mxu1  ;;  %v8276_v17 = vld [vmem:[#allocation4] sm:$0xff]  }
 0x781   : > { %v7072_v55 = vmul.f32 -1.442695, %v4033_v18  ;;  %v4037_v19 = vpop.f32.mrb[35].mxu1  ;;  %v10427_v31 = vld [vmem:[#allocation30_spill] sm:$0xff] }
 0x782   : > { %v7073_v62 = vmul.f32 -1.442695, %v4035_v26  ;;  %v4980_v26 = vld [vmem:[%s9039_s28 + $0x6] sm:$0x1]  ;;  %v8299_v19 = vld [vmem:[#allocation9] sm:$0xff]  }
 0x783   : > { %8476 = vpow2.f32 %v7072_v55  ;;  %v4981_v55 = vpack.c.bf16 %v4980_v26, %v4980_v26 }
 0x784   : > { %8478 = vpow2.f32 %v7073_v62  ;;  %v9951_v62 = vld [vmem:[#allocation7 + $0xa8] ss:$16 sps:$4 sm:$0xff]  }
 0x785   : > { %8480 = vpow2.f32 %v7074_v59  ;;  %v9958_v59 = vld [vmem:[#allocation7 + $0xc8] ss:$16 sps:$4 sm:$0xff]  }
 0x786   : > { %8482 = vtanh.f32 %v4074_v60  ;;  %v8307_v60 = vld [vmem:[#allocation9 + $0x10] sm:$0xff]  }
 0x78d   : > { %v8477_v1 = vpop.eup %8476 }
 0x78e   : > { %v8479_v9 = vpop.eup %8478  ;;  %v4083_v33 = vadd.f32 1.0, %v8477_v1  ;;  %v9963_v1 = vld [vmem:[#allocation7 + $0xec] ss:$16 sps:$4 sm:$0xff]  }
 0x78f   : > { %v4089_v39 = vadd.f32 1.0, %v8479_v9  ;;  %v8481_v42 = vpop.eup %8480  ;;  %v9965_v9 = vld [vmem:[#allocation7 + $0xe8] ss:$16 sps:$4 sm:$0xff]  }
 0x790   : > { %8484 = vrcp.f32 %v4083_v33  ;;  %v8483_v43 = vpop.eup %8482  ;;  %v4096_v28 = vadd.f32 1.0, %v8481_v42  ;;  %v8311_v33 = vld [vmem:[#allocation9 + $0x18] sm:$0xff]  }
 0x791   : > { %8486 = vrcp.f32 %v4089_v39  ;;  %v9970_v39 = vld [vmem:[#allocation7 + $0x10c] ss:$16 sps:$4 sm:$0xff]   ;;  %v9972_v42 = vld [vmem:[#allocation7 + $0x108] ss:$16 sps:$4 sm:$0xff]  }
 0x792   : > { %8488 = vrcp.f32 %v4096_v28  ;;  %v8319_v28 = vld [vmem:[#allocation9 + $0x28] sm:$0xff]  }
 0x79a   : > { %v8485_v45 = vpop.eup %8484 }
 0x79b   : > { %v8487_v46 = vpop.eup %8486  ;;  %v4101_v48 = vmul.f32 %v8485_v45, %v8483_v43  ;;  %v8315_v43 = vld [vmem:[#allocation9 + $0x20] sm:$0xff]   ;;  %v9977_v45 = vld [vmem:[#allocation7 + $0x12c] ss:$16 sps:$4 sm:$0xff]  }
 0x79c   : > { %v4100_v38 = vmul.f32 %v8487_v46, %v4099_v49  ;;  %v8489_v35 = vpop.eup %8488  ;;  %v9979_v46 = vld [vmem:[#allocation7 + $0x128] ss:$16 sps:$4 sm:$0xff]  }
 0x79d   : > { %v9986_v49 = vld [vmem:[#allocation7 + $0x148] ss:$16 sps:$4 sm:$0xff]  }
 0x79e   : > { %v4102_v37 = vadd.f32 %v4101_v48, %v4100_v38  ;;  %v9983_v48 = vld [vmem:[#allocation7 + $0x14c] ss:$16 sps:$4 sm:$0xff]  }
 0x79f   : > { %v9989_v38 = vld [vmem:[#allocation7 + $0x16c] ss:$16 sps:$4 sm:$0xff]  }
 0x7a0   : > { %8490 = vtanh.f32 %v4102_v37  ;;  %4106 = vst [vmem:[#allocation2 + $0x1] sm:$0x1] %v4102_v37  ;;  %v8323_v37 = vld [vmem:[#allocation9 + $0x30] sm:$0xff]  }
 0x7aa   : > { %v8491_v58 = vpop.eup %8490 }
 0x7ab   : > { %v4104_v51 = vmul.f32 %v8491_v58, %v8489_v35  ;;  %v9993_v35 = vld [vmem:[#allocation7 + $0x168] ss:$16 sps:$4 sm:$0xff]   ;;  %v9996_v58 = vld [vmem:[#allocation7 + $0x18c] ss:$16 sps:$4 sm:$0xff]  }
 0x7ad   : > { %4105 = vst [vmem:[#allocation2] sm:$0x1] %v4104_v51  ;;  %v4107_v7 = vpack.c.bf16 %v4104_v51, %v4104_v51  ;;  %v8327_v51 = vld [vmem:[#allocation9 + $0x38] sm:$0xff]  }
 0x7af   : > { %v4109_v11 = vsel %vm9133_vm6, %v4107_v7, %v4108_v8  ;;  %7683 = vmatmul.mubr.bf16.vlgmr.msra.gmra.mrb[36].mxu1 %v4107_v7  ;;  %v9999_v7 = vld [vmem:[#allocation7 + $0x4] ss:$16 sps:$4 sm:$0xff]   ;;  %v10002_v8 = vld [vmem:[#allocation7 + $0x188] ss:$16 sps:$4 sm:$0xff]  }
 0x7b0   : > { %4110 = vst [vmem:[#allocation3 + $0x1] sm:$0x1] %v4109_v11  ;;  %4762 = vmatpush1.bf16.msra.mxu1 %v9700_v23  ;;  %v10007_v11 = vld [vmem:[#allocation7 + $0x1ac] ss:$16 sps:$4 sm:$0xff]  }
 0x7b1   : > { %4763 = vmatprep.subr.bf16.mxu1 %v9702_v40  ;;  %v8277_v40 = vld [vmem:[#allocation4 + $0x8] sm:$0xff]  }
 0x7b4   : > { %4764 = vmatpush1.bf16.msra.mxu1 %v9707_v52  ;;  %v8278_v52 = vld [vmem:[#allocation4 + $0x10] sm:$0xff]  }
 0x7b5   : > { %4765 = vmatprep.subr.bf16.mxu1 %v9710_v14  ;;  %v8279_v14 = vld [vmem:[#allocation4 + $0x18] sm:$0xff]  }
 0x7b7   : > { %v7091_v29 = vld.sshfl [vmem:[#allocation3] sm:$0x11 pattern:$0x75316420] }
 0x7b8   : > { %4766 = vmatpush1.bf16.msra.mxu1 %v9713_v53  ;;  %v4403_v57 = vcombine.high %v7091_v29, %v7091_v29  ;;  %v4410_v23 = vrot.slane %v7091_v29, %v9142_v34  ;;  %v8280_v53 = vld [vmem:[#allocation4 + $0x20] sm:$0xff]   ;;  %v10009_v29 = vld [vmem:[#allocation7 + $0x1a8] ss:$16 sps:$4 sm:$0xff]  }
 0x7b9   : > { %4767 = vmatprep.subr.bf16.mxu1 %v9716_v12  ;;  %v10421_v12 = vld [vmem:[#allocation24_spill] sm:$0xff] }
 0x7ba   : > { %v4417_v18 = vrot.slane %v4403_v57, %v9142_v34  ;;  %v10013_v57 = vld [vmem:[#allocation7 + $0x1cc] ss:$16 sps:$4 sm:$0xff]  }
 0x7bc   : > { %4768 = vmatpush1.bf16.msra.mxu1 %v9719_v2  ;;  %4793 = vmatprep.mubr.bf16.mxu1 %v4417_v18  ;;  %v10422_v2 = vld [vmem:[#allocation25_spill] sm:$0xff] }
 0x7bd   : > { %4834 = vmatprep.mubr.bf16.mxu0 %v4417_v18  ;;  %4769 = vmatprep.subr.bf16.mxu1 %v9722_v0  ;;  %v8281_v0 = vld [vmem:[#allocation4 + $0x28] sm:$0xff]  }
 0x7be   : > { %4835 = vmatmul.mubr.bf16.vlgmr.msra.gmra.mrb[44].mxu0 %v4410_v23  ;;  %v10015_v18 = vld [vmem:[#allocation7 + $0x1c8] ss:$16 sps:$4 sm:$0xff]  }
 0x7bf   : > { %7727 = vmatpush3.bf16.msra.mxu0 %v8276_v17  ;;  %7742 = vmatprep.mubr.msk.bf16.mxu0 %vm8807_vm3, %v10407_v3  ;;  %v10019_v17 = vld [vmem:[#allocation7 + $0x1ec] ss:$16 sps:$4 sm:$0xff]  }
 0x7c0   : > { %4770 = vmatpush1.bf16.msra.mxu1 %v9729_v47  ;;  %7728 = vmatprep.subr.bf16.mxu0 %v10407_v3  ;;  %v10423_v47 = vld [vmem:[#allocation26_spill] sm:$0xff] }
 0x7c1   : > { %4771 = vmatprep.subr.bf16.mxu1 %v9732_v54  ;;  %v10424_v54 = vld [vmem:[#allocation27_spill] sm:$0xff] }
 0x7c3   : > { %7729 = vmatpush3.bf16.msra.mxu0 %v8277_v40  ;;  %v4127_v40 = vld [vmem:[%s10346_s6] sm:$0x1] }
 0x7c4   : > { %4772 = vmatpush1.bf16.msra.mxu1 %v9739_v61  ;;  %7730 = vmatprep.subr.bf16.mxu0 %v10407_v3  ;;  %v8282_v61 = vld [vmem:[#allocation4 + $0x30] sm:$0xff]  }
 0x7c5   : > { %4773 = vmatprep.subr.bf16.mxu1 %v9742_v21  ;;  %v10425_v21 = vld [vmem:[#allocation28_spill] sm:$0xff] }
 0x7c7   : > { %7731 = vmatpush3.bf16.msra.mxu0 %v8278_v52 }
 0x7c8   : > { %4774 = vmatpush1.bf16.msra.mxu1 %v9746_v36  ;;  %7732 = vmatprep.subr.bf16.mxu0 %v10407_v3  ;;  %v10426_v36 = vld [vmem:[#allocation29_spill] sm:$0xff] }
 0x7c9   : > { %4775 = vmatprep.subr.bf16.mxu1 %v9749_v22  ;;  %v8283_v22 = vld [vmem:[#allocation4 + $0x38] sm:$0xff]  }
 0x7cb   : > { %7733 = vmatpush3.bf16.msra.mxu0 %v8279_v14 }
 0x7cc   : > { %4776 = vmatpush1.bf16.msra.mxu1 %v10421_v12  ;;  %7734 = vmatprep.subr.bf16.mxu0 %v10407_v3 }
 0x7cd   : > { %4777 = vmatprep.subr.bf16.mxu1 %v10422_v2 }
 0x7cf   : > { %7735 = vmatpush3.bf16.msra.mxu0 %v8280_v53 }
 0x7d0   : > { %4778 = vmatpush1.bf16.msra.mxu1 %v10423_v47  ;;  %7736 = vmatprep.subr.bf16.mxu0 %v10407_v3 }
 0x7d1   : > { %4779 = vmatprep.subr.bf16.mxu1 %v10424_v54 }
 0x7d3   : > { %7737 = vmatpush3.bf16.msra.mxu0 %v8281_v0 }
 0x7d4   : > { %4780 = vmatpush1.bf16.msra.mxu1 %v10425_v21  ;;  %7738 = vmatprep.subr.bf16.mxu0 %v10407_v3  ;;  %v4998_v21 = vld [vmem:[%s10342_s2] sm:$0x1] }
 0x7d5   : > { %4781 = vmatprep.subr.bf16.mxu1 %v10426_v36 }
 0x7d7   : > { %7739 = vmatpush3.bf16.msra.mxu0 %v8282_v61 }
 0x7d8   : > { %4782 = vmatpush1.bf16.msra.mxu1 %v9774_v32  ;;  %7740 = vmatprep.subr.bf16.mxu0 %v10407_v3  ;;  %v9919_v32 = vld [vmem:[#allocation7 + $0x8] ss:$16 sps:$4 sm:$0xff]  }
 0x7d9   : > { %4783 = vmatprep.subr.bf16.mxu1 %v10427_v31 }
 0x7db   : > { %7741 = vmatpush3.bf16.msra.mxu0 %v8283_v22 }
 0x7dc   : > { %4784 = vmatpush1.bf16.msra.mxu1 %v9782_v13  ;;  %v9921_v13 = vld [vmem:[#allocation7 + $0xc] ss:$16 sps:$4 sm:$0xff]  }
 0x7dd   : > { %4785 = vmatprep.subr.bf16.mxu1 %v9785_v41  ;;  %5565 = vmatprep.subr.bf16.mxu0 %v9921_v13  ;;  %v9931_v41 = vld [vmem:[#allocation7 + $0x4c] ss:$16 sps:$4 sm:$0xff]  }
 0x7de   : > { %7743 = vmatmul.mubr.bf16.vlgmr.msra.gmra.mrb[48].mxu0 %v4981_v55 }
 0x7df   : > { %5566 = vmatpush1.bf16.msra.mxu0 %v9919_v32 }
 0x7e0   : > { %4786 = vmatpush1.bf16.msra.mxu1 %v9788_v27  ;;  %v9925_v27 = vld [vmem:[#allocation7 + $0x2c] ss:$16 sps:$4 sm:$0xff]  }
 0x7e1   : > { %4787 = vmatprep.subr.bf16.mxu1 %v9792_v25  ;;  %5567 = vmatprep.subr.bf16.mxu0 %v9925_v27  ;;  %v9933_v25 = vld [vmem:[#allocation7 + $0x48] ss:$16 sps:$4 sm:$0xff]  }
 0x7e4   : > { %4788 = vmatpush1.bf16.msra.mxu1 %v9796_v15  ;;  %v9927_v15 = vld [vmem:[#allocation7 + $0x28] ss:$16 sps:$4 sm:$0xff]  }
 0x7e5   : > { %4789 = vmatprep.subr.bf16.mxu1 %v9800_v50  ;;  %5568 = vmatpush1.bf16.msra.mxu0 %v9927_v15  ;;  %v9937_v50 = vld [vmem:[#allocation7 + $0x6c] ss:$16 sps:$4 sm:$0xff]  }
 0x7e6   : > { %5569 = vmatprep.subr.bf16.mxu0 %v9931_v41 }
 0x7e8   : > { %4790 = vmatpush1.bf16.msra.mxu1 %v9804_v4  ;;  %v9939_v4 = vld [vmem:[#allocation7 + $0x68] ss:$16 sps:$4 sm:$0xff]  }
 0x7e9   : > { %4791 = vmatprep.subr.bf16.mxu1 %v9808_v20  ;;  %5570 = vmatpush1.bf16.msra.mxu0 %v9933_v25  ;;  %v9943_v20 = vld [vmem:[#allocation7 + $0x8c] ss:$16 sps:$4 sm:$0xff]  }
 0x7ea   : > { %5571 = vmatprep.subr.bf16.mxu0 %v9937_v50 }
 0x7ec   : > { %4792 = vmatpush1.bf16.msra.mxu1 %v9812_v6  ;;  %v9945_v6 = vld [vmem:[#allocation7 + $0x88] ss:$16 sps:$4 sm:$0xff]  }
 0x7ed   : > { %7706 = vmatprep.subr.bf16.mxu1 %v10407_v3  ;;  %5572 = vmatpush1.bf16.msra.mxu0 %v9939_v4 }
 0x7ee   : > { %5573 = vmatprep.subr.bf16.mxu0 %v9943_v20 }
 0x7ef   : > { %4794 = vmatmul.mubr.bf16.vlgmr.msra.gmra.mrb[40].mxu1 %v4410_v23  ;;  %v10021_v23 = vld [vmem:[#allocation7 + $0x1e8] ss:$16 sps:$4 sm:$0xff]  }
 0x7f0   : > { %7722 = vmatprep.mubr.msk.bf16.mxu1 %vm8807_vm3, %v10407_v3  ;;  %7707 = vmatpush3.bf16.msra.mxu1 %v8299_v19 }
 0x7f1   : > { %5574 = vmatpush1.bf16.msra.mxu0 %v9945_v6  ;;  %7708 = vmatprep.subr.bf16.mxu1 %v10407_v3 }
 0x7f2   : > { %5575 = vmatprep.subr.bf16.mxu0 %v9949_v63 }
 0x7f4   : > { %7709 = vmatpush3.bf16.msra.mxu1 %v8303_v16 }
 0x7f5   : > { %5576 = vmatpush1.bf16.msra.mxu0 %v9951_v62  ;;  %7710 = vmatprep.subr.bf16.mxu1 %v10407_v3 }
 0x7f6   : > { %5577 = vmatprep.subr.bf16.mxu0 %v9956_v56 }
 0x7f8   : > { %7711 = vmatpush3.bf16.msra.mxu1 %v8307_v60  ;;  %v5089_v60 = vld [vmem:[#allocation3] sm:$0x1] }
 0x7f9   : > { %5578 = vmatpush1.bf16.msra.mxu0 %v9958_v59  ;;  %7712 = vmatprep.subr.bf16.mxu1 %v10407_v3 }
 0x7fa   : > { %5579 = vmatprep.subr.bf16.mxu0 %v9963_v1 }
 0x7fc   : > { %7713 = vmatpush3.bf16.msra.mxu1 %v8311_v33 }
 0x7fd   : > { %5580 = vmatpush1.bf16.msra.mxu0 %v9965_v9  ;;  %7714 = vmatprep.subr.bf16.mxu1 %v10407_v3 }
 0x7fe   : > { %5581 = vmatprep.subr.bf16.mxu0 %v9970_v39 }
 0x800   : > { %7715 = vmatpush3.bf16.msra.mxu1 %v8315_v43  ;;  %v4394_v43 = vld [vmem:[%s10344_s4] sm:$0xf] }
 0x801   : > { %5582 = vmatpush1.bf16.msra.mxu0 %v9972_v42  ;;  %7716 = vmatprep.subr.bf16.mxu1 %v10407_v3 }
 0x802   : > { %5583 = vmatprep.subr.bf16.mxu0 %v9977_v45 }
 0x804   : > { %7717 = vmatpush3.bf16.msra.mxu1 %v8319_v28  ;;  %v4744_v28 = vrot.slane %v4394_v43, %v9181_v5 }
 0x805   : > { %5584 = vmatpush1.bf16.msra.mxu0 %v9979_v46  ;;  %7718 = vmatprep.subr.bf16.mxu1 %v10407_v3 }
 0x806   : > { %5585 = vmatprep.subr.bf16.mxu0 %v9983_v48 }
 0x808   : > { %7719 = vmatpush3.bf16.msra.mxu1 %v8323_v37  ;;  %v4748_v37 = vrot.slane %v4394_v43, %v9187_v10 }
 0x809   : > { %5586 = vmatpush1.bf16.msra.mxu0 %v9986_v49  ;;  %7720 = vmatprep.subr.bf16.mxu1 %v10407_v3 }
 0x80a   : > { %5587 = vmatprep.subr.bf16.mxu0 %v9989_v38 }
 0x80c   : > { %7721 = vmatpush3.bf16.msra.mxu1 %v8327_v51 }
 0x80d   : > { %5588 = vmatpush1.bf16.msra.mxu0 %v9993_v35  ;;  %5524 = vmatprep.subr.bf16.mxu1 %v9999_v7 }
 0x80e   : > { %5589 = vmatprep.subr.bf16.mxu0 %v9996_v58 }
 0x811   : > { %5590 = vmatpush1.bf16.msra.mxu0 %v10002_v8 }
 0x812   : > { %5591 = vmatprep.subr.bf16.mxu0 %v10007_v11 }
 0x815   : > { %5592 = vmatpush1.bf16.msra.mxu0 %v10009_v29 }
 0x816   : > { %5593 = vmatprep.subr.bf16.mxu0 %v10013_v57 }
 0x819   : > { %5594 = vmatpush1.bf16.msra.mxu0 %v10015_v18 }
 0x81a   : > { %5595 = vmatprep.subr.bf16.mxu0 %v10019_v17 }
 0x81d   : > { %5596 = vmatpush1.bf16.msra.mxu0 %v10021_v23 }
 0x81e   : > { %7766 = vmatprep.subr.bf16.mxu0 %v10407_v3 }
 0x882   : > { %v4210_v52 = vpop.f32.mrb[36].mxu1 }
 0x883   : > { %v4211_v14 = vadd.f32 %v4210_v52, %v4127_v40  ;;  %v7684_v53 = vpop.f32.mrb[37].mxu1 }
 0x884   : > { %v4213_v12 = vpop.f32.mrb[38].mxu1 }
 0x885   : > { %4216 = vst [vmem:[%s9041_s16 + $0x4] sm:$0x1] %v4211_v14  ;;  %v7685_v2 = vpop.f32.mrb[39].mxu1 }
 0x891   : > { %v4836_v0 = vpop.f32.mrb[44].mxu0 }
 0x892   : > { %v4838_v47 = vpop.f32.mrb[45].mxu0 }
 0x893   : > { %v4840_v54 = vpop.f32.mrb[46].mxu0 }
 0x894   : > { %v4841_v61 = vpop.f32.mrb[47].mxu0  ;;  %v4756_v54 = vrot.slane %v4394_v43, %v9192_v30 }
 0x8b1   : > { %v5081_v36 = vpop.f32.mrb[48].mxu0 }
 0x8b2   : > { %v5082_v22 = vadd.f32 %v5081_v36, %v4998_v21  ;;  %v7744_v26 = vpop.f32.mrb[49].mxu0  ;;  %v4839_v21 = vadd.f32 %v4838_v47, %v4756_v54  ;;  %v4752_v36 = vrot.slane %v4394_v43, %v9196_v44  ;;  %v10044_v54 = vld [vmem:[#allocation7 + $0x24] ss:$16 sps:$4 sm:$0xff]  }
 0x8b3   : > { %v5084_v31 = vpop.f32.mrb[50].mxu0 }
 0x8b4   : > { %v5087_v55 = vmax.f32 %v5082_v22, 0.0  ;;  %v7745_v19 = vpop.f32.mrb[51].mxu0  ;;  %v7158_v22 = vmul.f32 -1.442695, %v4839_v21  ;;  %v4837_v26 = vadd.f32 %v4836_v0, %v4752_v36  ;;  %v10049_v36 = vld [vmem:[#allocation7 + $0x20] ss:$16 sps:$4 sm:$0xff]  }
 0x8b6   : > { %v5088_v16 = vpack.c.bf16 %v5087_v55, %v5087_v55 }
 0x8b8   : > { %v5090_v33 = vsel %vm9133_vm6, %v5088_v16, %v5089_v60 }
 0x8b9   : > { %5091 = vst [vmem:[#allocation3] sm:$0x1] %v5090_v33 }
 0x8c2   : > { %v4795_v51 = vpop.f32.mrb[40].mxu1 }
 0x8c3   : > { %v4796_v40 = vadd.f32 %v4795_v51, %v4744_v28  ;;  %v4797_v52 = vpop.f32.mrb[41].mxu1 }
 0x8c4   : > { %v4798_v14 = vadd.f32 %v4797_v52, %v4748_v37  ;;  %v4799_v53 = vpop.f32.mrb[42].mxu1  ;;  %v4862_v52 = vld [vmem:[#allocation2 + $0x1] sm:$0x1] }
 0x8c5   : > { %v7156_v12 = vmul.f32 -1.442695, %v4796_v40  ;;  %v4800_v2 = vpop.f32.mrb[43].mxu1 }
 0x8c6   : > { %v7157_v61 = vmul.f32 -1.442695, %v4798_v14 }
 0x8c7   : > { %8492 = vpow2.f32 %v7156_v12  ;;  %v10042_v12 = vld [vmem:[#allocation7] ss:$16 sps:$4 sm:$0xff]  }
 0x8c8   : > { %8494 = vpow2.f32 %v7157_v61  ;;  %v4871_v61 = vld [vmem:[#allocation3 + $0x1] sm:$0x1] }
 0x8c9   : > { %8496 = vpow2.f32 %v7158_v22  ;;  %v10052_v22 = vld [vmem:[#allocation7 + $0x44] ss:$16 sps:$4 sm:$0xff]  }
 0x8ca   : > { %8498 = vtanh.f32 %v4837_v26  ;;  %v10055_v26 = vld [vmem:[#allocation7 + $0x40] ss:$16 sps:$4 sm:$0xff]  }
 0x8d1   : > { %v8493_v31 = vpop.eup %8492 }
 0x8d2   : > { %v8495_v55 = vpop.eup %8494  ;;  %v4846_v19 = vadd.f32 1.0, %v8493_v31  ;;  %v10058_v31 = vld [vmem:[#allocation7 + $0x64] ss:$16 sps:$4 sm:$0xff]  }
 0x8d3   : > { %v4852_v16 = vadd.f32 1.0, %v8495_v55  ;;  %v8497_v60 = vpop.eup %8496 }
 0x8d4   : > { %8500 = vrcp.f32 %v4846_v19  ;;  %v8499_v33 = vpop.eup %8498  ;;  %v4859_v51 = vadd.f32 1.0, %v8497_v60  ;;  %v10061_v19 = vld [vmem:[#allocation7 + $0x60] ss:$16 sps:$4 sm:$0xff]   ;;  %v10064_v60 = vld [vmem:[#allocation7 + $0x84] ss:$16 sps:$4 sm:$0xff]  }
 0x8d5   : > { %8502 = vrcp.f32 %v4852_v16 }
 0x8d6   : > { %8504 = vrcp.f32 %v4859_v51  ;;  %v10071_v51 = vld [vmem:[#allocation7 + $0x80] ss:$16 sps:$4 sm:$0xff]  }
 0x8de   : > { %v8501_v28 = vpop.eup %8500 }
 0x8df   : > { %v8503_v37 = vpop.eup %8502  ;;  %v4864_v40 = vmul.f32 %v8501_v28, %v8499_v33  ;;  %v8352_v28 = vld [vmem:[#allocation4] sm:$0xff]  }
 0x8e0   : > { %v4863_v47 = vmul.f32 %v8503_v37, %v4862_v52  ;;  %v8505_v0 = vpop.eup %8504  ;;  %v8356_v52 = vld [vmem:[#allocation4 + $0x8] sm:$0xff]  }
 0x8e2   : > { %v4865_v14 = vadd.f32 %v4864_v40, %v4863_v47  ;;  %v10074_v40 = vld [vmem:[#allocation7 + $0xa4] ss:$16 sps:$4 sm:$0xff]   ;;  %v10081_v47 = vld [vmem:[#allocation7 + $0xa0] ss:$16 sps:$4 sm:$0xff]  }
 0x8e4   : > { %8506 = vtanh.f32 %v4865_v14  ;;  %4869 = vst [vmem:[#allocation2 + $0x1] sm:$0x1] %v4865_v14  ;;  %v10084_v14 = vld [vmem:[#allocation7 + $0xc4] ss:$16 sps:$4 sm:$0xff]  }
 0x8ee   : > { %v8507_v43 = vpop.eup %8506 }
 0x8ef   : > { %v4867_v53 = vmul.f32 %v8507_v43, %v8505_v0  ;;  %v8360_v0 = vld [vmem:[#allocation4 + $0x10] sm:$0xff]  }
 0x8f0   : > { %v10088_v43 = vld [vmem:[#allocation7 + $0xc0] ss:$16 sps:$4 sm:$0xff]  }
 0x8f1   : > { %4868 = vst [vmem:[#allocation2] sm:$0x1] %v4867_v53  ;;  %v4870_v2 = vpack.c.bf16 %v4867_v53, %v4867_v53  ;;  %v10091_v53 = vld [vmem:[#allocation7 + $0xe4] ss:$16 sps:$4 sm:$0xff]  }
 0x8f3   : > { %v4872_v21 = vsel %vm9133_vm6, %v4870_v2, %v4871_v61  ;;  %7723 = vmatmul.mubr.bf16.vlgmr.msra.gmra.mrb[44].mxu1 %v4870_v2  ;;  %v8364_v2 = vld [vmem:[#allocation4 + $0x18] sm:$0xff]   ;;  %v10095_v61 = vld [vmem:[#allocation7 + $0xe0] ss:$16 sps:$4 sm:$0xff]  }
 0x8f4   : > { %4873 = vst [vmem:[#allocation3 + $0x1] sm:$0x1] %v4872_v21  ;;  %5525 = vmatpush1.bf16.msra.mxu1 %v10042_v12  ;;  %10428 = vst [vmem:[#allocation24_spill] sm:$0xff] %v10095_v61  ;;  %v10098_v21 = vld [vmem:[#allocation7 + $0x104] ss:$16 sps:$4 sm:$0xff]  }
 0x8f5   : > { %5526 = vmatprep.subr.bf16.mxu1 %v10044_v54  ;;  %10429 = vst [vmem:[#allocation25_spill] sm:$0xff] %v10098_v21 }
 0x8f8   : > { %5527 = vmatpush1.bf16.msra.mxu1 %v10049_v36 }
 0x8f9   : > { %5528 = vmatprep.subr.bf16.mxu1 %v10052_v22 }
 0x8fb   : > { %v7175_v55 = vld.sshfl [vmem:[#allocation3] sm:$0x11 pattern:$0x75316420] }
 0x8fc   : > { %5529 = vmatpush1.bf16.msra.mxu1 %v10055_v26  ;;  %v5166_v16 = vcombine.high %v7175_v55, %v7175_v55  ;;  %v10069_v37 = vrot.slane %v7175_v55, %v9142_v34  ;;  %v8368_v55 = vld [vmem:[#allocation4 + $0x20] sm:$0xff]  }
 0x8fd   : > { %5530 = vmatprep.subr.bf16.mxu1 %v10058_v31 }
 0x8fe   : > { %v5180_v33 = vrot.slane %v5166_v16, %v9142_v34  ;;  %v10102_v16 = vld [vmem:[#allocation7 + $0x100] ss:$16 sps:$4 sm:$0xff]  }
 0x8ff   : > { %10430 = vst [vmem:[#allocation26_spill] sm:$0xff] %v10102_v16 }
 0x900   : > { %5531 = vmatpush1.bf16.msra.mxu1 %v10061_v19  ;;  %5556 = vmatprep.mubr.bf16.mxu1 %v5180_v33 }
 0x901   : > { %5597 = vmatprep.mubr.bf16.mxu0 %v5180_v33  ;;  %5532 = vmatprep.subr.bf16.mxu1 %v10064_v60  ;;  %v10105_v33 = vld [vmem:[#allocation7 + $0x124] ss:$16 sps:$4 sm:$0xff]  }
 0x902   : > { %5598 = vmatmul.mubr.bf16.vlgmr.msra.gmra.mrb[52].mxu0 %v10069_v37  ;;  %10431 = vst [vmem:[#allocation27_spill] sm:$0xff] %v10105_v33 }
 0x903   : > { %7767 = vmatpush3.bf16.msra.mxu0 %v8352_v28  ;;  %7782 = vmatprep.mubr.msk.bf16.mxu0 %vm8807_vm3, %v10407_v3  ;;  %v8372_v28 = vld [vmem:[#allocation4 + $0x28] sm:$0xff]  }
 0x904   : > { %5533 = vmatpush1.bf16.msra.mxu1 %v10071_v51  ;;  %7768 = vmatprep.subr.bf16.mxu0 %v10407_v3 }
 0x905   : > { %5534 = vmatprep.subr.bf16.mxu1 %v10074_v40 }
 0x907   : > { %7769 = vmatpush3.bf16.msra.mxu0 %v8356_v52  ;;  %v10109_v52 = vld [vmem:[#allocation7 + $0x120] ss:$16 sps:$4 sm:$0xff]  }
 0x908   : > { %5535 = vmatpush1.bf16.msra.mxu1 %v10081_v47  ;;  %7770 = vmatprep.subr.bf16.mxu0 %v10407_v3  ;;  %10432 = vst [vmem:[#allocation28_spill] sm:$0xff] %v10109_v52 }
 0x909   : > { %5536 = vmatprep.subr.bf16.mxu1 %v10084_v14 }
 0x90b   : > { %7771 = vmatpush3.bf16.msra.mxu0 %v8360_v0  ;;  %v10112_v0 = vld [vmem:[#allocation7 + $0x144] ss:$16 sps:$4 sm:$0xff]  }
 0x90c   : > { %5537 = vmatpush1.bf16.msra.mxu1 %v10088_v43  ;;  %7772 = vmatprep.subr.bf16.mxu0 %v10407_v3  ;;  %10433 = vst [vmem:[#allocation29_spill] sm:$0xff] %v10112_v0 }
 0x90d   : > { %5538 = vmatprep.subr.bf16.mxu1 %v10091_v53 }
 0x90f   : > { %7773 = vmatpush3.bf16.msra.mxu0 %v8364_v2  ;;  %v8376_v2 = vld [vmem:[#allocation4 + $0x30] sm:$0xff]  }
 0x910   : > { %5539 = vmatpush1.bf16.msra.mxu1 %v10095_v61  ;;  %7774 = vmatprep.subr.bf16.mxu0 %v10407_v3  ;;  %v5743_v61 = vld [vmem:[%s9039_s28 + $0x7] sm:$0x1] }
 0x911   : > { %5540 = vmatprep.subr.bf16.mxu1 %v10098_v21  ;;  %v10116_v21 = vld [vmem:[#allocation7 + $0x140] ss:$16 sps:$4 sm:$0xff]  }
 0x913   : > { %7775 = vmatpush3.bf16.msra.mxu0 %v8368_v55  ;;  %v10119_v55 = vld [vmem:[#allocation7 + $0x164] ss:$16 sps:$4 sm:$0xff]  }
 0x914   : > { %5541 = vmatpush1.bf16.msra.mxu1 %v10102_v16  ;;  %7776 = vmatprep.subr.bf16.mxu0 %v10407_v3  ;;  %10434 = vst [vmem:[#allocation30_spill] sm:$0xff] %v10119_v55  ;;  %v8380_v16 = vld [vmem:[#allocation4 + $0x38] sm:$0xff]  }
 0x915   : > { %5542 = vmatprep.subr.bf16.mxu1 %v10105_v33  ;;  %v10124_v33 = vld [vmem:[#allocation7 + $0x160] ss:$16 sps:$4 sm:$0xff]  }
 0x917   : > { %7777 = vmatpush3.bf16.msra.mxu0 %v8372_v28  ;;  %v10127_v28 = vld [vmem:[#allocation7 + $0x184] ss:$16 sps:$4 sm:$0xff]  }
 0x918   : > { %5543 = vmatpush1.bf16.msra.mxu1 %v10109_v52  ;;  %7778 = vmatprep.subr.bf16.mxu0 %v10407_v3  ;;  %v5744_v52 = vpack.c.bf16 %v5743_v61, %v5743_v61  ;;  %v10142_v61 = vld [vmem:[#allocation7 + $0x1c4] ss:$16 sps:$4 sm:$0xff]  }
 0x919   : > { %5544 = vmatprep.subr.bf16.mxu1 %v10112_v0  ;;  %v10130_v0 = vld [vmem:[#allocation7 + $0x180] ss:$16 sps:$4 sm:$0xff]  }
 0x91b   : > { %7779 = vmatpush3.bf16.msra.mxu0 %v8376_v2  ;;  %v10134_v2 = vld [vmem:[#allocation7 + $0x1a4] ss:$16 sps:$4 sm:$0xff]  }
 0x91c   : > { %5545 = vmatpush1.bf16.msra.mxu1 %v10116_v21  ;;  %7780 = vmatprep.subr.bf16.mxu0 %v10407_v3 }
 0x91d   : > { %5546 = vmatprep.subr.bf16.mxu1 %v10119_v55  ;;  %v10138_v55 = vld [vmem:[#allocation7 + $0x1a0] ss:$16 sps:$4 sm:$0xff]  }
 0x91f   : > { %7781 = vmatpush3.bf16.msra.mxu0 %v8380_v16 }
 0x920   : > { %5547 = vmatpush1.bf16.msra.mxu1 %v10124_v33  ;;  %6328 = vmatprep.subr.bf16.mxu0 %v9921_v13  ;;  %v10146_v13 = vld [vmem:[#allocation7 + $0x1c0] ss:$16 sps:$4 sm:$0xff]  }
 0x921   : > { %5548 = vmatprep.subr.bf16.mxu1 %v10127_v28 }
 0x922   : > { %7783 = vmatmul.mubr.bf16.vlgmr.msra.gmra.mrb[56].mxu0 %v5744_v52 }
 0x923   : > { %6329 = vmatpush1.bf16.msra.mxu0 %v9919_v32  ;;  %v10150_v32 = vld [vmem:[#allocation7 + $0x1e4] ss:$16 sps:$4 sm:$0xff]  }
 0x924   : > { %5549 = vmatpush1.bf16.msra.mxu1 %v10130_v0  ;;  %6330 = vmatprep.subr.bf16.mxu0 %v9925_v27  ;;  %v10154_v27 = vld [vmem:[#allocation7 + $0x1e0] ss:$16 sps:$4 sm:$0xff]  }
 0x925   : > { %5550 = vmatprep.subr.bf16.mxu1 %v10134_v2 }
 0x927   : > { %6331 = vmatpush1.bf16.msra.mxu0 %v9927_v15  ;;  %v8396_v15 = vld [vmem:[#allocation9] sm:$0xff]  }
 0x928   : > { %5551 = vmatpush1.bf16.msra.mxu1 %v10138_v55  ;;  %6332 = vmatprep.subr.bf16.mxu0 %v9931_v41  ;;  %v8397_v41 = vld [vmem:[#allocation9 + $0x8] sm:$0xff]  }
 0x929   : > { %5552 = vmatprep.subr.bf16.mxu1 %v10142_v61 }
 0x92b   : > { %6333 = vmatpush1.bf16.msra.mxu0 %v9933_v25  ;;  %v8398_v25 = vld [vmem:[#allocation9 + $0x10] sm:$0xff]  }
 0x92c   : > { %5553 = vmatpush1.bf16.msra.mxu1 %v10146_v13  ;;  %6334 = vmatprep.subr.bf16.mxu0 %v9937_v50  ;;  %v8399_v50 = vld [vmem:[#allocation9 + $0x18] sm:$0xff]  }
 0x92d   : > { %5554 = vmatprep.subr.bf16.mxu1 %v10150_v32 }
 0x92f   : > { %6335 = vmatpush1.bf16.msra.mxu0 %v9939_v4  ;;  %v8400_v4 = vld [vmem:[#allocation9 + $0x20] sm:$0xff]  }
 0x930   : > { %5555 = vmatpush1.bf16.msra.mxu1 %v10154_v27  ;;  %6336 = vmatprep.subr.bf16.mxu0 %v9943_v20  ;;  %v8401_v20 = vld [vmem:[#allocation9 + $0x28] sm:$0xff]  }
 0x931   : > { %7746 = vmatprep.subr.bf16.mxu1 %v10407_v3 }
 0x933   : > { %5557 = vmatmul.mubr.bf16.vlgmr.msra.gmra.mrb[48].mxu1 %v10069_v37  ;;  %6337 = vmatpush1.bf16.msra.mxu0 %v9945_v6  ;;  %v8402_v6 = vld [vmem:[#allocation9 + $0x30] sm:$0xff]  }
 0x934   : > { %6338 = vmatprep.subr.bf16.mxu0 %v9949_v63  ;;  %7762 = vmatprep.mubr.msk.bf16.mxu1 %vm8807_vm3, %v10407_v3  ;;  %v8403_v63 = vld [vmem:[#allocation9 + $0x38] sm:$0xff]  }
 0x935   : > { %7747 = vmatpush3.bf16.msra.mxu1 %v8396_v15 }
 0x936   : > { %7748 = vmatprep.subr.bf16.mxu1 %v10407_v3 }
 0x937   : > { %6339 = vmatpush1.bf16.msra.mxu0 %v9951_v62  ;;  %v4890_v62 = vld [vmem:[%s10346_s6] sm:$0x1] }
 0x938   : > { %6340 = vmatprep.subr.bf16.mxu0 %v9956_v56 }
 0x939   : > { %7749 = vmatpush3.bf16.msra.mxu1 %v8397_v41 }
 0x93a   : > { %7750 = vmatprep.subr.bf16.mxu1 %v10407_v3 }
 0x93b   : > { %6341 = vmatpush1.bf16.msra.mxu0 %v9958_v59 }
 0x93c   : > { %6342 = vmatprep.subr.bf16.mxu0 %v9963_v1 }
 0x93d   : > { %7751 = vmatpush3.bf16.msra.mxu1 %v8398_v25 }
 0x93e   : > { %7752 = vmatprep.subr.bf16.mxu1 %v10407_v3 }
 0x93f   : > { %6343 = vmatpush1.bf16.msra.mxu0 %v9965_v9 }
 0x940   : > { %6344 = vmatprep.subr.bf16.mxu0 %v9970_v39 }
 0x941   : > { %7753 = vmatpush3.bf16.msra.mxu1 %v8399_v50 }
 0x942   : > { %7754 = vmatprep.subr.bf16.mxu1 %v10407_v3 }
 0x943   : > { %6345 = vmatpush1.bf16.msra.mxu0 %v9972_v42 }
 0x944   : > { %6346 = vmatprep.subr.bf16.mxu0 %v9977_v45 }
 0x945   : > { %7755 = vmatpush3.bf16.msra.mxu1 %v8400_v4 }
 0x946   : > { %7756 = vmatprep.subr.bf16.mxu1 %v10407_v3 }
 0x947   : > { %6347 = vmatpush1.bf16.msra.mxu0 %v9979_v46 }
 0x948   : > { %6348 = vmatprep.subr.bf16.mxu0 %v9983_v48 }
 0x949   : > { %7757 = vmatpush3.bf16.msra.mxu1 %v8401_v20 }
 0x94a   : > { %7758 = vmatprep.subr.bf16.mxu1 %v10407_v3 }
 0x94b   : > { %6349 = vmatpush1.bf16.msra.mxu0 %v9986_v49  ;;  %v5761_v49 = vld [vmem:[%s10342_s2] sm:$0x1] }
 0x94c   : > { %6350 = vmatprep.subr.bf16.mxu0 %v9989_v38 }
 0x94d   : > { %7759 = vmatpush3.bf16.msra.mxu1 %v8402_v6 }
 0x94e   : > { %7760 = vmatprep.subr.bf16.mxu1 %v10407_v3 }
 0x94f   : > { %6351 = vmatpush1.bf16.msra.mxu0 %v9993_v35 }
 0x950   : > { %6352 = vmatprep.subr.bf16.mxu0 %v9996_v58 }
 0x951   : > { %7761 = vmatpush3.bf16.msra.mxu1 %v8403_v63 }
 0x952   : > { %6287 = vmatprep.subr.bf16.mxu1 %v9999_v7 }
 0x953   : > { %6353 = vmatpush1.bf16.msra.mxu0 %v10002_v8 }
 0x954   : > { %6354 = vmatprep.subr.bf16.mxu0 %v10007_v11 }
 0x957   : > { %6355 = vmatpush1.bf16.msra.mxu0 %v10009_v29 }
 0x958   : > { %6356 = vmatprep.subr.bf16.mxu0 %v10013_v57  ;;  %v5852_v57 = vld [vmem:[#allocation3] sm:$0x1] }
 0x95b   : > { %6357 = vmatpush1.bf16.msra.mxu0 %v10015_v18 }
 0x95c   : > { %6358 = vmatprep.subr.bf16.mxu0 %v10019_v17  ;;  %v5157_v17 = vld [vmem:[%s10344_s4] sm:$0xf] }
 0x95d   : > { %v5511_v37 = vrot.slane %v5157_v17, %v9187_v10  ;;  %v5519_v20 = vrot.slane %v5157_v17, %v9192_v30 }
 0x95f   : > { %6359 = vmatpush1.bf16.msra.mxu0 %v10021_v23  ;;  %v5507_v23 = vrot.slane %v5157_v17, %v9181_v5 }
 0x9c6   : > { %v4973_v56 = vpop.f32.mrb[44].mxu1 }
 0x9c7   : > { %v4974_v59 = vadd.f32 %v4973_v56, %v4890_v62  ;;  %v7724_v1 = vpop.f32.mrb[45].mxu1  ;;  %v5515_v62 = vrot.slane %v5157_v17, %v9196_v44  ;;  %v5634_v17 = vld [vmem:[#allocation3 + $0x1] sm:$0x1] }
 0x9c8   : > { %v4976_v9 = vpop.f32.mrb[46].mxu1 }
 0x9c9   : > { %4979 = vst [vmem:[%s9041_s16 + $0x5] sm:$0x1] %v4974_v59  ;;  %v7725_v39 = vpop.f32.mrb[47].mxu1 }
 0x9d5   : > { %v5599_v42 = vpop.f32.mrb[52].mxu0 }
 0x9d6   : > { %v5601_v45 = vpop.f32.mrb[53].mxu0  ;;  %v5600_v59 = vadd.f32 %v5599_v42, %v5515_v62 }
 0x9d7   : > { %v5603_v46 = vpop.f32.mrb[54].mxu0  ;;  %v5602_v63 = vadd.f32 %v5601_v45, %v5519_v20 }
 0x9d8   : > { %v5604_v48 = vpop.f32.mrb[55].mxu0 }
 0x9d9   : > { %v7242_v56 = vmul.f32 -1.442695, %v5602_v63 }
 0x9f5   : > { %v5844_v38 = vpop.f32.mrb[56].mxu0 }
 0x9f6   : > { %v5845_v35 = vadd.f32 %v5844_v38, %v5761_v49  ;;  %v7784_v58 = vpop.f32.mrb[57].mxu0 }
 0x9f7   : > { %v5847_v7 = vpop.f32.mrb[58].mxu0 }
 0x9f8   : > { %v5850_v8 = vmax.f32 %v5845_v35, 0.0  ;;  %v7785_v11 = vpop.f32.mrb[59].mxu0 }
 0x9fa   : > { %v5851_v29 = vpack.c.bf16 %v5850_v8, %v5850_v8  ;;  %v5625_v8 = vld [vmem:[#allocation2 + $0x1] sm:$0x1] }
 0x9fc   : > { %v5853_v18 = vsel %vm9133_vm6, %v5851_v29, %v5852_v57 }
 0x9fd   : > { %5854 = vst [vmem:[#allocation3] sm:$0x1] %v5853_v18 }
 0xa06   : > { %v5558_v16 = vpop.f32.mrb[48].mxu1 }
 0xa07   : > { %v5559_v52 = vadd.f32 %v5558_v16, %v5507_v23  ;;  %v5560_v15 = vpop.f32.mrb[49].mxu1 }
 0xa08   : > { %v5561_v41 = vadd.f32 %v5560_v15, %v5511_v37  ;;  %v5562_v25 = vpop.f32.mrb[50].mxu1 }
 0xa09   : > { %v7240_v50 = vmul.f32 -1.442695, %v5559_v52  ;;  %v5563_v4 = vpop.f32.mrb[51].mxu1 }
 0xa0a   : > { %v7241_v6 = vmul.f32 -1.442695, %v5561_v41  ;;  %v5920_v41 = vld [vmem:[%s10344_s4] sm:$0xf] }
 0xa0b   : > { %8508 = vpow2.f32 %v7240_v50  ;;  %v6274_v25 = vrot.slane %v5920_v41, %v9187_v10 }
 0xa0c   : > { %8510 = vpow2.f32 %v7241_v6 }
 0xa0d   : > { %8512 = vpow2.f32 %v7242_v56 }
 0xa0e   : > { %8514 = vtanh.f32 %v5600_v59  ;;  %v6282_v59 = vrot.slane %v5920_v41, %v9192_v30 }
 0xa15   : > { %v8509_v1 = vpop.eup %8508 }
 0xa16   : > { %v8511_v9 = vpop.eup %8510  ;;  %v5609_v39 = vadd.f32 1.0, %v8509_v1 }
 0xa17   : > { %v5615_v46 = vadd.f32 1.0, %v8511_v9  ;;  %v8513_v48 = vpop.eup %8512 }
 0xa18   : > { %8516 = vrcp.f32 %v5609_v39  ;;  %v8515_v49 = vpop.eup %8514  ;;  %v5622_v58 = vadd.f32 1.0, %v8513_v48  ;;  %v6278_v39 = vrot.slane %v5920_v41, %v9196_v44 }
 0xa19   : > { %8518 = vrcp.f32 %v5615_v46 }
 0xa1a   : > { %8520 = vrcp.f32 %v5622_v58 }
 0xa22   : > { %v8517_v38 = vpop.eup %8516 }
 0xa23   : > { %v8519_v35 = vpop.eup %8518  ;;  %v5627_v7 = vmul.f32 %v8517_v38, %v8515_v49 }
 0xa24   : > { %v5626_v45 = vmul.f32 %v8519_v35, %v5625_v8  ;;  %v8521_v42 = vpop.eup %8520 }
 0xa26   : > { %v5628_v11 = vadd.f32 %v5627_v7, %v5626_v45 }
 0xa28   : > { %8522 = vtanh.f32 %v5628_v11  ;;  %5632 = vst [vmem:[#allocation2 + $0x1] sm:$0x1] %v5628_v11 }
 0xa2f   : > { %v6388_v11 = vld [vmem:[#allocation2 + $0x1] sm:$0x1] }
 0xa32   : > { %v8523_v29 = vpop.eup %8522 }
 0xa33   : > { %v5630_v57 = vmul.f32 %v8523_v29, %v8521_v42 }
 0xa35   : > { %5631 = vst [vmem:[#allocation2] sm:$0x1] %v5630_v57  ;;  %v5633_v18 = vpack.c.bf16 %v5630_v57, %v5630_v57 }
 0xa37   : > { %v5635_v23 = vsel %vm9133_vm6, %v5633_v18, %v5634_v17  ;;  %7763 = vmatmul.mubr.bf16.vlgmr.msra.gmra.mrb[52].mxu1 %v5633_v18 }
 0xa38   : > { %5636 = vst [vmem:[#allocation3 + $0x1] sm:$0x1] %v5635_v23  ;;  %6288 = vmatpush1.bf16.msra.mxu1 %v10042_v12  ;;  %v10435_v12 = vld [vmem:[#allocation24_spill] sm:$0xff] }
 0xa39   : > { %6289 = vmatprep.subr.bf16.mxu1 %v10044_v54  ;;  %v10436_v54 = vld [vmem:[#allocation25_spill] sm:$0xff] }
 0xa3c   : > { %6290 = vmatpush1.bf16.msra.mxu1 %v10049_v36  ;;  %v10438_v36 = vld [vmem:[#allocation27_spill] sm:$0xff] }
 0xa3d   : > { %6291 = vmatprep.subr.bf16.mxu1 %v10052_v22  ;;  %v10439_v22 = vld [vmem:[#allocation28_spill] sm:$0xff] }
 0xa3f   : > { %v7259_v37 = vld.sshfl [vmem:[#allocation3] sm:$0x11 pattern:$0x75316420] }
 0xa40   : > { %6292 = vmatpush1.bf16.msra.mxu1 %v10055_v26  ;;  %v5929_v16 = vcombine.high %v7259_v37, %v7259_v37  ;;  %v5936_v15 = vrot.slane %v7259_v37, %v9142_v34  ;;  %v10440_v26 = vld [vmem:[#allocation29_spill] sm:$0xff] }
 0xa41   : > { %6293 = vmatprep.subr.bf16.mxu1 %v10058_v31  ;;  %v10441_v31 = vld [vmem:[#allocation30_spill] sm:$0xff]  ;;  %v6397_v23 = vld [vmem:[#allocation3 + $0x1] sm:$0x1] }
 0xa42   : > { %v5943_v52 = vrot.slane %v5929_v16, %v9142_v34  ;;  %v10437_v34 = vld [vmem:[#allocation26_spill] sm:$0xff]  ;;  %v6416_v16 = vld [vmem:[%s10346_s6] sm:$0x1] }
 0xa44   : > { %6294 = vmatpush1.bf16.msra.mxu1 %v10061_v19  ;;  %6319 = vmatprep.mubr.bf16.mxu1 %v5943_v52  ;;  %v8404_v19 = vld [vmem:[#allocation9] sm:$0xff]  }
 0xa45   : > { %6360 = vmatprep.mubr.bf16.mxu0 %v5943_v52  ;;  %6295 = vmatprep.subr.bf16.mxu1 %v10064_v60  ;;  %v8405_v60 = vld [vmem:[#allocation9 + $0x8] sm:$0xff]  }
 0xa46   : > { %6361 = vmatmul.mubr.bf16.vlgmr.msra.gmra.mrb[60].mxu0 %v5936_v15 }
 0xa48   : > { %6296 = vmatpush1.bf16.msra.mxu1 %v10071_v51  ;;  %v8406_v51 = vld [vmem:[#allocation9 + $0x10] sm:$0xff]  }
 0xa49   : > { %6297 = vmatprep.subr.bf16.mxu1 %v10074_v40  ;;  %v8407_v40 = vld [vmem:[#allocation9 + $0x18] sm:$0xff]  }
 0xa4c   : > { %6298 = vmatpush1.bf16.msra.mxu1 %v10081_v47  ;;  %v8408_v47 = vld [vmem:[#allocation9 + $0x20] sm:$0xff]  }
 0xa4d   : > { %6299 = vmatprep.subr.bf16.mxu1 %v10084_v14  ;;  %v8409_v14 = vld [vmem:[#allocation9 + $0x28] sm:$0xff]  }
 0xa50   : > { %6300 = vmatpush1.bf16.msra.mxu1 %v10088_v43  ;;  %v8410_v43 = vld [vmem:[#allocation9 + $0x30] sm:$0xff]  }
 0xa51   : > { %6301 = vmatprep.subr.bf16.mxu1 %v10091_v53  ;;  %v8411_v53 = vld [vmem:[#allocation9 + $0x38] sm:$0xff]  }
 0xa54   : > { %6302 = vmatpush1.bf16.msra.mxu1 %v10435_v12 }
 0xa55   : > { %6303 = vmatprep.subr.bf16.mxu1 %v10436_v54 }
 0xa58   : > { %6304 = vmatpush1.bf16.msra.mxu1 %v10437_v34 }
 0xa59   : > { %6305 = vmatprep.subr.bf16.mxu1 %v10438_v36 }
 0xa5c   : > { %6306 = vmatpush1.bf16.msra.mxu1 %v10439_v22 }
 0xa5d   : > { %6307 = vmatprep.subr.bf16.mxu1 %v10440_v26 }
 0xa60   : > { %6308 = vmatpush1.bf16.msra.mxu1 %v10116_v21  ;;  %v5653_v21 = vld [vmem:[%s10346_s6] sm:$0x1] }
 0xa61   : > { %6309 = vmatprep.subr.bf16.mxu1 %v10441_v31 }
 0xa64   : > { %6310 = vmatpush1.bf16.msra.mxu1 %v10124_v33 }
 0xa65   : > { %6311 = vmatprep.subr.bf16.mxu1 %v10127_v28 }
 0xa68   : > { %6312 = vmatpush1.bf16.msra.mxu1 %v10130_v0 }
 0xa69   : > { %6313 = vmatprep.subr.bf16.mxu1 %v10134_v2 }
 0xa6c   : > { %6314 = vmatpush1.bf16.msra.mxu1 %v10138_v55 }
 0xa6d   : > { %6315 = vmatprep.subr.bf16.mxu1 %v10142_v61 }
 0xa70   : > { %6316 = vmatpush1.bf16.msra.mxu1 %v10146_v13 }
 0xa71   : > { %6317 = vmatprep.subr.bf16.mxu1 %v10150_v32 }
 0xa74   : > { %6318 = vmatpush1.bf16.msra.mxu1 %v10154_v27 }
 0xa75   : > { %7786 = vmatprep.subr.bf16.mxu1 %v10407_v3 }
 0xa77   : > { %6320 = vmatmul.mubr.bf16.vlgmr.msra.gmra.mrb[56].mxu1 %v5936_v15 }
 0xa78   : > { %7802 = vmatprep.mubr.msk.bf16.mxu1 %vm8807_vm3, %v10407_v3  ;;  %7787 = vmatpush3.bf16.msra.mxu1 %v8404_v19 }
 0xa79   : > { %7788 = vmatprep.subr.bf16.mxu1 %v10407_v3 }
 0xa7c   : > { %7789 = vmatpush3.bf16.msra.mxu1 %v8405_v60 }
 0xa7d   : > { %7790 = vmatprep.subr.bf16.mxu1 %v10407_v3 }
 0xa80   : > { %7791 = vmatpush3.bf16.msra.mxu1 %v8406_v51 }
 0xa81   : > { %7792 = vmatprep.subr.bf16.mxu1 %v10407_v3 }
 0xa84   : > { %7793 = vmatpush3.bf16.msra.mxu1 %v8407_v40 }
 0xa85   : > { %7794 = vmatprep.subr.bf16.mxu1 %v10407_v3 }
 0xa88   : > { %7795 = vmatpush3.bf16.msra.mxu1 %v8408_v47 }
 0xa89   : > { %7796 = vmatprep.subr.bf16.mxu1 %v10407_v3 }
 0xa8c   : > { %7797 = vmatpush3.bf16.msra.mxu1 %v8409_v14 }
 0xa8d   : > { %7798 = vmatprep.subr.bf16.mxu1 %v10407_v3 }
 0xa90   : > { %7799 = vmatpush3.bf16.msra.mxu1 %v8410_v43 }
 0xa91   : > { %7800 = vmatprep.subr.bf16.mxu1 %v10407_v3  ;;  %v6270_v3 = vrot.slane %v5920_v41, %v9181_v5 }
 0xa94   : > { %7801 = vmatpush3.bf16.msra.mxu1 %v8411_v53 }
 0xb0a   : > { %v5736_v33 = vpop.f32.mrb[52].mxu1 }
 0xb0b   : > { %v5737_v0 = vadd.f32 %v5736_v33, %v5653_v21  ;;  %v7764_v55 = vpop.f32.mrb[53].mxu1 }
 0xb0c   : > { %v5739_v28 = vpop.f32.mrb[54].mxu1 }
 0xb0d   : > { %5742 = vst [vmem:[%s9041_s16 + $0x6] sm:$0x1] %v5737_v0  ;;  %v7765_v2 = vpop.f32.mrb[55].mxu1 }
 0xb19   : > { %v6362_v61 = vpop.f32.mrb[60].mxu0 }
 0xb1a   : > { %v6364_v13 = vpop.f32.mrb[61].mxu0  ;;  %v6363_v48 = vadd.f32 %v6362_v61, %v6278_v39 }
 0xb1b   : > { %v6366_v32 = vpop.f32.mrb[62].mxu0  ;;  %v6365_v9 = vadd.f32 %v6364_v13, %v6282_v59 }
 0xb1c   : > { %v6367_v27 = vpop.f32.mrb[63].mxu0 }
 0xb1d   : > { %v7326_v46 = vmul.f32 -1.442695, %v6365_v9 }
 0xb4a   : > { %v6321_v50 = vpop.f32.mrb[56].mxu1 }
 0xb4b   : > { %v6322_v4 = vadd.f32 %v6321_v50, %v6270_v3  ;;  %v6323_v20 = vpop.f32.mrb[57].mxu1 }
 0xb4c   : > { %v6324_v6 = vadd.f32 %v6323_v20, %v6274_v25  ;;  %v6325_v63 = vpop.f32.mrb[58].mxu1 }
 0xb4d   : > { %v7324_v62 = vmul.f32 -1.442695, %v6322_v4  ;;  %v6326_v56 = vpop.f32.mrb[59].mxu1 }
 0xb4e   : > { %v7325_v1 = vmul.f32 -1.442695, %v6324_v6 }
 0xb4f   : > { %8524 = vpow2.f32 %v7324_v62 }
 0xb50   : > { %8526 = vpow2.f32 %v7325_v1 }
 0xb51   : > { %8528 = vpow2.f32 %v7326_v46 }
 0xb52   : > { %8530 = vtanh.f32 %v6363_v48 }
 0xb59   : > { %v8525_v5 = vpop.eup %8524 }
 0xb5a   : > { %v8527_v49 = vpop.eup %8526  ;;  %v6372_v10 = vadd.f32 1.0, %v8525_v5 }
 0xb5b   : > { %v6378_v38 = vadd.f32 1.0, %v8527_v49  ;;  %v8529_v35 = vpop.eup %8528 }
 0xb5c   : > { %8532 = vrcp.f32 %v6372_v10  ;;  %v8531_v58 = vpop.eup %8530  ;;  %v6385_v8 = vadd.f32 1.0, %v8529_v35 }
 0xb5d   : > { %8534 = vrcp.f32 %v6378_v38 }
 0xb5e   : > { %8536 = vrcp.f32 %v6385_v8 }
 0xb66   : > { %v8533_v7 = vpop.eup %8532 }
 0xb67   : > { %v8535_v30 = vpop.eup %8534  ;;  %v6390_v45 = vmul.f32 %v8533_v7, %v8531_v58 }
 0xb68   : > { %v6389_v42 = vmul.f32 %v8535_v30, %v6388_v11  ;;  %v8537_v44 = vpop.eup %8536 }
 0xb6a   : > { %v6391_v29 = vadd.f32 %v6390_v45, %v6389_v42 }
 0xb6c   : > { %8538 = vtanh.f32 %v6391_v29  ;;  %6395 = vst [vmem:[#allocation2 + $0x1] sm:$0x1] %v6391_v29 }
 0xb76   : > { %v8539_v57 = vpop.eup %8538 }
 0xb77   : > { %v6393_v18 = vmul.f32 %v8539_v57, %v8537_v44 }
 0xb79   : > { %6394 = vst [vmem:[#allocation2] sm:$0x1] %v6393_v18  ;;  %v6396_v17 = vpack.c.bf16 %v6393_v18, %v6393_v18 }
 0xb7b   : > { %v6398_v37 = vsel %vm9133_vm6, %v6396_v17, %v6397_v23  ;;  %7803 = vmatmul.mubr.bf16.vlgmr.msra.gmra.mrb[60].mxu1 %v6396_v17 }
 0xb7c   : > { %6399 = vst [vmem:[#allocation3 + $0x1] sm:$0x1] %v6398_v37 }
 0xb80   : > { %v6510_v36 = vld [vmem:[#allocation2] sm:$0x3] (!%p7335_p3) }
 0xb81   : > { %6511 = vst [vmem:[#allocation13] sm:$0x3] (!%p7335_p3), %v6510_v36 }
 0xc4b   : > { %6509 = sbr.rel (%p7335_p3) target bundleno = 3154 (0xc52), region = 76 }
 0xc4e   : > { %v6499_v52 = vpop.f32.mrb[60].mxu1 }
 0xc4f   : > { %v6500_v15 = vadd.f32 %v6499_v52, %v6416_v16  ;;  %v7804_v12 = vpop.f32.mrb[61].mxu1 }
 0xc50   : > { %v6502_v54 = vpop.f32.mrb[62].mxu1 }
 0xc51   : > { %6505 = vst [vmem:[%s9041_s16 + $0x7] sm:$0x1] %v6500_v15  ;;  %v7805_v34 = vpop.f32.mrb[63].mxu1 }
 0xc52 PF: > { %s7337_s26 = sshll.u32 %s8882_s13, 7  ;;  %s6526_s14 = sshll.u32 %s9041_s16, 4  ;;  %s6527_s14 = int_to_ptr.vmem [resolvable:$true] %s6526_s14 }
 0xc53   : > { %s10279_s28 = scalar_lea.hbm %s10348_s8, %s7337_s26  ;;  %s6513_s24 = scalar_lea.sflag [#allocation6], %s375_s21 }
 0xc54   : > { %s8692_s17 = scalar_lea.vmem %s6527_s14, 128  ;;  %p10442_p7 = scmp.ne.s32.totalorder %s10384_s19, 0 }
 0xc55   : > { %p8693_p4 = scmp.ne.s32.totalorder %s6527_s14, %s8692_s17  ;;  %s8809_s29 = smov [#allocation12]  }
 0xc56   : > { %s8696_s20 = sshll.u32 %s8809_s29, 4  ;;  %s8697_s20 = int_to_ptr.vmem [resolvable:$false] %s8696_s20 }
 0xc57   : > { %p8694_p8 = pnand %p8693_p4, %p10442_p7  ;;  %s8698_s3 = scalar_lea.vmem %s8697_s20, 256 }
 0xc58   : > { %p8699_p2 = scmp.lt.s32.totalorder %s6527_s14, %s8697_s20  ;;  %p8700_p5 = scmp.lt.s32.totalorder %s8698_s3, %s8692_s17 }
 0xc59   : > { %p8695_p12 = pneg %p8694_p8 }
 0xc5a   : > { %p8701_p1 = por %p8700_p5, %p8699_p2 }
 0xc5c   : > { %p8702_p6 = pnand %p8701_p1, %p8695_p12 }
 0xc5e   : > { %8705 = shalt.err (!%p8702_p6)
}
 0xc5f   : > { %s8706_s21 = scalar_lea.hbm %s10279_s28, 128  ;;  %s8710_s25 = scalar_lea.hbm %s10348_s8, 256 }
 0xc60   : > { %p8707_p9 = scmp.ne.s32.totalorder %s10279_s28, %s8706_s21  ;;  %p8711_p11 = scmp.lt.u32.totalorder %s10279_s28, %s10348_s8 }
 0xc61   : > { %p8712_p0 = scmp.lt.u32.totalorder %s8710_s25, %s8706_s21  ;;  %p8714_p4 = scmp.lt.u32.totalorder %s8706_s21, %s10279_s28 }
 0xc62   : > { %p8708_p10 = pnand %p8707_p9, %p10442_p7 }
 0xc63   : > { %p8713_p3 = por %p8712_p0, %p8711_p11 }
 0xc64   : > { %p8709_p13 = pneg %p8708_p10 }
 0xc65   : > { %p8715_p8 = por %p8714_p4, %p8713_p3 }
 0xc67   : > { %p8716_p12 = pnand %p8715_p8, %p8709_p13 }
 0xc69   : > { %8719 = shalt.err (!%p8716_p12)
}
 0xc6a   : > { %7822 = dma.vmem_to_hbm [thread:$0]  (%p10442_p7), %s6527_s14, 128, %s10279_s28, %s6513_s24  }
 0xc6b   : > { %s8810_s18 = smov [#allocation13]   ;;  %p10443_p5 = scmp.eq.s32.totalorder %s8882_s13, 1 }
 0xc6c   : > { %s6537_s26 = sshll.u32 %s8810_s18, 4  ;;  %s6538_s26 = int_to_ptr.vmem [resolvable:$true] %s6537_s26 }
 0xc6d   : > { %s8720_s11 = scalar_lea.vmem %s6538_s26, 32  ;;  %p8727_p9 = scmp.lt.s32.totalorder %s6538_s26, %s6538_s26 }
 0xc6e   : > { %p8721_p2 = scmp.ne.s32.totalorder %s6538_s26, %s8720_s11  ;;  %p8728_p10 = scmp.lt.s32.totalorder %s8720_s11, %s8720_s11 }
 0xc70   : > { %p8722_p1 = pnand %p8721_p2, %p10443_p5  ;;  %p8729_p11 = por %p8728_p10, %p8727_p9 }
 0xc72   : > { %p8723_p6 = pneg %p8722_p1 }
 0xc74   : > { %p8730_p0 = pnand %p8729_p11, %p8723_p6 }
 0xc76   : > { %8733 = shalt.err (!%p8730_p0)
}
 0xc77   : > { %s8734_s19 = scalar_lea.hbm %s10349_s9, 32  ;;  %p10444_p13 = pmov %p10443_p5 }
 0xc78   : > { %p8735_p7 = scmp.ne.s32.totalorder %s10349_s9, %s8734_s19  ;;  %p8740_p8 = scmp.lt.u32.totalorder %s8734_s19, %s10349_s9 }
 0xc7a   : > { %p8736_p3 = pnand %p8735_p7, %p10444_p13 }
 0xc7c   : > { %p8737_p4 = pneg %p8736_p3 }
 0xc7e   : > { %p8742_p12 = pnand %p8740_p8, %p8737_p4 }
 0xc80   : > { %8745 = shalt.err (!%p8742_p12)
}
 0xc81   : > { %p10445_p2 = pmov %p10443_p5 }
 0xc83   : > { %7824 = dma.vmem_to_hbm [thread:$0]  (%p10445_p2), %s6538_s26, 32, %s10349_s9, [#allocation14]  }
 0xc84   : > { %p10446_p5 = pmov %p10445_p2 }
 0xc85   : > { %p10447_p1 = pmov %p10445_p2 }
 0xc86   : > { %8775 = dma.done.wait (%p10446_p5), [#allocation14], 32  }
 0xc87   : > { %8777 = vsyncadd (%p10447_p1), [#allocation14], 4294967264 }
 0xc88 PF: > { %s10448_s21 = sld [smem:[#allocation23_spill]]  ;;  %p7855_p6 = scmp.ge.s32.totalorder %s8796_s12, 2 }
 0xc89   : > { %s6553_s16 = sand.u32 1, %s8784_s30  }
 0xc8a   : > { %s6554_s22 = scalar_lea.sflag [#allocation6], %s6553_s16 }
 0xc8e   : > { %p10449_p9 = scmp.ne.s32.totalorder %s10448_s21, 0 }
 0xc90   : > { %p7842_p10 = pnand %p7855_p6, %p10449_p9 }
 0xc92   : > { %8779 = dma.done.wait (!%p7842_p10), %s6554_s22, 128  }
 0xc93   : > { %8781 = vsyncadd (!%p7842_p10), %s6554_s22, 4294967168  ;;  %s10450_s12 = sld [smem:[#allocation21_spill]]  ;;  %s10451_s25 = sld [smem:[#allocation20_spill]] }
 0xc94   : > { %s10452_s11 = sld [smem:[#allocation22_spill]]  ;;  %s10453_s30 = smov %s8788_s10 }
 0xc99   : > { %p24_p11 = scmp.ge.s32.totalorder %s10450_s12, 4   ;;  %s10454_s10 = smov %s10451_s25 }
 0xc9b   :  { %26 = sbr.rel (!%p24_p11) target bundleno = 9 (0x9), region = 120 }
 0xca2   :  { %6559 = vsyncpa [#allocation5], 1 }
 0xca3   :  { %6561 = vsyncpa [#allocation5 + $0x1], 1 }
 0xca4   :  { %6562 = vsyncpa [#allocation8], 1 }
 0xca5   :  { %6563 = vsyncpa [#allocation11], 1 }
 0xca6   :  { %6564 = vsyncpa [#allocation6], 1 }
 0xca7   :  { %6566 = vsyncpa [#allocation6 + $0x1], 1 }
 0xca8   :  { %6567 = vsyncpa [#allocation14], 1 }

</bundles_post_ra>
